<compile_context>
chip_gen: v6e
topology: v6e:2x2x1
jax: 0.10.0
libtpu: 0.0.40
codegen_flags: <defaults>
</compile_context>

<pallas_src>
import functools

import jax
import jax.numpy as jnp
from jax.experimental import pallas as pl
from jax.experimental.pallas import tpu as pltpu


# ----------------------------------------------------------------------------
# Pallas kernel: Bt graphs per grid step, full K-step chain resident in VMEM.
# ----------------------------------------------------------------------------
def _dense_appnp_kernel(x_ref, a_ref, out_ref, *, K, alpha):
    # x_ref: (Bt, N, D), a_ref: (Bt, N, N)
    h = x_ref[...].astype(jnp.float32)                       # teleport features
    af = a_ref[...].astype(jnp.float32) * (1.0 - alpha)      # hoisted (1-alpha)*A, once

    inv_k = 1.0 / K
    # bf16 MXU inputs, f32 accumulation.  The final 1/K is folded into the
    # last iteration's constants, so there is no extra (N,D) pass before the store.
    a_scaled = af.astype(jnp.bfloat16)                       # steps 0 .. K-2
    a_last = (af * inv_k).astype(jnp.bfloat16)               # step K-1 (includes /K)
    ah = alpha * h
    ah_last = (alpha * inv_k) * h

    def prop(a_k, b_k, z):
        # accumulate-into form: the add rides the MXU result path (MRB on v7x).
        return b_k + jnp.einsum(
            "bnm,bmd->bnd", a_k, z.astype(jnp.bfloat16),
            preferred_element_type=jnp.float32)

    z = h
    for _ in range(K - 1):                                   # K static -> unrolled
        z = prop(a_scaled, ah, z)
    z = prop(a_last, ah_last, z)                             # last step already /K

    out_ref[...] = z.astype(out_ref.dtype)


# ----------------------------------------------------------------------------
# Wrapper
# ----------------------------------------------------------------------------
def _pick_batch_block(B, N, D, itemsize=4, budget=4 << 20):
    """Largest batch block whose per-step DMA stays ~<= budget, keeping >=2 grid steps."""
    per = N * N * itemsize + 2 * N * D * itemsize
    bt = max(1, min(B, budget // max(per, 1)))
    if B >= 2:
        bt = min(bt, B // 2)      # keep at least 2 grid steps (both v7x TCs busy)
    bt = max(bt, 1)
    while B % bt:
        bt -= 1
    return bt


def dense_appnp(x, adj_t, K, alpha, *, batch_block=None):
    """x: (B, N, D) float32, adj_t: (B, N, N) float32 (dense)."""
    B, N, D = x.shape
    assert adj_t.shape == (B, N, N)

    bt = batch_block or _pick_batch_block(B, N, D, itemsize=adj_t.dtype.itemsize)
    assert B % bt == 0

    adj_bytes = bt * N * N * adj_t.dtype.itemsize
    x_bytes = bt * N * D * x.dtype.itemsize

    # Large graphs: single-buffer the adjacency (kernel is compute-bound per block
    # at K matmuls, so the exposed DMA is a few percent) to halve the biggest buffer.
    adj_kwargs = {}
    if adj_bytes > (8 << 20):
        adj_kwargs["pipeline_mode"] = pl.Buffered(1)

    # Pipeline buffers + in-kernel temporaries (f32 + two bf16 adjacency copies,
    # a handful of (Bt,N,D) f32 live values).  v5e default scoped VMEM is only 16 MiB.
    est = 2 * (adj_bytes + 2 * x_bytes) + bt * N * N * 8 + 5 * bt * N * D * 4
    vmem_limit = int(min(64 << 20, max(32 << 20, est)))

    kernel = functools.partial(_dense_appnp_kernel, K=int(K), alpha=float(alpha))
    return pl.pallas_call(
        kernel,
        out_shape=jax.ShapeDtypeStruct((B, N, D), x.dtype),
        grid=(B // bt,),
        in_specs=[
            pl.BlockSpec((bt, N, D), lambda b: (b, 0, 0)),              # x
            pl.BlockSpec((bt, N, N), lambda b: (b, 0, 0), **adj_kwargs),  # adjacency
        ],
        out_specs=pl.BlockSpec((bt, N, D), lambda b: (b, 0, 0)),
        compiler_params=pltpu.CompilerParams(
            dimension_semantics=("parallel",),          # batch shards across cores
            vmem_limit_bytes=vmem_limit,
        ),
        cost_estimate=pl.CostEstimate(
            flops=2 * B * K * N * N * D,
            transcendentals=0,
            bytes_accessed=adj_t.size * adj_t.dtype.itemsize
                           + 2 * x.size * x.dtype.itemsize,
        ),
    )(x, adj_t)


# ----------------------------------------------------------------------------
# Pure-JAX reference (mirrors the PyTorch forward exactly, f32 everywhere)
# ----------------------------------------------------------------------------
def _dense_appnp_ref(x, adj_t, K, alpha):
    h = x
    z = x
    for _ in range(K):
        z = jnp.einsum("bnm,bmd->bnd", adj_t, z)
        z = z * (1.0 - alpha) + alpha * h
    return z / K


# ----------------------------------------------------------------------------
# Example run
# ----------------------------------------------------------------------------
if __name__ == "__main__":
    K = 10
    alpha = 0.1
    # N = D = 128: full MXU tiles, lane-dense stores; B = 4 -> 2 parallel grid steps.
    B, N, D = 4, 128, 128

    key = jax.random.PRNGKey(0)
    k_x, k_a = jax.random.split(key, 2)

    x = jax.random.normal(k_x, (B, N, D), jnp.float32)

    # deterministic row-stochastic dense adjacency (keeps the K-step recurrence stable)
    raw = jax.random.uniform(k_a, (B, N, N), jnp.float32)
    adj_t = raw / jnp.sum(raw, axis=-1, keepdims=True)

    out = dense_appnp(x, adj_t, K, alpha)
    jax.block_until_ready(out)

    # correctness check vs pure-JAX f32 reference (tolerance relaxed for bf16 MXU inputs)
    ref = _dense_appnp_ref(x, adj_t, K, alpha)
    assert out.shape == (B, N, D)
    assert jnp.allclose(out, ref, rtol=2e-2, atol=2e-3), "DenseAPPNP mismatch"

    print("KERNEL_OK")
</pallas_src>

<mosaic_0001>
module attributes {stable_mosaic.version = 11 : i64} {
  func.func @_dense_appnp_kernel(%arg0: i32, %arg1: memref<2x128x128xf32, #tpu.memory_space<vmem>>, %arg2: memref<2x128x128xf32, #tpu.memory_space<vmem>>, %arg3: memref<2x128x128xf32, #tpu.memory_space<vmem>>) attributes {dimension_semantics = [#tpu.dimension_semantics<parallel>], iteration_bounds = array<i64: 2>, scalar_prefetch = 0 : i64, scratch_operands = 0 : i64, tpu.core_type = #tpu.core_type<tc>, window_params = [{transform_indices = @transform_0, window_bounds = array<i64: 2, 128, 128>}, {transform_indices = @transform_1, window_bounds = array<i64: 2, 128, 128>}, {transform_indices = @transform_2, window_bounds = array<i64: 2, 128, 128>}]} {
    %c0 = arith.constant 0 : index
    %c0_0 = arith.constant 0 : index
    %c0_1 = arith.constant 0 : index
    %0 = vector.load %arg1[%c0, %c0_0, %c0_1] : memref<2x128x128xf32, #tpu.memory_space<vmem>>, vector<2x128x128xf32>
    %c0_2 = arith.constant 0 : index
    %c0_3 = arith.constant 0 : index
    %c0_4 = arith.constant 0 : index
    %1 = vector.load %arg2[%c0_2, %c0_3, %c0_4] : memref<2x128x128xf32, #tpu.memory_space<vmem>>, vector<2x128x128xf32>
    %cst = arith.constant 0.899999976 : f32
    %2 = vector.broadcast %cst : f32 to vector<2x128x128xf32>
    %3 = arith.mulf %1, %2 : vector<2x128x128xf32>
    %4 = arith.truncf %3 : vector<2x128x128xf32> to vector<2x128x128xbf16>
    %cst_5 = arith.constant 1.000000e-01 : f32
    %5 = vector.broadcast %cst_5 : f32 to vector<2x128x128xf32>
    %6 = arith.mulf %3, %5 : vector<2x128x128xf32>
    %7 = arith.truncf %6 : vector<2x128x128xf32> to vector<2x128x128xbf16>
    %cst_6 = arith.constant 1.000000e-01 : f32
    %8 = vector.broadcast %cst_6 : f32 to vector<2x128x128xf32>
    %9 = arith.mulf %8, %0 : vector<2x128x128xf32>
    %cst_7 = arith.constant 0.00999999977 : f32
    %10 = vector.broadcast %cst_7 : f32 to vector<2x128x128xf32>
    %11 = arith.mulf %10, %0 : vector<2x128x128xf32>
    %12 = arith.truncf %0 : vector<2x128x128xf32> to vector<2x128x128xbf16>
    "tpu.trace_start"() <{level = 10 : i32, message = "bnm,bmd->bnd"}> : () -> ()
    %cst_8 = arith.constant dense<0.000000e+00> : vector<2x128x128xf32>
    %13 = tpu.matmul %4, %12, %cst_8 {dimension_numbers = #tpu.dot_dimension_numbers<[2], [1], [1], [2], [0, 0, 0, 1, 1, 2], [0], [0]>} : vector<2x128x128xbf16>, vector<2x128x128xbf16>, vector<2x128x128xf32> -> vector<2x128x128xf32>
    "tpu.trace_stop"() : () -> ()
    %14 = arith.addf %9, %13 : vector<2x128x128xf32>
    %15 = arith.truncf %14 : vector<2x128x128xf32> to vector<2x128x128xbf16>
    "tpu.trace_start"() <{level = 10 : i32, message = "bnm,bmd->bnd"}> : () -> ()
    %cst_9 = arith.constant dense<0.000000e+00> : vector<2x128x128xf32>
    %16 = tpu.matmul %4, %15, %cst_9 {dimension_numbers = #tpu.dot_dimension_numbers<[2], [1], [1], [2], [0, 0, 0, 1, 1, 2], [0], [0]>} : vector<2x128x128xbf16>, vector<2x128x128xbf16>, vector<2x128x128xf32> -> vector<2x128x128xf32>
    "tpu.trace_stop"() : () -> ()
    %17 = arith.addf %9, %16 : vector<2x128x128xf32>
    %18 = arith.truncf %17 : vector<2x128x128xf32> to vector<2x128x128xbf16>
    "tpu.trace_start"() <{level = 10 : i32, message = "bnm,bmd->bnd"}> : () -> ()
    %cst_10 = arith.constant dense<0.000000e+00> : vector<2x128x128xf32>
    %19 = tpu.matmul %4, %18, %cst_10 {dimension_numbers = #tpu.dot_dimension_numbers<[2], [1], [1], [2], [0, 0, 0, 1, 1, 2], [0], [0]>} : vector<2x128x128xbf16>, vector<2x128x128xbf16>, vector<2x128x128xf32> -> vector<2x128x128xf32>
    "tpu.trace_stop"() : () -> ()
    %20 = arith.addf %9, %19 : vector<2x128x128xf32>
    %21 = arith.truncf %20 : vector<2x128x128xf32> to vector<2x128x128xbf16>
    "tpu.trace_start"() <{level = 10 : i32, message = "bnm,bmd->bnd"}> : () -> ()
    %cst_11 = arith.constant dense<0.000000e+00> : vector<2x128x128xf32>
    %22 = tpu.matmul %4, %21, %cst_11 {dimension_numbers = #tpu.dot_dimension_numbers<[2], [1], [1], [2], [0, 0, 0, 1, 1, 2], [0], [0]>} : vector<2x128x128xbf16>, vector<2x128x128xbf16>, vector<2x128x128xf32> -> vector<2x128x128xf32>
    "tpu.trace_stop"() : () -> ()
    %23 = arith.addf %9, %22 : vector<2x128x128xf32>
    %24 = arith.truncf %23 : vector<2x128x128xf32> to vector<2x128x128xbf16>
    "tpu.trace_start"() <{level = 10 : i32, message = "bnm,bmd->bnd"}> : () -> ()
    %cst_12 = arith.constant dense<0.000000e+00> : vector<2x128x128xf32>
    %25 = tpu.matmul %4, %24, %cst_12 {dimension_numbers = #tpu.dot_dimension_numbers<[2], [1], [1], [2], [0, 0, 0, 1, 1, 2], [0], [0]>} : vector<2x128x128xbf16>, vector<2x128x128xbf16>, vector<2x128x128xf32> -> vector<2x128x128xf32>
    "tpu.trace_stop"() : () -> ()
    %26 = arith.addf %9, %25 : vector<2x128x128xf32>
    %27 = arith.truncf %26 : vector<2x128x128xf32> to vector<2x128x128xbf16>
    "tpu.trace_start"() <{level = 10 : i32, message = "bnm,bmd->bnd"}> : () -> ()
    %cst_13 = arith.constant dense<0.000000e+00> : vector<2x128x128xf32>
    %28 = tpu.matmul %4, %27, %cst_13 {dimension_numbers = #tpu.dot_dimension_numbers<[2], [1], [1], [2], [0, 0, 0, 1, 1, 2], [0], [0]>} : vector<2x128x128xbf16>, vector<2x128x128xbf16>, vector<2x128x128xf32> -> vector<2x128x128xf32>
    "tpu.trace_stop"() : () -> ()
    %29 = arith.addf %9, %28 : vector<2x128x128xf32>
    %30 = arith.truncf %29 : vector<2x128x128xf32> to vector<2x128x128xbf16>
    "tpu.trace_start"() <{level = 10 : i32, message = "bnm,bmd->bnd"}> : () -> ()
    %cst_14 = arith.constant dense<0.000000e+00> : vector<2x128x128xf32>
    %31 = tpu.matmul %4, %30, %cst_14 {dimension_numbers = #tpu.dot_dimension_numbers<[2], [1], [1], [2], [0, 0, 0, 1, 1, 2], [0], [0]>} : vector<2x128x128xbf16>, vector<2x128x128xbf16>, vector<2x128x128xf32> -> vector<2x128x128xf32>
    "tpu.trace_stop"() : () -> ()
    %32 = arith.addf %9, %31 : vector<2x128x128xf32>
    %33 = arith.truncf %32 : vector<2x128x128xf32> to vector<2x128x128xbf16>
    "tpu.trace_start"() <{level = 10 : i32, message = "bnm,bmd->bnd"}> : () -> ()
    %cst_15 = arith.constant dense<0.000000e+00> : vector<2x128x128xf32>
    %34 = tpu.matmul %4, %33, %cst_15 {dimension_numbers = #tpu.dot_dimension_numbers<[2], [1], [1], [2], [0, 0, 0, 1, 1, 2], [0], [0]>} : vector<2x128x128xbf16>, vector<2x128x128xbf16>, vector<2x128x128xf32> -> vector<2x128x128xf32>
    "tpu.trace_stop"() : () -> ()
    %35 = arith.addf %9, %34 : vector<2x128x128xf32>
    %36 = arith.truncf %35 : vector<2x128x128xf32> to vector<2x128x128xbf16>
    "tpu.trace_start"() <{level = 10 : i32, message = "bnm,bmd->bnd"}> : () -> ()
    %cst_16 = arith.constant dense<0.000000e+00> : vector<2x128x128xf32>
    %37 = tpu.matmul %4, %36, %cst_16 {dimension_numbers = #tpu.dot_dimension_numbers<[2], [1], [1], [2], [0, 0, 0, 1, 1, 2], [0], [0]>} : vector<2x128x128xbf16>, vector<2x128x128xbf16>, vector<2x128x128xf32> -> vector<2x128x128xf32>
    "tpu.trace_stop"() : () -> ()
    %38 = arith.addf %9, %37 : vector<2x128x128xf32>
    %39 = arith.truncf %38 : vector<2x128x128xf32> to vector<2x128x128xbf16>
    "tpu.trace_start"() <{level = 10 : i32, message = "bnm,bmd->bnd"}> : () -> ()
    %cst_17 = arith.constant dense<0.000000e+00> : vector<2x128x128xf32>
    %40 = tpu.matmul %7, %39, %cst_17 {dimension_numbers = #tpu.dot_dimension_numbers<[2], [1], [1], [2], [0, 0, 0, 1, 1, 2], [0], [0]>} : vector<2x128x128xbf16>, vector<2x128x128xbf16>, vector<2x128x128xf32> -> vector<2x128x128xf32>
    "tpu.trace_stop"() : () -> ()
    %41 = arith.addf %11, %40 : vector<2x128x128xf32>
    %c0_18 = arith.constant 0 : index
    %c0_19 = arith.constant 0 : index
    %c0_20 = arith.constant 0 : index
    %42 = vector.load %arg3[%c0_18, %c0_19, %c0_20] : memref<2x128x128xf32, #tpu.memory_space<vmem>>, vector<2x128x128xf32>
    tpu.vector_store %arg3[%c0_18, %c0_19, %c0_20], %41 {strides = array<i32>} : memref<2x128x128xf32, #tpu.memory_space<vmem>>, vector<2x128x128xf32>,
    return
  }
  func.func @transform_0(%arg0: i32) -> (i32, i32, i32) {
    %c0_i32 = arith.constant 0 : i32
    %c0_i32_0 = arith.constant 0 : i32
    %c0_i32_1 = arith.constant 0 : i32
    return %arg0, %c0_i32, %c0_i32_0 : i32, i32, i32
  }
  func.func @transform_1(%arg0: i32) -> (i32, i32, i32) {
    %c0_i32 = arith.constant 0 : i32
    %c0_i32_0 = arith.constant 0 : i32
    %c0_i32_1 = arith.constant 0 : i32
    return %arg0, %c0_i32, %c0_i32_0 : i32, i32, i32
  }
  func.func @transform_2(%arg0: i32) -> (i32, i32, i32) {
    %c0_i32 = arith.constant 0 : i32
    %c0_i32_0 = arith.constant 0 : i32
    %c0_i32_1 = arith.constant 0 : i32
    return %arg0, %c0_i32, %c0_i32_0 : i32, i32, i32
  }
}

</mosaic_0001>

<bundles_post_ra>
// kernel: tpu_custom_call.1
= control target key start
LH: loop header
LB: loop body
LE: loop exit
PB: predicated region body
PF: predicated region fallthrough
CT: control target
= control target key end

     0   :  { %7 = vsyncpa [#allocation3], 0  ;;  %s5674_s0 = inlined_call_operand.hbm [shape: f32[4,128,128], index: 0, kind: input, shape index: {}]   ;;  %s5675_s1 = inlined_call_operand.hbm [shape: f32[4,128,128], index: 1, kind: input, shape index: {}]   ;;  %s5676_s2 = inlined_call_operand.hbm [shape: f32[4,128,128], index: 2, kind: output, shape index: {}]  }
   0x1   :  { %9 = vsyncpa [#allocation3 + $0x1], 0 }
   0x2   :  { %10 = vsyncpa [#allocation6], 0 }
   0x3   :  { %12 = vsyncpa [#allocation6 + $0x1], 0 }
   0x4   :  { %13 = vsyncpa [#allocation4], 0 }
   0x5   :  { %15 = vsyncpa [#allocation4 + $0x1], 0  ;;  %s4217_s9 = smov 0   ;;  %s4219_s10 = smov 0  }
   0x6   :  { %s4221_s11 = smov 0   ;;  %s4223_s12 = smov 0  }
   0x7 LB: > { %s4238_s13 = sadd.s32 4294967295, %s4193_s12   ;;  %s2995_s14 = sadd.s32 4294967294, %s4193_s12   ;;  %s4193_s12 = sphi %s4223_s12, %s6133_s12   ;;  %s4189_s11 = sphi %s4221_s11, %s6132_s11   ;;  %s4185_s10 = sphi %s4219_s10, %s6131_s10   ;;  %s4181_s9 = sphi %s4217_s9, %s6130_s9  }
   0x8   : > { %s4242_s15 = sadd.s32 1, %s4193_s12   ;;  %s28_s16 = sadd.s32 1, %s4189_s11 }
   0x9   : > { %s25_s17 = ssub.s32 %s4193_s12, %s4242_s15  ;;  %p35_p0 = scmp.ne.s32.totalorder %s4189_s11, %s4185_s10 }
   0xa   : > { %p26_p1 = scmp.eq.s32.totalorder %s25_s17, 0  ;;  %p36_p2 = scmp.eq.s32.totalorder %s4193_s12, 0 }
   0xb   : > { %p41_p3 = scmp.ne.s32.totalorder %s4185_s10, %s4181_s9  ;;  %p42_p4 = scmp.eq.s32.totalorder %s4238_s13, 0 }
   0xc   : > { %s4254_s18 = scalar_select %p26_p1, %s4189_s11, %s28_s16  }
   0xd   : > { %p4256_p5 = por %p36_p2, %p35_p0  ;;  %p4260_p6 = por %p42_p4, %p41_p3 }
   0xe   : > { %p91_p7 = scmp.eq.s32.totalorder %s4238_s13, 1  ;;  %p97_p8 = scmp.eq.s32.totalorder %s2995_s14, 1 }
   0xf   : > { %s5762_s20 = scalar_select %p4260_p6, 1, 0 }
  0x10   : > { %p3999_p10 = scmp.lt.s32.totalorder %s4193_s12, 2  ;;  %p4267_p11 = por %p91_p7, %p35_p0 }
  0x11   : > { %p4271_p12 = por %p97_p8, %p41_p3  ;;  %s4276_s23 = sand.u32 1, %s4189_s11  }
  0x12   : > { %s5763_s21 = scalar_select %p4267_p11, 1, 0 }
  0x13   : > { %s5764_s22 = scalar_select %p4271_p12, 1, 0 }
  0x14   : > { %s3017_s24 = sshll.u32 %s4193_s12, 12  ;;  %s2998_s25 = sshll.u32 %s4276_s23, 8 }
  0x15   : > { %s4285_s28 = scalar_lea.hbm %s5674_s0, %s3017_s24  ;;  %s121_s29 = scalar_lea.vmem [#allocation2], %s2998_s25 }
  0x16   : > { %s129_s30 = sshll.u32 %s121_s29, 4  ;;  %p4291_p13 = pnand %p3999_p10, %p4256_p5  ;;  %s4295_s30 = int_to_ptr.vmem [resolvable:$true] %s129_s30 }
  0x17   : > { %s118_s4 = scalar_lea.sflag [#allocation3], %s4276_s23  ;;  %s4069_s5 = scalar_lea.hbm %s4285_s28, 4096 }
  0x18   : > { %p4070_p0 = scmp.ne.s32.totalorder %s4285_s28, %s4069_s5  ;;  %p4071_p1 = pneg %p4291_p13 }
  0x19   : > { %s4074_s8 = scalar_lea.hbm %s5674_s0, 8192  ;;  %p4075_p4 = scmp.lt.s32.totalorder %s4285_s28, %s5674_s0 }
  0x1a   : > { %p4072_p2 = pnand %p4071_p1, %p4070_p0  ;;  %p4076_p5 = scmp.lt.s32.totalorder %s4074_s8, %s4069_s5 }
  0x1c   : > { %p4073_p3 = pneg %p4072_p2  ;;  %p4077_p7 = por %p4076_p5, %p4075_p4 }
  0x1e   : > { %p4078_p8 = pnand %p4077_p7, %p4073_p3 }
  0x20   : > { %4081 = shalt.err (!%p4078_p8)
}
  0x21   : > { %s4082_s17 = scalar_lea.vmem %s4295_s30, 4096  ;;  %s4195_s19 = smov [#allocation2]  }
  0x22   : > { %p4083_p10 = scmp.ne.s32.totalorder %s4295_s30, %s4082_s17  ;;  %s4087_s26 = sshll.u32 %s4195_s19, 4  ;;  %s4088_s26 = int_to_ptr.vmem [resolvable:$false] %s4087_s26 }
  0x23   : > { %s4089_s27 = scalar_lea.vmem %s4088_s26, 8192  ;;  %p4090_p9 = scmp.lt.s32.totalorder %s4295_s30, %s4088_s26 }
  0x24   : > { %p4085_p0 = pnand %p4083_p10, %p4071_p1  ;;  %p4091_p12 = scmp.lt.s32.totalorder %s4089_s27, %s4082_s17 }
  0x26   : > { %p4086_p2 = pneg %p4085_p0  ;;  %p4092_p11 = por %p4091_p12, %p4090_p9 }
  0x28   : > { %p4093_p4 = pnand %p4092_p11, %p4086_p2 }
  0x2a   : > { %4096 = shalt.err (!%p4093_p4)
}
  0x2b   : > { %s4196_s29 = smov 128   ;;  %s4197_s5 = smov 8  }
  0x2c   : > { %3991 = dma.hbm_to_vmem [thread:$0]  (!%p4291_p13), %s4285_s28, 4096, %s4295_s30, %s118_s4, %s4196_s29, %s4196_s29, %s4197_s5  }
  0x2d   : > { %p3006_p9 = scmp.ge.s32.totalorder %s4193_s12, 1  ;;  %p159_p11 = scmp.lt.s32.totalorder %s4193_s12, 3 }
  0x2e   : > { %s4338_s14 = scalar_lea.hbm %s5675_s1, %s3017_s24  ;;  %s143_s16 = scalar_lea.vmem [#allocation5], %s2998_s25 }
  0x2f   : > { %p4329_p12 = pnand %p3006_p9, %p159_p11  ;;  %s151_s17 = sshll.u32 %s143_s16, 4  ;;  %s4342_s17 = int_to_ptr.vmem [resolvable:$true] %s151_s17 }
  0x30   : > { %s140_s28 = scalar_lea.sflag [#allocation6], %s4276_s23  ;;  %s4097_s30 = scalar_lea.hbm %s4338_s14, 4096 }
  0x31   : > { %p4098_p3 = scmp.ne.s32.totalorder %s4338_s14, %s4097_s30  ;;  %s4102_s24 = scalar_lea.hbm %s5675_s1, 8192 }
  0x32   : > { %p4103_p8 = scmp.lt.s32.totalorder %s4338_s14, %s5675_s1  ;;  %p4104_p10 = scmp.lt.s32.totalorder %s4102_s24, %s4097_s30 }
  0x33   : > { %p4100_p5 = pnand %p4098_p3, %p4071_p1 }
  0x34   : > { %p4105_p0 = por %p4104_p10, %p4103_p8 }
  0x35   : > { %p4101_p7 = pneg %p4100_p5 }
  0x37   : > { %p4106_p2 = pnand %p4105_p0, %p4101_p7 }
  0x39   : > { %4109 = shalt.err (!%p4106_p2)
}
  0x3a   : > { %s4110_s23 = scalar_lea.vmem %s4342_s17, 4096  ;;  %s4198_s25 = smov [#allocation5]  }
  0x3b   : > { %p4111_p4 = scmp.ne.s32.totalorder %s4342_s17, %s4110_s23  ;;  %s4115_s7 = sshll.u32 %s4198_s25, 4  ;;  %s4116_s7 = int_to_ptr.vmem [resolvable:$false] %s4115_s7 }
  0x3c   : > { %s4117_s8 = scalar_lea.vmem %s4116_s7, 8192  ;;  %p4118_p3 = scmp.lt.s32.totalorder %s4342_s17, %s4116_s7 }
  0x3d   : > { %p4113_p9 = pnand %p4111_p4, %p4071_p1  ;;  %p4119_p5 = scmp.lt.s32.totalorder %s4117_s8, %s4110_s23 }
  0x3f   : > { %p4114_p11 = pneg %p4113_p9  ;;  %p4120_p6 = por %p4119_p5, %p4118_p3 }
  0x41   : > { %p4121_p8 = pnand %p4120_p6, %p4114_p11 }
  0x43   : > { %4124 = shalt.err (!%p4121_p8)
}
  0x44   : > { %3994 = dma.hbm_to_vmem [thread:$0]  (!%p4291_p13), %s4338_s14, 4096, %s4342_s17, %s140_s28, %s4196_s29, %s4196_s29, %s4197_s5  }
  0x45   : > { %163 = sbr.rel (%p4329_p12) target bundleno = 2668 (0xa6c), region = 28 }
  0x4a   : > { %s4373_s16 = sand.u32 1, %s4185_s10   ;;  %p5767_p6 = scmp.ne.s32.totalorder %s5762_s20, 0 }
  0x4b   : > { %s4376_s30 = sshll.u32 %s4373_s16, 8  ;;  %s166_s4 = scalar_lea.sflag [#allocation3], %s4373_s16 }
  0x4c   : > { %s4380_s3 = scalar_lea.vmem [#allocation2], %s4376_s30 }
  0x4d   : > { %4168 = dma.done.wait (%p5767_p6), %s166_s4, 4096  }
  0x4e   : > { %4170 = vsyncadd (%p5767_p6), %s166_s4, 4294963200  ;;  %s175_s29 = scalar_lea.sflag [#allocation6], %s4373_s16  ;;  %s4388_s5 = scalar_lea.vmem [#allocation5], %s4376_s30 }
  0x4f   : > { %4172 = dma.done.wait (%p5767_p6), %s175_s29, 4096  }
  0x50   : > { %4174 = vsyncadd (%p5767_p6), %s175_s29, 4294963200  ;;  %v4395_v0 = vld [vmem:[%s4380_s3 + $0x70] sm:$0xff]  ;;  %v4398_v1 = vld [vmem:[%s4380_s3 + $0x78] sm:$0xff]  ;;  %s5564_s20 = scalar_lea.vmem [#allocation7], %s4376_s30  ;;  %s3021_s6 = sshll.u32 %s4238_s13, 12 }
  0x51   : > { %v4401_v2 = vld [vmem:[%s4380_s3 + $0xf0] sm:$0xff]  ;;  %v439_v3 = vpack.c.bf16 %v4398_v1, %v4395_v0  ;;  %v4406_v4 = vld [vmem:[%s4380_s3 + $0xf8] sm:$0xff]  ;;  %v4409_v5 = vld [vmem:[%s4380_s3 + $0x60] sm:$0xff]  ;;  %s2899_s14 = sshll.u32 %s5564_s20, 4  ;;  %s5626_s19 = scalar_lea.hbm %s5676_s2, %s3021_s6  ;;  %s5628_s14 = int_to_ptr.vmem [resolvable:$true] %s2899_s14 }
  0x52   : > { %v447_v6 = vpack.c.bf16 %v4406_v4, %v4401_v2  ;;  %v4414_v7 = vld [vmem:[%s4380_s3 + $0x68] sm:$0xff]  ;;  %v4417_v8 = vld [vmem:[%s4380_s3 + $0xe0] sm:$0xff]  ;;  %v4425_v11 = vld [vmem:[%s4380_s3 + $0x50] sm:$0xff]  ;;  %s2885_s13 = scalar_lea.sflag [#allocation4], %s4373_s16  ;;  %s4125_s24 = scalar_lea.vmem %s5628_s14, 4096 }
  0x53   : > { %3342 = vmatprep.subr.bf16.mxu0 %v439_v3  ;;  %v438_v9 = vpack.c.bf16 %v4414_v7, %v4409_v5  ;;  %v4422_v10 = vld [vmem:[%s4380_s3 + $0xe8] sm:$0xff]  ;;  %v4430_v13 = vld [vmem:[%s4380_s3 + $0x58] sm:$0xff]  ;;  %v4433_v14 = vld [vmem:[%s4380_s3 + $0xd0] sm:$0xff]  ;;  %p4126_p13 = scmp.ne.s32.totalorder %s5628_s14, %s4125_s24  ;;  %p6127_p1 = scmp.ne.s32.totalorder %s5763_s21, 0 }
  0x54   : > { %3374 = vmatprep.subr.bf16.mxu1 %v447_v6  ;;  %3343 = vmatpush3.bf16.msra.mxu0 %v439_v3  ;;  %v446_v12 = vpack.c.bf16 %v4422_v10, %v4417_v8  ;;  %v437_v15 = vpack.c.bf16 %v4430_v13, %v4425_v11  ;;  %v4438_v16 = vld [vmem:[%s4380_s3 + $0xd8] sm:$0xff]  ;;  %v4443_v18 = vld [vmem:[%s4380_s3 + $0x40] sm:$0xff]  ;;  %v4446_v19 = vld [vmem:[%s4380_s3 + $0x48] sm:$0xff]  ;;  %s4199_s26 = smov [#allocation7]  }
  0x55   : > { %3375 = vmatpush3.bf16.msra.mxu1 %v447_v6  ;;  %3344 = vmatprep.subr.bf16.mxu0 %v438_v9  ;;  %v445_v17 = vpack.c.bf16 %v4438_v16, %v4433_v14  ;;  %v4449_v20 = vld [vmem:[%s4380_s3 + $0xc0] sm:$0xff]  ;;  %v4452_v21 = vld [vmem:[%s4380_s3 + $0xc8] sm:$0xff]  ;;  %v436_v22 = vpack.c.bf16 %v4446_v19, %v4443_v18  ;;  %v4459_v24 = vld [vmem:[%s4380_s3 + $0x30] sm:$0xff]  ;;  %p4127_p12 = pnand %p4126_p13, %p6127_p1  ;;  %s4129_s27 = sshll.u32 %s4199_s26, 4  ;;  %s4130_s27 = int_to_ptr.vmem [resolvable:$false] %s4129_s27 }
  0x56   : > { %3376 = vmatprep.subr.bf16.mxu1 %v446_v12  ;;  %v444_v23 = vpack.c.bf16 %v4452_v21, %v4449_v20  ;;  %v4462_v25 = vld [vmem:[%s4380_s3 + $0x38] sm:$0xff]  ;;  %v4465_v26 = vld [vmem:[%s4380_s3 + $0xb0] sm:$0xff]  ;;  %v4475_v30 = vld [vmem:[%s4380_s3 + $0x20] sm:$0xff]  ;;  %s4131_s23 = scalar_lea.vmem %s4130_s27, 8192  ;;  %p4132_p10 = scmp.lt.s32.totalorder %s5628_s14, %s4130_s27 }
  0x57   : > { %v4468_v27 = vld [vmem:[%s4380_s3 + $0xb8] sm:$0xff]  ;;  %v435_v28 = vpack.c.bf16 %v4462_v25, %v4459_v24  ;;  %v4478_v31 = vld [vmem:[%s4380_s3 + $0x28] sm:$0xff]  ;;  %v4481_v32 = vld [vmem:[%s4380_s3 + $0xa0] sm:$0xff]  ;;  %p4128_p7 = pneg %p4127_p12  ;;  %p4133_p0 = scmp.lt.s32.totalorder %s4131_s23, %s4125_s24 }
  0x58   : > { %3345 = vmatpush3.bf16.msra.mxu0 %v438_v9  ;;  %v443_v29 = vpack.c.bf16 %v4468_v27, %v4465_v26  ;;  %v4484_v33 = vld [vmem:[%s4380_s3 + $0xa8] sm:$0xff]  ;;  %v240_v34 = vld [vmem:[%s4388_s5] sm:$0xff]  ;;  %v434_v37 = vpack.c.bf16 %v4478_v31, %v4475_v30  ;;  %v4499_v42 = vld [vmem:[%s4380_s3 + $0x10] sm:$0xff] }
  0x59   : > { %3377 = vmatpush3.bf16.msra.mxu1 %v446_v12  ;;  %3346 = vmatprep.subr.bf16.mxu0 %v437_v15  ;;  %v241_v35 = vld [vmem:[%s4388_s5 + $0x8] sm:$0xff]  ;;  %v256_v36 = vld [vmem:[%s4388_s5 + $0x80] sm:$0xff]  ;;  %v4491_v38 = vmul.f32 0.9, %v240_v34  ;;  %v442_v41 = vpack.c.bf16 %v4484_v33, %v4481_v32  ;;  %v4502_v43 = vld [vmem:[%s4380_s3 + $0x18] sm:$0xff]  ;;  %p4134_p2 = por %p4133_p0, %p4132_p10 }
  0x5a   : > { %3378 = vmatprep.subr.bf16.mxu1 %v445_v17  ;;  %v4493_v39 = vmul.f32 0.9, %v241_v35  ;;  %v257_v40 = vld [vmem:[%s4388_s5 + $0x88] sm:$0xff]  ;;  %v4504_v44 = vmul.f32 0.9, %v256_v36  ;;  %v4509_v46 = vld [vmem:[%s4380_s3 + $0x90] sm:$0xff]  ;;  %v433_v50 = vpack.c.bf16 %v4502_v43, %v4499_v42 }
  0x5b   : > { %5768 = vst [vmem:[#allocation11_spill] sm:$0xff] %v4491_v38  ;;  %v4506_v45 = vmul.f32 0.9, %v257_v40  ;;  %v4512_v47 = vld [vmem:[%s4380_s3 + $0x98] sm:$0xff]  ;;  %v4527_v52 = vld [vmem:[%s4380_s3] sm:$0xff]  ;;  %v4530_v53 = vld [vmem:[%s4380_s3 + $0x8] sm:$0xff]  ;;  %p4135_p4 = pnand %p4134_p2, %p4128_p7 }
  0x5c   : > { %3347 = vmatpush3.bf16.msra.mxu0 %v437_v15  ;;  %5769 = vst [vmem:[#allocation12_spill] sm:$0xff] %v4493_v39  ;;  %5770 = vst [vmem:[#allocation13_spill] sm:$0xff] %v4504_v44  ;;  %v4516_v48 = vpack.c.bf16 %v4493_v39, %v4491_v38  ;;  %v441_v51 = vpack.c.bf16 %v4512_v47, %v4509_v46  ;;  %v4534_v54 = vld [vmem:[%s4380_s3 + $0x80] sm:$0xff]  ;;  %v4537_v55 = vld [vmem:[%s4380_s3 + $0x88] sm:$0xff]  ;;  %v432_v59 = vpack.c.bf16 %v4530_v53, %v4527_v52 }
  0x5d   : > { %3379 = vmatpush3.bf16.msra.mxu1 %v445_v17  ;;  %3348 = vmatprep.subr.bf16.mxu0 %v436_v22  ;;  %5771 = vst [vmem:[#allocation14_spill] sm:$0xff] %v4506_v45  ;;  %v4520_v49 = vpack.c.bf16 %v4506_v45, %v4504_v44  ;;  %5774 = vst [vmem:[#allocation17_spill] sm:$0xff] %v4527_v52  ;;  %v242_v56 = vld [vmem:[%s4388_s5 + $0x10] sm:$0xff]  ;;  %v243_v57 = vld [vmem:[%s4388_s5 + $0x18] sm:$0xff]  ;;  %v440_v63 = vpack.c.bf16 %v4537_v55, %v4534_v54 }
  0x5e   : > { %3380 = vmatprep.subr.bf16.mxu1 %v444_v23  ;;  %5772 = vst [vmem:[#allocation15_spill] sm:$0xff] %v4516_v48  ;;  %3358 = vmatprep.mubr.bf16.mxu0 %v4516_v48  ;;  %5775 = vst [vmem:[#allocation18_spill] sm:$0xff] %v4534_v54  ;;  %v258_v58 = vld [vmem:[%s4388_s5 + $0x90] sm:$0xff]  ;;  %v259_v60 = vld [vmem:[%s4388_s5 + $0x98] sm:$0xff]  ;;  %v4552_v9 = vmul.f32 0.9, %v242_v56 }
  0x5f   : > { %5773 = vst [vmem:[#allocation16_spill] sm:$0xff] %v4520_v49  ;;  %3390 = vmatprep.mubr.bf16.mxu1 %v4520_v49  ;;  %v244_v61 = vld [vmem:[%s4388_s5 + $0x20] sm:$0xff]  ;;  %v245_v62 = vld [vmem:[%s4388_s5 + $0x28] sm:$0xff]  ;;  %v4554_v12 = vmul.f32 0.9, %v243_v57  ;;  %v247_v40 = vld [vmem:[%s4388_s5 + $0x38] sm:$0xff] }
  0x60   : > { %3349 = vmatpush3.bf16.msra.mxu0 %v436_v22  ;;  %v260_v3 = vld [vmem:[%s4388_s5 + $0xa0] sm:$0xff]  ;;  %v261_v6 = vld [vmem:[%s4388_s5 + $0xa8] sm:$0xff]  ;;  %5776 = vst [vmem:[#allocation19_spill] sm:$0xff] %v4552_v9  ;;  %v4556_v15 = vmul.f32 0.9, %v258_v58 }
  0x61   : > { %3381 = vmatpush3.bf16.msra.mxu1 %v444_v23  ;;  %3350 = vmatprep.subr.bf16.mxu0 %v435_v28  ;;  %5777 = vst [vmem:[#allocation20_spill] sm:$0xff] %v4554_v12  ;;  %v4558_v17 = vmul.f32 0.9, %v259_v60  ;;  %v4560_v22 = vmul.f32 0.9, %v244_v61  ;;  %v4570_v34 = vpack.c.bf16 %v4554_v12, %v4552_v9  ;;  %v248_v56 = vld [vmem:[%s4388_s5 + $0x40] sm:$0xff] }
  0x62   : > { %3382 = vmatprep.subr.bf16.mxu1 %v443_v29  ;;  %5778 = vst [vmem:[#allocation21_spill] sm:$0xff] %v4556_v15  ;;  %v4562_v23 = vmul.f32 0.9, %v245_v62  ;;  %v249_v57 = vld [vmem:[%s4388_s5 + $0x48] sm:$0xff]  ;;  %v264_v58 = vld [vmem:[%s4388_s5 + $0xc0] sm:$0xff] }
  0x63   : > { %5779 = vst [vmem:[#allocation22_spill] sm:$0xff] %v4558_v17  ;;  %5780 = vst [vmem:[#allocation23_spill] sm:$0xff] %v4560_v22  ;;  %v4574_v35 = vpack.c.bf16 %v4558_v17, %v4556_v15  ;;  %v4595_v61 = vmul.f32 0.9, %v247_v40  ;;  %v271_v15 = vld [vmem:[%s4388_s5 + $0xf8] sm:$0xff] }
  0x64   : > { %3351 = vmatpush3.bf16.msra.mxu0 %v435_v28  ;;  %5781 = vst [vmem:[#allocation24_spill] sm:$0xff] %v4562_v23  ;;  %v4564_v28 = vmul.f32 0.9, %v260_v3  ;;  %5784 = vst [vmem:[#allocation27_spill] sm:$0xff] %v4570_v34  ;;  %v4578_v36 = vpack.c.bf16 %v4562_v23, %v4560_v22  ;;  %v4603_v3 = vmul.f32 0.9, %v248_v56 }
  0x65   : > { %3383 = vmatpush3.bf16.msra.mxu1 %v443_v29  ;;  %3352 = vmatprep.subr.bf16.mxu0 %v434_v37  ;;  %v4566_v29 = vmul.f32 0.9, %v261_v6  ;;  %5785 = vst [vmem:[#allocation28_spill] sm:$0xff] %v4574_v35  ;;  %5789 = vst [vmem:[#allocation32_spill] sm:$0xff] %v4595_v61  ;;  %v4605_v6 = vmul.f32 0.9, %v249_v57 }
  0x66   : > { %3384 = vmatprep.subr.bf16.mxu1 %v442_v41  ;;  %5782 = vst [vmem:[#allocation25_spill] sm:$0xff] %v4564_v28  ;;  %5786 = vst [vmem:[#allocation29_spill] sm:$0xff] %v4578_v36  ;;  %v250_v57 = vld [vmem:[%s4388_s5 + $0x50] sm:$0xff]  ;;  %v252_v23 = vld [vmem:[%s4388_s5 + $0x60] sm:$0xff] }
  0x67   : > { %5783 = vst [vmem:[#allocation26_spill] sm:$0xff] %v4566_v29  ;;  %5792 = vst [vmem:[#allocation35_spill] sm:$0xff] %v4603_v3  ;;  %v4622_v56 = vpack.c.bf16 %v4605_v6, %v4603_v3  ;;  %v253_v22 = vld [vmem:[%s4388_s5 + $0x68] sm:$0xff] }
  0x68   : > { %3353 = vmatpush3.bf16.msra.mxu0 %v434_v37  ;;  %v246_v37 = vld [vmem:[%s4388_s5 + $0x30] sm:$0xff]  ;;  %5793 = vst [vmem:[#allocation36_spill] sm:$0xff] %v4605_v6 }
  0x69   : > { %3385 = vmatpush3.bf16.msra.mxu1 %v442_v41  ;;  %3354 = vmatprep.subr.bf16.mxu0 %v433_v50  ;;  %v262_v41 = vld [vmem:[%s4388_s5 + $0xb0] sm:$0xff]  ;;  %v4593_v60 = vmul.f32 0.9, %v246_v37  ;;  %v4608_v37 = vmul.f32 0.9, %v264_v58  ;;  %5798 = vst [vmem:[#allocation41_spill] sm:$0xff] %v4622_v56 }
  0x6a   : > { %3386 = vmatprep.subr.bf16.mxu1 %v441_v51  ;;  %v4597_v62 = vmul.f32 0.9, %v262_v41 }
  0x6b   : > { %5788 = vst [vmem:[#allocation31_spill] sm:$0xff] %v4593_v60  ;;  %5794 = vst [vmem:[#allocation37_spill] sm:$0xff] %v4608_v37  ;;  %v4614_v41 = vpack.c.bf16 %v4595_v61, %v4593_v60  ;;  %v268_v61 = vld [vmem:[%s4388_s5 + $0xe0] sm:$0xff]  ;;  %v269_v60 = vld [vmem:[%s4388_s5 + $0xe8] sm:$0xff] }
  0x6c   : > { %3355 = vmatpush3.bf16.msra.mxu0 %v433_v50  ;;  %v4585_v50 = vpack.c.bf16 %v4566_v29, %v4564_v28  ;;  %5790 = vst [vmem:[#allocation33_spill] sm:$0xff] %v4597_v62  ;;  %v251_v29 = vld [vmem:[%s4388_s5 + $0x58] sm:$0xff]  ;;  %v266_v28 = vld [vmem:[%s4388_s5 + $0xd0] sm:$0xff] }
  0x6d   : > { %3387 = vmatpush3.bf16.msra.mxu1 %v441_v51  ;;  %3356 = vmatprep.subr.bf16.mxu0 %v432_v59  ;;  %v263_v51 = vld [vmem:[%s4388_s5 + $0xb8] sm:$0xff]  ;;  %5796 = vst [vmem:[#allocation39_spill] sm:$0xff] %v4614_v41  ;;  %v4639_v6 = vmul.f32 0.9, %v251_v29  ;;  %v4641_v3 = vmul.f32 0.9, %v266_v28 }
  0x6e   : > { %3388 = vmatprep.subr.bf16.mxu1 %v440_v63  ;;  %5787 = vst [vmem:[#allocation30_spill] sm:$0xff] %v4585_v50  ;;  %v4654_v29 = vmul.f32 0.9, %v269_v60  ;;  %v270_v60 = vld [vmem:[%s4388_s5 + $0xf0] sm:$0xff] }
  0x6f   : > { %5801 = vst [vmem:[#allocation44_spill] sm:$0xff] %v4639_v6  ;;  %5802 = vst [vmem:[#allocation45_spill] sm:$0xff] %v4641_v3 }
  0x70   : > { %3357 = vmatpush3.bf16.msra.mxu0 %v432_v59  ;;  %v265_v59 = vld [vmem:[%s4388_s5 + $0xc8] sm:$0xff]  ;;  %5807 = vst [vmem:[#allocation50_spill] sm:$0xff] %v4654_v29 }
  0x71   : > { %3389 = vmatpush3.bf16.msra.mxu1 %v440_v63  ;;  %v4601_v63 = vmul.f32 0.9, %v263_v51  ;;  %v4610_v40 = vmul.f32 0.9, %v265_v59  ;;  %v267_v59 = vld [vmem:[%s4388_s5 + $0xd8] sm:$0xff] }
  0x73   : > { %3359 = vmatmul.mubr.bf16.vlgmr.msra.gmra.mxu0 %v4570_v34  ;;  %5791 = vst [vmem:[#allocation34_spill] sm:$0xff] %v4601_v63  ;;  %5795 = vst [vmem:[#allocation38_spill] sm:$0xff] %v4610_v40  ;;  %v4618_v51 = vpack.c.bf16 %v4601_v63, %v4597_v62  ;;  %v4629_v58 = vpack.c.bf16 %v4610_v40, %v4608_v37  ;;  %v4637_v63 = vmul.f32 0.9, %v250_v57  ;;  %v4645_v40 = vmul.f32 0.9, %v267_v59 }
  0x74   : > { %3391 = vmatmul.mubr.bf16.vlgmr.msra.gmra.mxu1 %v4574_v35  ;;  %3362 = vmatprep.mubr.bf16.mxu0 %v4578_v36  ;;  %v4647_v37 = vmul.f32 0.9, %v252_v23  ;;  %v4649_v62 = vmul.f32 0.9, %v253_v22  ;;  %v4652_v57 = vmul.f32 0.9, %v268_v61 }
  0x75   : > { %3394 = vmatprep.mubr.bf16.mxu1 %v4585_v50  ;;  %5797 = vst [vmem:[#allocation40_spill] sm:$0xff] %v4618_v51  ;;  %5799 = vst [vmem:[#allocation42_spill] sm:$0xff] %v4629_v58  ;;  %v4658_v28 = vpack.c.bf16 %v4639_v6, %v4637_v63  ;;  %v4662_v17 = vpack.c.bf16 %v4645_v40, %v4641_v3  ;;  %v254_v22 = vld [vmem:[%s4388_s5 + $0x70] sm:$0xff]  ;;  %v255_v59 = vld [vmem:[%s4388_s5 + $0x78] sm:$0xff]  ;;  %v4741_v50 = vmul.f32 0.1, %v4401_v2 }
  0x76   : > { %5800 = vst [vmem:[#allocation43_spill] sm:$0xff] %v4637_v63  ;;  %5803 = vst [vmem:[#allocation46_spill] sm:$0xff] %v4645_v40  ;;  %v4666_v23 = vpack.c.bf16 %v4649_v62, %v4647_v37  ;;  %v4672_v61 = vpack.c.bf16 %v4654_v29, %v4652_v57  ;;  %v4677_v6 = vmul.f32 0.9, %v254_v22  ;;  %v4679_v63 = vmul.f32 0.9, %v255_v59 }
  0x77   : > { %5804 = vst [vmem:[#allocation47_spill] sm:$0xff] %v4647_v37  ;;  %5805 = vst [vmem:[#allocation48_spill] sm:$0xff] %v4649_v62  ;;  %v4683_v62 = vmul.f32 0.9, %v270_v60  ;;  %v4685_v37 = vmul.f32 0.9, %v271_v15 }
  0x78   : > { %5806 = vst [vmem:[#allocation49_spill] sm:$0xff] %v4652_v57  ;;  %5808 = vst [vmem:[#allocation51_spill] sm:$0xff] %v4658_v28  ;;  %v4690_v29 = vpack.c.bf16 %v4679_v63, %v4677_v6  ;;  %v4744_v36 = vmul.f32 0.1, %v4406_v4  ;;  %v4747_v34 = vmul.f32 0.1, %v4409_v5 }
  0x79   : > { %5809 = vst [vmem:[#allocation52_spill] sm:$0xff] %v4662_v17  ;;  %5810 = vst [vmem:[#allocation53_spill] sm:$0xff] %v4666_v23  ;;  %v4694_v22 = vpack.c.bf16 %v4685_v37, %v4683_v62  ;;  %v4759_v2 = vmul.f32 0.1, %v4430_v13 }
  0x7a   : > { %5811 = vst [vmem:[#allocation54_spill] sm:$0xff] %v4672_v61  ;;  %5812 = vst [vmem:[#allocation55_spill] sm:$0xff] %v4677_v6 }
  0x7b   : > { %3363 = vmatmul.mubr.bf16.gmra.mxu0 %v4614_v41  ;;  %5813 = vst [vmem:[#allocation56_spill] sm:$0xff] %v4679_v63  ;;  %5814 = vst [vmem:[#allocation57_spill] sm:$0xff] %v4683_v62 }
  0x7c   : > { %3395 = vmatmul.mubr.bf16.gmra.mxu1 %v4618_v51  ;;  %3366 = vmatprep.mubr.bf16.mxu0 %v4622_v56  ;;  %5815 = vst [vmem:[#allocation58_spill] sm:$0xff] %v4685_v37  ;;  %5816 = vst [vmem:[#allocation59_spill] sm:$0xff] %v4690_v29  ;;  %v4735_v56 = vmul.f32 0.1, %v4395_v0  ;;  %v4738_v51 = vmul.f32 0.1, %v4398_v1 }
  0x7d   : > { %3398 = vmatprep.mubr.bf16.mxu1 %v4629_v58  ;;  %5817 = vst [vmem:[#allocation60_spill] sm:$0xff] %v4694_v22  ;;  %5825 = vst [vmem:[#allocation68_spill] sm:$0xff] %v4741_v50  ;;  %v4753_v0 = vmul.f32 0.1, %v4417_v8  ;;  %v4756_v1 = vmul.f32 0.1, %v4422_v10 }
  0x7e   : > { %5824 = vst [vmem:[#allocation67_spill] sm:$0xff] %v4738_v51  ;;  %5826 = vst [vmem:[#allocation69_spill] sm:$0xff] %v4744_v36  ;;  %v4769_v10 = vmul.f32 0.1, %v4425_v11 }
  0x83   : > { %3367 = vmatmul.mubr.bf16.gmra.mxu0 %v4658_v28 }
  0x84   : > { %3399 = vmatmul.mubr.bf16.gmra.mxu1 %v4662_v17  ;;  %3370 = vmatprep.mubr.bf16.mxu0 %v4666_v23 }
  0x85   : > { %3402 = vmatprep.mubr.bf16.mxu1 %v4672_v61 }
  0x8b   : > { %3371 = vmatmul.mubr.bf16.gmra.mxu0 %v4690_v29 }
  0x8c   : > { %3403 = vmatmul.mubr.bf16.gmra.mxu1 %v4694_v22  ;;  %3422 = vmatprep.mubr.bf16.mxu0 %v4516_v48 }
  0x8d   : > { %3454 = vmatprep.mubr.bf16.mxu1 %v4520_v49 }
 0x133   : > { %v4700_v15 = vpop.f32.mrf.mxu0 }
 0x134   : > { %5818 = vst [vmem:[#allocation61_spill] sm:$0xff] %v4700_v15  ;;  %v4702_v59 = vpop.f32.mrf.mxu1 }
 0x135   : > { %5819 = vst [vmem:[#allocation62_spill] sm:$0xff] %v4702_v59  ;;  %v4704_v60 = vpop.f32.mrf.mxu0  ;;  %v4764_v59 = vmul.f32 0.1, %v4438_v16 }
 0x136   : > { %5820 = vst [vmem:[#allocation63_spill] sm:$0xff] %v4704_v60  ;;  %v4706_v63 = vpop.f32.mrf.mxu1 }
 0x137   : > { %5821 = vst [vmem:[#allocation64_spill] sm:$0xff] %v4706_v63  ;;  %v4708_v6 = vpop.f32.mrf.mxu0  ;;  %v4750_v63 = vmul.f32 0.1, %v4414_v7 }
 0x138   : > { %v4710_v37 = vpop.f32.mrf.mxu1 }
 0x139   : > { %v4712_v62 = vpop.f32.mrf.mxu0 }
 0x13a   : > { %5822 = vst [vmem:[#allocation65_spill] sm:$0xff] %v4712_v62  ;;  %v4714_v57 = vpop.f32.mrf.mxu1 }
 0x13b   : > { %5823 = vst [vmem:[#allocation66_spill] sm:$0xff] %v4714_v57  ;;  %v4716_v40 = vpop.f32.mrf.mxu0 }
 0x13c   : > { %v4718_v3 = vpop.f32.mrf.mxu1 }
 0x13d   : > { %v4720_v12 = vpop.f32.mrf.mxu0 }
 0x13e   : > { %v4722_v9 = vpop.f32.mrf.mxu1 }
 0x13f   : > { %v4724_v45 = vpop.f32.mrf.mxu0 }
 0x140   : > { %v4726_v44 = vpop.f32.mrf.mxu1 }
 0x141   : > { %v4728_v39 = vpop.f32.mrf.mxu0 }
 0x142   : > { %v4730_v38 = vpop.f32.mrf.mxu1 }
 0x143   : > { %v3368_v49 = vpop.f32.mrf.mxu0 }
 0x144   : > { %v3400_v48 = vpop.f32.mrf.mxu1 }
 0x145   : > { %v514_v22 = vpop.f32.mrf.mxu0 }
 0x146   : > { %v4732_v29 = vpop.f32.mrf.mxu1 }
 0x147   : > { %v3369_v61 = vpop.f32.mrf.mxu0 }
 0x148   : > { %v3401_v23 = vpop.f32.mrf.mxu1  ;;  %v653_v11 = vadd.f32 %v3369_v61, %v4759_v2 }
 0x149   : > { %v517_v17 = vpop.f32.mrf.mxu0 }
 0x14a   : > { %v614_v28 = vpop.f32.mrf.mxu1 }
 0x14b   : > { %v3372_v58 = vpop.f32.mrf.mxu0 }
 0x14c   : > { %v3404_v41 = vpop.f32.mrf.mxu1  ;;  %v656_v4 = vadd.f32 %v3372_v58, %v4735_v56 }
 0x14d   : > { %v530_v35 = vpop.f32.mrf.mxu0  ;;  %v672_v7 = vadd.f32 %v3404_v41, %v4741_v50 }
 0x14e   : > { %v627_v60 = vpop.f32.mrf.mxu1  ;;  %v654_v15 = vadd.f32 %v530_v35, %v4747_v34  ;;  %v4783_v35 = vmul.f32 0.1, %v4452_v21  ;;  %v4795_v21 = vmul.f32 0.1, %v4462_v25  ;;  %v4807_v25 = vmul.f32 0.1, %v4465_v26 }
 0x14f   : > { %v3373_v57 = vpop.f32.mrf.mxu0  ;;  %v670_v16 = vadd.f32 %v627_v60, %v4753_v0  ;;  %v652_v60 = vadd.f32 %v3368_v49, %v4769_v10  ;;  %v4822_v26 = vmul.f32 0.1, %v4475_v30 }
 0x150   : > { %v657_v62 = vadd.f32 %v3373_v57, %v4738_v51  ;;  %v3405_v5 = vpop.f32.mrf.mxu1  ;;  %v4774_v57 = vmul.f32 0.1, %v4433_v14  ;;  %v4787_v14 = vmul.f32 0.1, %v4443_v18  ;;  %v667_v49 = vadd.f32 %v614_v28, %v4783_v35 }
 0x151   : > { %v673_v8 = vadd.f32 %v3405_v5, %v4744_v36  ;;  %v533_v54 = vpop.f32.mrf.mxu0  ;;  %v4779_v5 = vmul.f32 0.1, %v4446_v19  ;;  %v4791_v19 = vmul.f32 0.1, %v4449_v20 }
 0x152   : > { %v681_v13 = vpack.c.bf16 %v657_v62, %v656_v4  ;;  %v655_v52 = vadd.f32 %v533_v54, %v4750_v63  ;;  %v630_v58 = vpop.f32.mrf.mxu1  ;;  %v669_v54 = vadd.f32 %v3401_v23, %v4764_v59  ;;  %v679_v23 = vpack.c.bf16 %v653_v11, %v652_v60  ;;  %v5837_v60 = vld [vmem:[#allocation66_spill] sm:$0xff] }
 0x153   : > { %v689_v51 = vpack.c.bf16 %v673_v8, %v672_v7  ;;  %v671_v41 = vadd.f32 %v630_v58, %v4756_v1  ;;  %v651_v61 = vadd.f32 %v517_v17, %v4779_v5  ;;  %v650_v20 = vadd.f32 %v514_v22, %v4787_v14 }
 0x154   : > { %v680_v36 = vpack.c.bf16 %v655_v52, %v654_v15  ;;  %3406 = vmatprep.subr.bf16.mxu0 %v681_v13  ;;  %v668_v52 = vadd.f32 %v3400_v48, %v4774_v57  ;;  %v4799_v15 = vmul.f32 0.1, %v4468_v27  ;;  %v666_v48 = vadd.f32 %v4732_v29, %v4791_v19 }
 0x155   : > { %v688_v62 = vpack.c.bf16 %v671_v41, %v670_v16  ;;  %3438 = vmatprep.subr.bf16.mxu1 %v689_v51  ;;  %3407 = vmatpush3.bf16.msra.mxu0 %v681_v13  ;;  %v4812_v27 = vmul.f32 0.1, %v4478_v31  ;;  %v649_v17 = vadd.f32 %v4724_v45, %v4795_v21  ;;  %v4827_v31 = vmul.f32 0.1, %v4481_v32 }
 0x156   : > { %3439 = vmatpush3.bf16.msra.mxu1 %v689_v51  ;;  %3408 = vmatprep.subr.bf16.mxu0 %v680_v36  ;;  %v687_v18 = vpack.c.bf16 %v669_v54, %v668_v52  ;;  %v4803_v51 = vmul.f32 0.1, %v4459_v24  ;;  %v4817_v24 = vmul.f32 0.1, %v4484_v33  ;;  %v665_v28 = vadd.f32 %v4726_v44, %v4799_v15 }
 0x157   : > { %3440 = vmatprep.subr.bf16.mxu1 %v688_v62  ;;  %v686_v22 = vpack.c.bf16 %v667_v49, %v666_v48  ;;  %v664_v33 = vadd.f32 %v4718_v3, %v4807_v25  ;;  %v4832_v45 = vmul.f32 0.1, %v4502_v43  ;;  %v647_v30 = vadd.f32 %v4728_v39, %v4812_v27 }
 0x158   : > { %v648_v29 = vadd.f32 %v4716_v40, %v4803_v51  ;;  %v4837_v4 = vmul.f32 0.1, %v4512_v47  ;;  %v663_v7 = vadd.f32 %v4730_v38, %v4817_v24  ;;  %v4842_v32 = vmul.f32 0.1, %v4499_v42 }
 0x159   : > { %3409 = vmatpush3.bf16.msra.mxu0 %v680_v36  ;;  %v678_v36 = vpack.c.bf16 %v651_v61, %v650_v20  ;;  %v685_v40 = vpack.c.bf16 %v665_v28, %v664_v33  ;;  %v646_v3 = vadd.f32 %v4720_v12, %v4822_v26  ;;  %v4847_v43 = vmul.f32 0.1, %v4509_v46  ;;  %v5830_v46 = vld [vmem:[#allocation17_spill] sm:$0xff]  ;;  %v5845_v33 = vld [vmem:[#allocation40_spill] sm:$0xff] }
 0x15a   : > { %3441 = vmatpush3.bf16.msra.mxu1 %v688_v62  ;;  %3410 = vmatprep.subr.bf16.mxu0 %v679_v23  ;;  %v677_v44 = vpack.c.bf16 %v649_v17, %v648_v29  ;;  %v662_v39 = vadd.f32 %v4722_v9, %v4827_v31  ;;  %v4852_v47 = vmul.f32 0.1, %v4530_v53  ;;  %v645_v38 = vadd.f32 %v4708_v6, %v4832_v45  ;;  %v5832_v9 = vld [vmem:[#allocation61_spill] sm:$0xff]  ;;  %v5833_v53 = vld [vmem:[#allocation18_spill] sm:$0xff]  ;;  %v5840_v17 = vld [vmem:[#allocation27_spill] sm:$0xff] }
 0x15b   : > { %3442 = vmatprep.subr.bf16.mxu1 %v687_v18  ;;  %5827 = vst [vmem:[#allocation70_spill] sm:$0xff] %v4847_v43  ;;  %v676_v42 = vpack.c.bf16 %v647_v30, %v646_v3  ;;  %v4857_v8 = vmul.f32 0.1, %v4537_v55  ;;  %v661_v12 = vadd.f32 %v4710_v37, %v4837_v4  ;;  %v4862_v58 = vmul.f32 0.1, %v5830_v46  ;;  %v5835_v6 = vld [vmem:[#allocation62_spill] sm:$0xff] }
 0x15c   : > { %5828 = vst [vmem:[#allocation71_spill] sm:$0xff] %v4852_v47  ;;  %v684_v13 = vpack.c.bf16 %v663_v7, %v662_v39  ;;  %v644_v16 = vadd.f32 %v5832_v9, %v4842_v32  ;;  %v4867_v41 = vmul.f32 0.1, %v5833_v53  ;;  %v660_v55 = vadd.f32 %v5835_v6, %v4847_v43  ;;  %v5836_v37 = vld [vmem:[#allocation65_spill] sm:$0xff]  ;;  %v5844_v29 = vld [vmem:[#allocation39_spill] sm:$0xff]  ;;  %v5847_v30 = vld [vmem:[#allocation42_spill] sm:$0xff] }
 0x15d   : > { %3411 = vmatpush3.bf16.msra.mxu0 %v679_v23  ;;  %5829 = vst [vmem:[#allocation72_spill] sm:$0xff] %v4857_v8  ;;  %5831 = vst [vmem:[#allocation17_spill] sm:$0xff] %v4862_v58  ;;  %v643_v54 = vadd.f32 %v5836_v37, %v4852_v47  ;;  %v659_v52 = vadd.f32 %v5837_v60, %v4857_v8  ;;  %v5838_v23 = vld [vmem:[#allocation63_spill] sm:$0xff]  ;;  %v5842_v28 = vld [vmem:[#allocation29_spill] sm:$0xff] }
 0x15e   : > { %3443 = vmatpush3.bf16.msra.mxu1 %v687_v18  ;;  %3412 = vmatprep.subr.bf16.mxu0 %v678_v36  ;;  %5834 = vst [vmem:[#allocation61_spill] sm:$0xff] %v4867_v41  ;;  %v675_v11 = vpack.c.bf16 %v645_v38, %v644_v16  ;;  %v683_v62 = vpack.c.bf16 %v661_v12, %v660_v55  ;;  %v5839_v18 = vld [vmem:[#allocation64_spill] sm:$0xff]  ;;  %v5850_v3 = vld [vmem:[#allocation53_spill] sm:$0xff]  ;;  %v5851_v39 = vld [vmem:[#allocation54_spill] sm:$0xff] }
 0x15f   : > { %3444 = vmatprep.subr.bf16.mxu1 %v686_v22  ;;  %v642_v61 = vadd.f32 %v5838_v23, %v4862_v58  ;;  %v658_v49 = vadd.f32 %v5839_v18, %v4867_v41  ;;  %v5849_v7 = vld [vmem:[#allocation52_spill] sm:$0xff]  ;;  %v5852_v38 = vld [vmem:[#allocation59_spill] sm:$0xff] }
 0x160   : > { %v5854_v12 = vld [vmem:[#allocation15_spill] sm:$0xff] }
 0x161   : > { %3413 = vmatpush3.bf16.msra.mxu0 %v678_v36  ;;  %v674_v20 = vpack.c.bf16 %v643_v54, %v642_v61  ;;  %v682_v48 = vpack.c.bf16 %v659_v52, %v658_v49  ;;  %v5841_v36 = vld [vmem:[#allocation28_spill] sm:$0xff] }
 0x162   : > { %3445 = vmatpush3.bf16.msra.mxu1 %v686_v22  ;;  %3414 = vmatprep.subr.bf16.mxu0 %v677_v44  ;;  %v5843_v22 = vld [vmem:[#allocation30_spill] sm:$0xff] }
 0x163   : > { %3446 = vmatprep.subr.bf16.mxu1 %v685_v40 }
 0x165   : > { %3415 = vmatpush3.bf16.msra.mxu0 %v677_v44  ;;  %v5846_v44 = vld [vmem:[#allocation41_spill] sm:$0xff] }
 0x166   : > { %3447 = vmatpush3.bf16.msra.mxu1 %v685_v40  ;;  %3416 = vmatprep.subr.bf16.mxu0 %v676_v42  ;;  %v5848_v40 = vld [vmem:[#allocation51_spill] sm:$0xff] }
 0x167   : > { %3448 = vmatprep.subr.bf16.mxu1 %v684_v13 }
 0x169   : > { %3417 = vmatpush3.bf16.msra.mxu0 %v676_v42  ;;  %v5853_v42 = vld [vmem:[#allocation60_spill] sm:$0xff] }
 0x16a   : > { %3449 = vmatpush3.bf16.msra.mxu1 %v684_v13  ;;  %3418 = vmatprep.subr.bf16.mxu0 %v675_v11  ;;  %v5855_v13 = vld [vmem:[#allocation16_spill] sm:$0xff] }
 0x16b   : > { %3450 = vmatprep.subr.bf16.mxu1 %v683_v62 }
 0x16d   : > { %3419 = vmatpush3.bf16.msra.mxu0 %v675_v11 }
 0x16e   : > { %3451 = vmatpush3.bf16.msra.mxu1 %v683_v62  ;;  %3420 = vmatprep.subr.bf16.mxu0 %v674_v20 }
 0x16f   : > { %3452 = vmatprep.subr.bf16.mxu1 %v682_v48 }
 0x171   : > { %3421 = vmatpush3.bf16.msra.mxu0 %v674_v20 }
 0x172   : > { %3453 = vmatpush3.bf16.msra.mxu1 %v682_v48 }
 0x174   : > { %3423 = vmatmul.mubr.bf16.vlgmr.msra.gmra.mxu0 %v5840_v17 }
 0x175   : > { %3455 = vmatmul.mubr.bf16.vlgmr.msra.gmra.mxu1 %v5841_v36  ;;  %3426 = vmatprep.mubr.bf16.mxu0 %v5842_v28 }
 0x176   : > { %3458 = vmatprep.mubr.bf16.mxu1 %v5843_v22  ;;  %v5861_v22 = vld [vmem:[#allocation67_spill] sm:$0xff] }
 0x17c   : > { %3427 = vmatmul.mubr.bf16.gmra.mxu0 %v5844_v29 }
 0x17d   : > { %3459 = vmatmul.mubr.bf16.gmra.mxu1 %v5845_v33  ;;  %3430 = vmatprep.mubr.bf16.mxu0 %v5846_v44 }
 0x17e   : > { %3462 = vmatprep.mubr.bf16.mxu1 %v5847_v30 }
 0x184   : > { %3431 = vmatmul.mubr.bf16.gmra.mxu0 %v5848_v40 }
 0x185   : > { %3463 = vmatmul.mubr.bf16.gmra.mxu1 %v5849_v7  ;;  %3434 = vmatprep.mubr.bf16.mxu0 %v5850_v3 }
 0x186   : > { %3466 = vmatprep.mubr.bf16.mxu1 %v5851_v39 }
 0x18c   : > { %3435 = vmatmul.mubr.bf16.gmra.mxu0 %v5852_v38 }
 0x18d   : > { %3467 = vmatmul.mubr.bf16.gmra.mxu1 %v5853_v42  ;;  %3486 = vmatprep.mubr.bf16.mxu0 %v5854_v12 }
 0x18e   : > { %3518 = vmatprep.mubr.bf16.mxu1 %v5855_v13 }
 0x234   : > { %v4895_v46 = vpop.f32.mrf.mxu0 }
 0x235   : > { %v4897_v9 = vpop.f32.mrf.mxu1 }
 0x236   : > { %5856 = vst [vmem:[#allocation18_spill] sm:$0xff] %v4897_v9  ;;  %v4899_v16 = vpop.f32.mrf.mxu0 }
 0x237   : > { %5857 = vst [vmem:[#allocation62_spill] sm:$0xff] %v4899_v16  ;;  %v4901_v53 = vpop.f32.mrf.mxu1 }
 0x238   : > { %5858 = vst [vmem:[#allocation65_spill] sm:$0xff] %v4901_v53  ;;  %v4903_v6 = vpop.f32.mrf.mxu0  ;;  %v5862_v53 = vld [vmem:[#allocation69_spill] sm:$0xff] }
 0x239   : > { %v4905_v55 = vpop.f32.mrf.mxu1 }
 0x23a   : > { %v4907_v11 = vpop.f32.mrf.mxu0 }
 0x23b   : > { %5859 = vst [vmem:[#allocation66_spill] sm:$0xff] %v4907_v11  ;;  %v4909_v37 = vpop.f32.mrf.mxu1 }
 0x23c   : > { %5860 = vst [vmem:[#allocation63_spill] sm:$0xff] %v4909_v37  ;;  %v3428_v54 = vpop.f32.mrf.mxu0 }
 0x23d   : > { %v4911_v62 = vpop.f32.mrf.mxu1 }
 0x23e   : > { %v4913_v60 = vpop.f32.mrf.mxu0 }
 0x23f   : > { %v4915_v52 = vpop.f32.mrf.mxu1 }
 0x240   : > { %v3429_v23 = vpop.f32.mrf.mxu0 }
 0x241   : > { %v3461_v61 = vpop.f32.mrf.mxu1 }
 0x242   : > { %v743_v18 = vpop.f32.mrf.mxu0 }
 0x243   : > { %v840_v49 = vpop.f32.mrf.mxu1 }
 0x244   : > { %v3432_v20 = vpop.f32.mrf.mxu0 }
 0x245   : > { %v3464_v48 = vpop.f32.mrf.mxu1 }
 0x246   : > { %v756_v13 = vpop.f32.mrf.mxu0 }
 0x247   : > { %v853_v12 = vpop.f32.mrf.mxu1 }
 0x248   : > { %v3433_v42 = vpop.f32.mrf.mxu0 }
 0x249   : > { %v3465_v38 = vpop.f32.mrf.mxu1 }
 0x24a   : > { %v759_v39 = vpop.f32.mrf.mxu0 }
 0x24b   : > { %v856_v3 = vpop.f32.mrf.mxu1 }
 0x24c   : > { %v3436_v7 = vpop.f32.mrf.mxu0 }
 0x24d   : > { %v3468_v40 = vpop.f32.mrf.mxu1  ;;  %v898_v29 = vadd.f32 %v3436_v7, %v4735_v56  ;;  %v895_v7 = vadd.f32 %v3433_v42, %v4759_v2  ;;  %v889_v42 = vadd.f32 %v743_v18, %v4812_v27 }
 0x24e   : > { %v772_v30 = vpop.f32.mrf.mxu0  ;;  %v914_v17 = vadd.f32 %v3468_v40, %v4741_v50  ;;  %v911_v40 = vadd.f32 %v3465_v38, %v4764_v59 }
 0x24f   : > { %v869_v44 = vpop.f32.mrf.mxu1  ;;  %v896_v58 = vadd.f32 %v772_v30, %v4747_v34  ;;  %v907_v30 = vadd.f32 %v3461_v61, %v4799_v15  ;;  %v5864_v61 = vld [vmem:[#allocation18_spill] sm:$0xff] }
 0x250   : > { %v3437_v33 = vpop.f32.mrf.mxu0  ;;  %v912_v47 = vadd.f32 %v869_v44, %v4753_v0  ;;  %v909_v44 = vadd.f32 %v856_v3, %v4783_v35  ;;  %v906_v3 = vadd.f32 %v4911_v62, %v4807_v25 }
 0x251   : > { %v899_v28 = vadd.f32 %v3437_v33, %v5861_v22  ;;  %v3469_v36 = vpop.f32.mrf.mxu1 }
 0x252   : > { %v915_v41 = vadd.f32 %v3469_v36, %v5862_v53  ;;  %v775_v16 = vpop.f32.mrf.mxu0  ;;  %v894_v36 = vadd.f32 %v3432_v20, %v4769_v10  ;;  %v5866_v20 = vld [vmem:[#allocation66_spill] sm:$0xff] }
 0x253   : > { %v923_v37 = vpack.c.bf16 %v899_v28, %v898_v29  ;;  %v897_v8 = vadd.f32 %v775_v16, %v4750_v63  ;;  %v872_v11 = vpop.f32.mrf.mxu1  ;;  %v910_v28 = vadd.f32 %v3464_v48, %v4774_v57  ;;  %v904_v16 = vadd.f32 %v4915_v52, %v4827_v31 }
 0x254   : > { %v931_v9 = vpack.c.bf16 %v915_v41, %v914_v17  ;;  %v913_v43 = vadd.f32 %v872_v11, %v4756_v1  ;;  %v921_v29 = vpack.c.bf16 %v895_v7, %v894_v36  ;;  %v893_v41 = vadd.f32 %v759_v39, %v4779_v5  ;;  %v5867_v7 = vld [vmem:[#allocation72_spill] sm:$0xff]  ;;  %v5870_v36 = vld [vmem:[#allocation62_spill] sm:$0xff] }
 0x255   : > { %v922_v33 = vpack.c.bf16 %v897_v8, %v896_v58  ;;  %3470 = vmatprep.subr.bf16.mxu0 %v923_v37  ;;  %v929_v17 = vpack.c.bf16 %v911_v40, %v910_v28  ;;  %v892_v8 = vadd.f32 %v756_v13, %v4787_v14  ;;  %v890_v39 = vadd.f32 %v3428_v54, %v4803_v51 }
 0x256   : > { %v930_v50 = vpack.c.bf16 %v913_v43, %v912_v47  ;;  %3502 = vmatprep.subr.bf16.mxu1 %v931_v9  ;;  %3471 = vmatpush3.bf16.msra.mxu0 %v923_v37  ;;  %v908_v43 = vadd.f32 %v853_v12, %v4791_v19  ;;  %v891_v47 = vadd.f32 %v3429_v23, %v4795_v21 }
 0x257   : > { %3503 = vmatpush3.bf16.msra.mxu1 %v931_v9  ;;  %3472 = vmatprep.subr.bf16.mxu0 %v922_v33  ;;  %v920_v58 = vpack.c.bf16 %v893_v41, %v892_v8  ;;  %v927_v12 = vpack.c.bf16 %v907_v30, %v906_v3  ;;  %v905_v13 = vadd.f32 %v840_v49, %v4817_v24  ;;  %v5865_v49 = vld [vmem:[#allocation71_spill] sm:$0xff]  ;;  %v5880_v3 = vld [vmem:[#allocation42_spill] sm:$0xff] }
 0x258   : > { %3504 = vmatprep.subr.bf16.mxu1 %v930_v50  ;;  %v928_v38 = vpack.c.bf16 %v909_v44, %v908_v43  ;;  %v888_v9 = vadd.f32 %v4913_v60, %v4822_v26  ;;  %v887_v11 = vadd.f32 %v4903_v6, %v4832_v45  ;;  %v903_v54 = vadd.f32 %v4905_v55, %v4837_v4  ;;  %v5863_v60 = vld [vmem:[#allocation70_spill] sm:$0xff]  ;;  %v5869_v55 = vld [vmem:[#allocation17_spill] sm:$0xff]  ;;  %v5873_v8 = vld [vmem:[#allocation27_spill] sm:$0xff] }
 0x259   : > { %v926_v62 = vpack.c.bf16 %v905_v13, %v904_v16  ;;  %v886_v23 = vadd.f32 %v4895_v46, %v4842_v32  ;;  %v902_v18 = vadd.f32 %v5864_v61, %v5863_v60  ;;  %v885_v48 = vadd.f32 %v5866_v20, %v5865_v49  ;;  %v5871_v46 = vld [vmem:[#allocation61_spill] sm:$0xff]  ;;  %v5874_v43 = vld [vmem:[#allocation28_spill] sm:$0xff]  ;;  %v5877_v30 = vld [vmem:[#allocation39_spill] sm:$0xff] }
 0x25a   : > { %3473 = vmatpush3.bf16.msra.mxu0 %v922_v33  ;;  %v918_v37 = vpack.c.bf16 %v889_v42, %v888_v9  ;;  %v5868_v33 = vld [vmem:[#allocation63_spill] sm:$0xff]  ;;  %v884_v28 = vadd.f32 %v5870_v36, %v5869_v55  ;;  %v5882_v42 = vld [vmem:[#allocation52_spill] sm:$0xff]  ;;  %v5884_v13 = vld [vmem:[#allocation54_spill] sm:$0xff] }
 0x25b   : > { %3505 = vmatpush3.bf16.msra.mxu1 %v930_v50  ;;  %3474 = vmatprep.subr.bf16.mxu0 %v921_v29  ;;  %v919_v50 = vpack.c.bf16 %v891_v47, %v890_v39  ;;  %v917_v52 = vpack.c.bf16 %v887_v11, %v886_v23  ;;  %v925_v6 = vpack.c.bf16 %v903_v54, %v902_v18  ;;  %v5875_v47 = vld [vmem:[#allocation29_spill] sm:$0xff]  ;;  %v5885_v9 = vld [vmem:[#allocation59_spill] sm:$0xff]  ;;  %v5886_v16 = vld [vmem:[#allocation60_spill] sm:$0xff] }
 0x25c   : > { %3506 = vmatprep.subr.bf16.mxu1 %v929_v17  ;;  %v901_v40 = vadd.f32 %v5868_v33, %v5867_v7  ;;  %v5879_v39 = vld [vmem:[#allocation41_spill] sm:$0xff]  ;;  %v5887_v11 = vld [vmem:[#allocation15_spill] sm:$0xff] }
 0x25e   : > { %3475 = vmatpush3.bf16.msra.mxu0 %v921_v29  ;;  %v5872_v29 = vld [vmem:[#allocation65_spill] sm:$0xff] }
 0x25f   : > { %3507 = vmatpush3.bf16.msra.mxu1 %v929_v17  ;;  %3476 = vmatprep.subr.bf16.mxu0 %v920_v58  ;;  %v900_v41 = vadd.f32 %v5872_v29, %v5871_v46  ;;  %v916_v17 = vpack.c.bf16 %v885_v48, %v884_v28 }
 0x260   : > { %3508 = vmatprep.subr.bf16.mxu1 %v928_v38 }
 0x261   : > { %v924_v44 = vpack.c.bf16 %v901_v40, %v900_v41 }
 0x262   : > { %3477 = vmatpush3.bf16.msra.mxu0 %v920_v58  ;;  %v5876_v58 = vld [vmem:[#allocation30_spill] sm:$0xff] }
 0x263   : > { %3509 = vmatpush3.bf16.msra.mxu1 %v928_v38  ;;  %3478 = vmatprep.subr.bf16.mxu0 %v919_v50  ;;  %v5878_v38 = vld [vmem:[#allocation40_spill] sm:$0xff] }
 0x264   : > { %3510 = vmatprep.subr.bf16.mxu1 %v927_v12 }
 0x266   : > { %3479 = vmatpush3.bf16.msra.mxu0 %v919_v50  ;;  %v5881_v50 = vld [vmem:[#allocation51_spill] sm:$0xff] }
 0x267   : > { %3511 = vmatpush3.bf16.msra.mxu1 %v927_v12  ;;  %3480 = vmatprep.subr.bf16.mxu0 %v918_v37  ;;  %v5883_v12 = vld [vmem:[#allocation53_spill] sm:$0xff] }
 0x268   : > { %3512 = vmatprep.subr.bf16.mxu1 %v926_v62 }
 0x26a   : > { %3481 = vmatpush3.bf16.msra.mxu0 %v918_v37  ;;  %v5888_v37 = vld [vmem:[#allocation16_spill] sm:$0xff] }
 0x26b   : > { %3513 = vmatpush3.bf16.msra.mxu1 %v926_v62  ;;  %3482 = vmatprep.subr.bf16.mxu0 %v917_v52 }
 0x26c   : > { %3514 = vmatprep.subr.bf16.mxu1 %v925_v6 }
 0x26e   : > { %3483 = vmatpush3.bf16.msra.mxu0 %v917_v52 }
 0x26f   : > { %3515 = vmatpush3.bf16.msra.mxu1 %v925_v6  ;;  %3484 = vmatprep.subr.bf16.mxu0 %v916_v17 }
 0x270   : > { %3516 = vmatprep.subr.bf16.mxu1 %v924_v44 }
 0x272   : > { %3485 = vmatpush3.bf16.msra.mxu0 %v916_v17 }
 0x273   : > { %3517 = vmatpush3.bf16.msra.mxu1 %v924_v44 }
 0x275   : > { %3487 = vmatmul.mubr.bf16.vlgmr.msra.gmra.mxu0 %v5873_v8  ;;  %v5894_v8 = vld [vmem:[#allocation68_spill] sm:$0xff] }
 0x276   : > { %3519 = vmatmul.mubr.bf16.vlgmr.msra.gmra.mxu1 %v5874_v43  ;;  %3490 = vmatprep.mubr.bf16.mxu0 %v5875_v47 }
 0x277   : > { %3522 = vmatprep.mubr.bf16.mxu1 %v5876_v58 }
 0x27d   : > { %3491 = vmatmul.mubr.bf16.gmra.mxu0 %v5877_v30 }
 0x27e   : > { %3523 = vmatmul.mubr.bf16.gmra.mxu1 %v5878_v38  ;;  %3494 = vmatprep.mubr.bf16.mxu0 %v5879_v39 }
 0x27f   : > { %3526 = vmatprep.mubr.bf16.mxu1 %v5880_v3 }
 0x285   : > { %3495 = vmatmul.mubr.bf16.gmra.mxu0 %v5881_v50 }
 0x286   : > { %3527 = vmatmul.mubr.bf16.gmra.mxu1 %v5882_v42  ;;  %3498 = vmatprep.mubr.bf16.mxu0 %v5883_v12 }
 0x287   : > { %3530 = vmatprep.mubr.bf16.mxu1 %v5884_v13 }
 0x28d   : > { %3499 = vmatmul.mubr.bf16.gmra.mxu0 %v5885_v9 }
 0x28e   : > { %3531 = vmatmul.mubr.bf16.gmra.mxu1 %v5886_v16  ;;  %3550 = vmatprep.mubr.bf16.mxu0 %v5887_v11 }
 0x28f   : > { %3582 = vmatprep.mubr.bf16.mxu1 %v5888_v37 }
 0x335   : > { %v4976_v54 = vpop.f32.mrf.mxu0 }
 0x336   : > { %v4978_v62 = vpop.f32.mrf.mxu1 }
 0x337   : > { %5889 = vst [vmem:[#allocation64_spill] sm:$0xff] %v4978_v62  ;;  %v4980_v23 = vpop.f32.mrf.mxu0 }
 0x338   : > { %5890 = vst [vmem:[#allocation67_spill] sm:$0xff] %v4980_v23  ;;  %v4982_v61 = vpop.f32.mrf.mxu1 }
 0x339   : > { %5891 = vst [vmem:[#allocation69_spill] sm:$0xff] %v4982_v61  ;;  %v4984_v18 = vpop.f32.mrf.mxu0 }
 0x33a   : > { %v4986_v52 = vpop.f32.mrf.mxu1 }
 0x33b   : > { %v4988_v20 = vpop.f32.mrf.mxu0 }
 0x33c   : > { %5892 = vst [vmem:[#allocation18_spill] sm:$0xff] %v4988_v20  ;;  %v4990_v48 = vpop.f32.mrf.mxu1 }
 0x33d   : > { %5893 = vst [vmem:[#allocation66_spill] sm:$0xff] %v4990_v48  ;;  %v3492_v6 = vpop.f32.mrf.mxu0 }
 0x33e   : > { %v4992_v33 = vpop.f32.mrf.mxu1 }
 0x33f   : > { %v4994_v40 = vpop.f32.mrf.mxu0 }
 0x340   : > { %v4996_v36 = vpop.f32.mrf.mxu1 }
 0x341   : > { %v3493_v28 = vpop.f32.mrf.mxu0 }
 0x342   : > { %v3525_v29 = vpop.f32.mrf.mxu1 }
 0x343   : > { %v985_v41 = vpop.f32.mrf.mxu0 }
 0x344   : > { %v1082_v17 = vpop.f32.mrf.mxu1 }
 0x345   : > { %v3496_v44 = vpop.f32.mrf.mxu0 }
 0x346   : > { %v3528_v37 = vpop.f32.mrf.mxu1 }
 0x347   : > { %v998_v11 = vpop.f32.mrf.mxu0 }
 0x348   : > { %v1095_v16 = vpop.f32.mrf.mxu1 }
 0x349   : > { %v3497_v9 = vpop.f32.mrf.mxu0 }
 0x34a   : > { %v3529_v13 = vpop.f32.mrf.mxu1 }
 0x34b   : > { %v1001_v12 = vpop.f32.mrf.mxu0 }
 0x34c   : > { %v1098_v42 = vpop.f32.mrf.mxu1 }
 0x34d   : > { %v3500_v50 = vpop.f32.mrf.mxu0 }
 0x34e   : > { %v3532_v3 = vpop.f32.mrf.mxu1  ;;  %v1140_v58 = vadd.f32 %v3500_v50, %v4735_v56  ;;  %v1137_v50 = vadd.f32 %v3497_v9, %v4759_v2 }
 0x34f   : > { %v1014_v39 = vpop.f32.mrf.mxu0  ;;  %v1156_v61 = vadd.f32 %v3532_v3, %v5894_v8  ;;  %v1153_v3 = vadd.f32 %v3529_v13, %v4764_v59  ;;  %v1149_v13 = vadd.f32 %v3525_v29, %v4799_v15 }
 0x350   : > { %v1111_v38 = vpop.f32.mrf.mxu1  ;;  %v1138_v55 = vadd.f32 %v1014_v39, %v4747_v34  ;;  %v1151_v39 = vadd.f32 %v1098_v42, %v4783_v35  ;;  %v1148_v42 = vadd.f32 %v4992_v33, %v4807_v25  ;;  %v1128_v33 = vadd.f32 %v4976_v54, %v4842_v32  ;;  %v5903_v54 = vld [vmem:[#allocation61_spill] sm:$0xff] }
 0x351   : > { %v3501_v30 = vpop.f32.mrf.mxu0  ;;  %v1154_v49 = vadd.f32 %v1111_v38, %v4753_v0 }
 0x352   : > { %v1141_v47 = vadd.f32 %v3501_v30, %v5861_v22  ;;  %v3533_v43 = vpop.f32.mrf.mxu1 }
 0x353   : > { %v1157_v46 = vadd.f32 %v3533_v43, %v5862_v53  ;;  %v1017_v23 = vpop.f32.mrf.mxu0  ;;  %v1136_v43 = vadd.f32 %v3496_v44, %v4769_v10 }
 0x354   : > { %v1165_v48 = vpack.c.bf16 %v1141_v47, %v1140_v58  ;;  %v1139_v7 = vadd.f32 %v1017_v23, %v4750_v63  ;;  %v1114_v20 = vpop.f32.mrf.mxu1  ;;  %v1152_v47 = vadd.f32 %v3528_v37, %v4774_v57  ;;  %v1147_v37 = vadd.f32 %v1082_v17, %v4817_v24  ;;  %v5898_v17 = vld [vmem:[#allocation18_spill] sm:$0xff] }
 0x355   : > { %v1173_v62 = vpack.c.bf16 %v1157_v46, %v1156_v61  ;;  %v1155_v60 = vadd.f32 %v1114_v20, %v4756_v1  ;;  %v1163_v58 = vpack.c.bf16 %v1137_v50, %v1136_v43  ;;  %v1135_v46 = vadd.f32 %v1001_v12, %v4779_v5  ;;  %v5899_v50 = vld [vmem:[#allocation72_spill] sm:$0xff]  ;;  %v5902_v43 = vld [vmem:[#allocation67_spill] sm:$0xff] }
 0x356   : > { %v1164_v30 = vpack.c.bf16 %v1139_v7, %v1138_v55  ;;  %3534 = vmatprep.subr.bf16.mxu0 %v1165_v48  ;;  %v1171_v38 = vpack.c.bf16 %v1153_v3, %v1152_v47  ;;  %v1134_v7 = vadd.f32 %v998_v11, %v4787_v14  ;;  %v1132_v12 = vadd.f32 %v3492_v6, %v4803_v51 }
 0x357   : > { %v1172_v8 = vpack.c.bf16 %v1155_v60, %v1154_v49  ;;  %3566 = vmatprep.subr.bf16.mxu1 %v1173_v62  ;;  %3535 = vmatpush3.bf16.msra.mxu0 %v1165_v48  ;;  %v1150_v60 = vadd.f32 %v1095_v16, %v4791_v19  ;;  %v1133_v49 = vadd.f32 %v3493_v28, %v4795_v21  ;;  %v5896_v28 = vld [vmem:[#allocation64_spill] sm:$0xff] }
 0x358   : > { %3567 = vmatpush3.bf16.msra.mxu1 %v1173_v62  ;;  %3536 = vmatprep.subr.bf16.mxu0 %v1164_v30  ;;  %v1162_v55 = vpack.c.bf16 %v1135_v46, %v1134_v7  ;;  %v1131_v11 = vadd.f32 %v985_v41, %v4812_v27  ;;  %v1169_v16 = vpack.c.bf16 %v1149_v13, %v1148_v42  ;;  %v5897_v41 = vld [vmem:[#allocation71_spill] sm:$0xff]  ;;  %v5912_v42 = vld [vmem:[#allocation42_spill] sm:$0xff] }
 0x359   : > { %3568 = vmatprep.subr.bf16.mxu1 %v1172_v8  ;;  %v1170_v9 = vpack.c.bf16 %v1151_v39, %v1150_v60  ;;  %v1130_v62 = vadd.f32 %v4994_v40, %v4822_v26  ;;  %v1146_v23 = vadd.f32 %v4996_v36, %v4827_v31  ;;  %v1129_v61 = vadd.f32 %v4984_v18, %v4832_v45  ;;  %v5895_v40 = vld [vmem:[#allocation70_spill] sm:$0xff]  ;;  %v5905_v7 = vld [vmem:[#allocation27_spill] sm:$0xff]  ;;  %v5906_v60 = vld [vmem:[#allocation28_spill] sm:$0xff] }
 0x35a   : > { %v1145_v48 = vadd.f32 %v4986_v52, %v4837_v4  ;;  %v1144_v29 = vadd.f32 %v5896_v28, %v5895_v40  ;;  %v1127_v44 = vadd.f32 %v5898_v17, %v5897_v41  ;;  %v5901_v52 = vld [vmem:[#allocation17_spill] sm:$0xff]  ;;  %v5909_v13 = vld [vmem:[#allocation39_spill] sm:$0xff] }
 0x35b   : > { %3537 = vmatpush3.bf16.msra.mxu0 %v1164_v30  ;;  %v1160_v20 = vpack.c.bf16 %v1131_v11, %v1130_v62  ;;  %v1168_v6 = vpack.c.bf16 %v1147_v37, %v1146_v23  ;;  %v1159_v36 = vpack.c.bf16 %v1129_v61, %v1128_v33  ;;  %v5900_v30 = vld [vmem:[#allocation66_spill] sm:$0xff]  ;;  %v1126_v47 = vadd.f32 %v5902_v43, %v5901_v52  ;;  %v5914_v11 = vld [vmem:[#allocation52_spill] sm:$0xff]  ;;  %v5917_v62 = vld [vmem:[#allocation59_spill] sm:$0xff] }
 0x35c   : > { %3569 = vmatpush3.bf16.msra.mxu1 %v1172_v8  ;;  %3538 = vmatprep.subr.bf16.mxu0 %v1163_v58  ;;  %v1161_v8 = vpack.c.bf16 %v1133_v49, %v1132_v12  ;;  %v1167_v18 = vpack.c.bf16 %v1145_v48, %v1144_v29  ;;  %v1143_v3 = vadd.f32 %v5900_v30, %v5899_v50  ;;  %v5907_v49 = vld [vmem:[#allocation29_spill] sm:$0xff]  ;;  %v5916_v37 = vld [vmem:[#allocation54_spill] sm:$0xff]  ;;  %v5918_v23 = vld [vmem:[#allocation60_spill] sm:$0xff] }
 0x35d   : > { %3570 = vmatprep.subr.bf16.mxu1 %v1171_v38  ;;  %v5911_v12 = vld [vmem:[#allocation41_spill] sm:$0xff]  ;;  %v5919_v61 = vld [vmem:[#allocation15_spill] sm:$0xff] }
 0x35f   : > { %3539 = vmatpush3.bf16.msra.mxu0 %v1163_v58  ;;  %v5904_v58 = vld [vmem:[#allocation69_spill] sm:$0xff] }
 0x360   : > { %3571 = vmatpush3.bf16.msra.mxu1 %v1171_v38  ;;  %3540 = vmatprep.subr.bf16.mxu0 %v1162_v55  ;;  %v1142_v46 = vadd.f32 %v5904_v58, %v5903_v54  ;;  %v1158_v38 = vpack.c.bf16 %v1127_v44, %v1126_v47 }
 0x361   : > { %3572 = vmatprep.subr.bf16.mxu1 %v1170_v9 }
 0x362   : > { %v1166_v39 = vpack.c.bf16 %v1143_v3, %v1142_v46 }
 0x363   : > { %3541 = vmatpush3.bf16.msra.mxu0 %v1162_v55  ;;  %v5908_v55 = vld [vmem:[#allocation30_spill] sm:$0xff] }
 0x364   : > { %3573 = vmatpush3.bf16.msra.mxu1 %v1170_v9  ;;  %3542 = vmatprep.subr.bf16.mxu0 %v1161_v8  ;;  %v5910_v9 = vld [vmem:[#allocation40_spill] sm:$0xff] }
 0x365   : > { %3574 = vmatprep.subr.bf16.mxu1 %v1169_v16 }
 0x367   : > { %3543 = vmatpush3.bf16.msra.mxu0 %v1161_v8  ;;  %v5913_v8 = vld [vmem:[#allocation51_spill] sm:$0xff] }
 0x368   : > { %3575 = vmatpush3.bf16.msra.mxu1 %v1169_v16  ;;  %3544 = vmatprep.subr.bf16.mxu0 %v1160_v20  ;;  %v5915_v16 = vld [vmem:[#allocation53_spill] sm:$0xff] }
 0x369   : > { %3576 = vmatprep.subr.bf16.mxu1 %v1168_v6 }
 0x36b   : > { %3545 = vmatpush3.bf16.msra.mxu0 %v1160_v20  ;;  %v5920_v20 = vld [vmem:[#allocation16_spill] sm:$0xff] }
 0x36c   : > { %3577 = vmatpush3.bf16.msra.mxu1 %v1168_v6  ;;  %3546 = vmatprep.subr.bf16.mxu0 %v1159_v36 }
 0x36d   : > { %3578 = vmatprep.subr.bf16.mxu1 %v1167_v18 }
 0x36f   : > { %3547 = vmatpush3.bf16.msra.mxu0 %v1159_v36 }
 0x370   : > { %3579 = vmatpush3.bf16.msra.mxu1 %v1167_v18  ;;  %3548 = vmatprep.subr.bf16.mxu0 %v1158_v38 }
 0x371   : > { %3580 = vmatprep.subr.bf16.mxu1 %v1166_v39 }
 0x373   : > { %3549 = vmatpush3.bf16.msra.mxu0 %v1158_v38 }
 0x374   : > { %3581 = vmatpush3.bf16.msra.mxu1 %v1166_v39 }
 0x376   : > { %3551 = vmatmul.mubr.bf16.vlgmr.msra.gmra.mxu0 %v5905_v7  ;;  %v5926_v7 = vld [vmem:[#allocation68_spill] sm:$0xff] }
 0x377   : > { %3583 = vmatmul.mubr.bf16.vlgmr.msra.gmra.mxu1 %v5906_v60  ;;  %3554 = vmatprep.mubr.bf16.mxu0 %v5907_v49 }
 0x378   : > { %3586 = vmatprep.mubr.bf16.mxu1 %v5908_v55 }
 0x37e   : > { %3555 = vmatmul.mubr.bf16.gmra.mxu0 %v5909_v13 }
 0x37f   : > { %3587 = vmatmul.mubr.bf16.gmra.mxu1 %v5910_v9  ;;  %3558 = vmatprep.mubr.bf16.mxu0 %v5911_v12 }
 0x380   : > { %3590 = vmatprep.mubr.bf16.mxu1 %v5912_v42 }
 0x386   : > { %3559 = vmatmul.mubr.bf16.gmra.mxu0 %v5913_v8 }
 0x387   : > { %3591 = vmatmul.mubr.bf16.gmra.mxu1 %v5914_v11  ;;  %3562 = vmatprep.mubr.bf16.mxu0 %v5915_v16 }
 0x388   : > { %3594 = vmatprep.mubr.bf16.mxu1 %v5916_v37 }
 0x38e   : > { %3563 = vmatmul.mubr.bf16.gmra.mxu0 %v5917_v62 }
 0x38f   : > { %3595 = vmatmul.mubr.bf16.gmra.mxu1 %v5918_v23  ;;  %3614 = vmatprep.mubr.bf16.mxu0 %v5919_v61 }
 0x390   : > { %3646 = vmatprep.mubr.bf16.mxu1 %v5920_v20 }
 0x436   : > { %v5057_v48 = vpop.f32.mrf.mxu0 }
 0x437   : > { %v5059_v6 = vpop.f32.mrf.mxu1 }
 0x438   : > { %5921 = vst [vmem:[#allocation63_spill] sm:$0xff] %v5059_v6  ;;  %v5061_v33 = vpop.f32.mrf.mxu0 }
 0x439   : > { %5922 = vst [vmem:[#allocation62_spill] sm:$0xff] %v5061_v33  ;;  %v5063_v28 = vpop.f32.mrf.mxu1 }
 0x43a   : > { %5923 = vst [vmem:[#allocation65_spill] sm:$0xff] %v5063_v28  ;;  %v5065_v29 = vpop.f32.mrf.mxu0 }
 0x43b   : > { %v5067_v36 = vpop.f32.mrf.mxu1 }
 0x43c   : > { %v5069_v17 = vpop.f32.mrf.mxu0 }
 0x43d   : > { %5924 = vst [vmem:[#allocation64_spill] sm:$0xff] %v5069_v17  ;;  %v5071_v44 = vpop.f32.mrf.mxu1 }
 0x43e   : > { %5925 = vst [vmem:[#allocation18_spill] sm:$0xff] %v5071_v44  ;;  %v3556_v18 = vpop.f32.mrf.mxu0 }
 0x43f   : > { %v5073_v30 = vpop.f32.mrf.mxu1 }
 0x440   : > { %v5075_v3 = vpop.f32.mrf.mxu0 }
 0x441   : > { %v5077_v43 = vpop.f32.mrf.mxu1 }
 0x442   : > { %v3557_v47 = vpop.f32.mrf.mxu0 }
 0x443   : > { %v3589_v58 = vpop.f32.mrf.mxu1 }
 0x444   : > { %v1227_v46 = vpop.f32.mrf.mxu0 }
 0x445   : > { %v1324_v38 = vpop.f32.mrf.mxu1 }
 0x446   : > { %v3560_v39 = vpop.f32.mrf.mxu0 }
 0x447   : > { %v3592_v20 = vpop.f32.mrf.mxu1 }
 0x448   : > { %v1240_v61 = vpop.f32.mrf.mxu0 }
 0x449   : > { %v1337_v23 = vpop.f32.mrf.mxu1 }
 0x44a   : > { %v3561_v62 = vpop.f32.mrf.mxu0 }
 0x44b   : > { %v3593_v37 = vpop.f32.mrf.mxu1 }
 0x44c   : > { %v1243_v16 = vpop.f32.mrf.mxu0 }
 0x44d   : > { %v1340_v11 = vpop.f32.mrf.mxu1 }
 0x44e   : > { %v3564_v8 = vpop.f32.mrf.mxu0 }
 0x44f   : > { %v3596_v42 = vpop.f32.mrf.mxu1  ;;  %v1382_v55 = vadd.f32 %v3564_v8, %v4735_v56  ;;  %v1379_v8 = vadd.f32 %v3561_v62, %v4759_v2 }
 0x450   : > { %v1256_v12 = vpop.f32.mrf.mxu0  ;;  %v1398_v28 = vadd.f32 %v3596_v42, %v5926_v7  ;;  %v1395_v42 = vadd.f32 %v3593_v37, %v4764_v59  ;;  %v1391_v37 = vadd.f32 %v3589_v58, %v4799_v15 }
 0x451   : > { %v1353_v9 = vpop.f32.mrf.mxu1  ;;  %v1380_v52 = vadd.f32 %v1256_v12, %v4747_v34  ;;  %v1393_v12 = vadd.f32 %v1340_v11, %v4783_v35  ;;  %v1390_v11 = vadd.f32 %v5073_v30, %v4807_v25  ;;  %v1370_v30 = vadd.f32 %v5057_v48, %v4842_v32  ;;  %v5935_v48 = vld [vmem:[#allocation61_spill] sm:$0xff] }
 0x452   : > { %v3565_v13 = vpop.f32.mrf.mxu0  ;;  %v1396_v41 = vadd.f32 %v1353_v9, %v4753_v0 }
 0x453   : > { %v1383_v49 = vadd.f32 %v3565_v13, %v5861_v22  ;;  %v3597_v60 = vpop.f32.mrf.mxu1 }
 0x454   : > { %v1399_v54 = vadd.f32 %v3597_v60, %v5862_v53  ;;  %v1259_v33 = vpop.f32.mrf.mxu0  ;;  %v1378_v60 = vadd.f32 %v3560_v39, %v4769_v10 }
 0x455   : > { %v1407_v44 = vpack.c.bf16 %v1383_v49, %v1382_v55  ;;  %v1381_v50 = vadd.f32 %v1259_v33, %v4750_v63  ;;  %v1356_v17 = vpop.f32.mrf.mxu1  ;;  %v1394_v49 = vadd.f32 %v3592_v20, %v4774_v57  ;;  %v1389_v20 = vadd.f32 %v1324_v38, %v4817_v24  ;;  %v5930_v38 = vld [vmem:[#allocation64_spill] sm:$0xff] }
 0x456   : > { %v1415_v6 = vpack.c.bf16 %v1399_v54, %v1398_v28  ;;  %v1397_v40 = vadd.f32 %v1356_v17, %v4756_v1  ;;  %v1405_v55 = vpack.c.bf16 %v1379_v8, %v1378_v60  ;;  %v1377_v54 = vadd.f32 %v1243_v16, %v4779_v5  ;;  %v5931_v8 = vld [vmem:[#allocation72_spill] sm:$0xff]  ;;  %v5934_v60 = vld [vmem:[#allocation62_spill] sm:$0xff] }
 0x457   : > { %v1406_v13 = vpack.c.bf16 %v1381_v50, %v1380_v52  ;;  %3598 = vmatprep.subr.bf16.mxu0 %v1407_v44  ;;  %v1413_v9 = vpack.c.bf16 %v1395_v42, %v1394_v49  ;;  %v1376_v50 = vadd.f32 %v1240_v61, %v4787_v14  ;;  %v1374_v16 = vadd.f32 %v3556_v18, %v4803_v51 }
 0x458   : > { %v1414_v7 = vpack.c.bf16 %v1397_v40, %v1396_v41  ;;  %3630 = vmatprep.subr.bf16.mxu1 %v1415_v6  ;;  %3599 = vmatpush3.bf16.msra.mxu0 %v1407_v44  ;;  %v1392_v40 = vadd.f32 %v1337_v23, %v4791_v19  ;;  %v1375_v41 = vadd.f32 %v3557_v47, %v4795_v21  ;;  %v5928_v47 = vld [vmem:[#allocation63_spill] sm:$0xff] }
 0x459   : > { %3631 = vmatpush3.bf16.msra.mxu1 %v1415_v6  ;;  %3600 = vmatprep.subr.bf16.mxu0 %v1406_v13  ;;  %v1404_v52 = vpack.c.bf16 %v1377_v54, %v1376_v50  ;;  %v1373_v61 = vadd.f32 %v1227_v46, %v4812_v27  ;;  %v1411_v23 = vpack.c.bf16 %v1391_v37, %v1390_v11  ;;  %v5929_v46 = vld [vmem:[#allocation71_spill] sm:$0xff]  ;;  %v5944_v11 = vld [vmem:[#allocation42_spill] sm:$0xff] }
 0x45a   : > { %3632 = vmatprep.subr.bf16.mxu1 %v1414_v7  ;;  %v1412_v62 = vpack.c.bf16 %v1393_v12, %v1392_v40  ;;  %v1372_v6 = vadd.f32 %v5075_v3, %v4822_v26  ;;  %v1388_v33 = vadd.f32 %v5077_v43, %v4827_v31  ;;  %v1371_v28 = vadd.f32 %v5065_v29, %v4832_v45  ;;  %v5927_v3 = vld [vmem:[#allocation70_spill] sm:$0xff]  ;;  %v5937_v50 = vld [vmem:[#allocation27_spill] sm:$0xff]  ;;  %v5938_v40 = vld [vmem:[#allocation28_spill] sm:$0xff] }
 0x45b   : > { %v1387_v44 = vadd.f32 %v5067_v36, %v4837_v4  ;;  %v1386_v58 = vadd.f32 %v5928_v47, %v5927_v3  ;;  %v1369_v39 = vadd.f32 %v5930_v38, %v5929_v46  ;;  %v5933_v36 = vld [vmem:[#allocation17_spill] sm:$0xff]  ;;  %v5941_v37 = vld [vmem:[#allocation39_spill] sm:$0xff] }
 0x45c   : > { %3601 = vmatpush3.bf16.msra.mxu0 %v1406_v13  ;;  %v1402_v17 = vpack.c.bf16 %v1373_v61, %v1372_v6  ;;  %v1410_v18 = vpack.c.bf16 %v1389_v20, %v1388_v33  ;;  %v1401_v43 = vpack.c.bf16 %v1371_v28, %v1370_v30  ;;  %v5932_v13 = vld [vmem:[#allocation18_spill] sm:$0xff]  ;;  %v1368_v49 = vadd.f32 %v5934_v60, %v5933_v36  ;;  %v5946_v61 = vld [vmem:[#allocation52_spill] sm:$0xff]  ;;  %v5949_v6 = vld [vmem:[#allocation59_spill] sm:$0xff] }
 0x45d   : > { %3633 = vmatpush3.bf16.msra.mxu1 %v1414_v7  ;;  %3602 = vmatprep.subr.bf16.mxu0 %v1405_v55  ;;  %v1403_v7 = vpack.c.bf16 %v1375_v41, %v1374_v16  ;;  %v1409_v29 = vpack.c.bf16 %v1387_v44, %v1386_v58  ;;  %v1385_v42 = vadd.f32 %v5932_v13, %v5931_v8  ;;  %v5939_v41 = vld [vmem:[#allocation29_spill] sm:$0xff]  ;;  %v5948_v20 = vld [vmem:[#allocation54_spill] sm:$0xff]  ;;  %v5950_v33 = vld [vmem:[#allocation60_spill] sm:$0xff] }
 0x45e   : > { %3634 = vmatprep.subr.bf16.mxu1 %v1413_v9  ;;  %v5943_v16 = vld [vmem:[#allocation41_spill] sm:$0xff]  ;;  %v5951_v28 = vld [vmem:[#allocation15_spill] sm:$0xff] }
 0x460   : > { %3603 = vmatpush3.bf16.msra.mxu0 %v1405_v55  ;;  %v5936_v55 = vld [vmem:[#allocation65_spill] sm:$0xff] }
 0x461   : > { %3635 = vmatpush3.bf16.msra.mxu1 %v1413_v9  ;;  %3604 = vmatprep.subr.bf16.mxu0 %v1404_v52  ;;  %v1384_v54 = vadd.f32 %v5936_v55, %v5935_v48  ;;  %v1400_v9 = vpack.c.bf16 %v1369_v39, %v1368_v49 }
 0x462   : > { %3636 = vmatprep.subr.bf16.mxu1 %v1412_v62 }
 0x463   : > { %v1408_v12 = vpack.c.bf16 %v1385_v42, %v1384_v54 }
 0x464   : > { %3605 = vmatpush3.bf16.msra.mxu0 %v1404_v52  ;;  %v5940_v52 = vld [vmem:[#allocation30_spill] sm:$0xff] }
 0x465   : > { %3637 = vmatpush3.bf16.msra.mxu1 %v1412_v62  ;;  %3606 = vmatprep.subr.bf16.mxu0 %v1403_v7  ;;  %v5942_v62 = vld [vmem:[#allocation40_spill] sm:$0xff] }
 0x466   : > { %3638 = vmatprep.subr.bf16.mxu1 %v1411_v23 }
 0x468   : > { %3607 = vmatpush3.bf16.msra.mxu0 %v1403_v7  ;;  %v5945_v7 = vld [vmem:[#allocation51_spill] sm:$0xff] }
 0x469   : > { %3639 = vmatpush3.bf16.msra.mxu1 %v1411_v23  ;;  %3608 = vmatprep.subr.bf16.mxu0 %v1402_v17  ;;  %v5947_v23 = vld [vmem:[#allocation53_spill] sm:$0xff] }
 0x46a   : > { %3640 = vmatprep.subr.bf16.mxu1 %v1410_v18 }
 0x46c   : > { %3609 = vmatpush3.bf16.msra.mxu0 %v1402_v17  ;;  %v5952_v17 = vld [vmem:[#allocation16_spill] sm:$0xff] }
 0x46d   : > { %3641 = vmatpush3.bf16.msra.mxu1 %v1410_v18  ;;  %3610 = vmatprep.subr.bf16.mxu0 %v1401_v43 }
 0x46e   : > { %3642 = vmatprep.subr.bf16.mxu1 %v1409_v29 }
 0x470   : > { %3611 = vmatpush3.bf16.msra.mxu0 %v1401_v43 }
 0x471   : > { %3643 = vmatpush3.bf16.msra.mxu1 %v1409_v29  ;;  %3612 = vmatprep.subr.bf16.mxu0 %v1400_v9 }
 0x472   : > { %3644 = vmatprep.subr.bf16.mxu1 %v1408_v12 }
 0x474   : > { %3613 = vmatpush3.bf16.msra.mxu0 %v1400_v9 }
 0x475   : > { %3645 = vmatpush3.bf16.msra.mxu1 %v1408_v12 }
 0x477   : > { %3615 = vmatmul.mubr.bf16.vlgmr.msra.gmra.mxu0 %v5937_v50  ;;  %v5958_v50 = vld [vmem:[#allocation68_spill] sm:$0xff] }
 0x478   : > { %3647 = vmatmul.mubr.bf16.vlgmr.msra.gmra.mxu1 %v5938_v40  ;;  %3618 = vmatprep.mubr.bf16.mxu0 %v5939_v41 }
 0x479   : > { %3650 = vmatprep.mubr.bf16.mxu1 %v5940_v52 }
 0x47f   : > { %3619 = vmatmul.mubr.bf16.gmra.mxu0 %v5941_v37 }
 0x480   : > { %3651 = vmatmul.mubr.bf16.gmra.mxu1 %v5942_v62  ;;  %3622 = vmatprep.mubr.bf16.mxu0 %v5943_v16 }
 0x481   : > { %3654 = vmatprep.mubr.bf16.mxu1 %v5944_v11 }
 0x487   : > { %3623 = vmatmul.mubr.bf16.gmra.mxu0 %v5945_v7 }
 0x488   : > { %3655 = vmatmul.mubr.bf16.gmra.mxu1 %v5946_v61  ;;  %3626 = vmatprep.mubr.bf16.mxu0 %v5947_v23 }
 0x489   : > { %3658 = vmatprep.mubr.bf16.mxu1 %v5948_v20 }
 0x48f   : > { %3627 = vmatmul.mubr.bf16.gmra.mxu0 %v5949_v6 }
 0x490   : > { %3659 = vmatmul.mubr.bf16.gmra.mxu1 %v5950_v33  ;;  %3678 = vmatprep.mubr.bf16.mxu0 %v5951_v28 }
 0x491   : > { %3710 = vmatprep.mubr.bf16.mxu1 %v5952_v17 }
 0x537   : > { %v5138_v44 = vpop.f32.mrf.mxu0 }
 0x538   : > { %v5140_v18 = vpop.f32.mrf.mxu1 }
 0x539   : > { %5953 = vst [vmem:[#allocation66_spill] sm:$0xff] %v5140_v18  ;;  %v5142_v30 = vpop.f32.mrf.mxu0 }
 0x53a   : > { %5954 = vst [vmem:[#allocation67_spill] sm:$0xff] %v5142_v30  ;;  %v5144_v47 = vpop.f32.mrf.mxu1 }
 0x53b   : > { %5955 = vst [vmem:[#allocation69_spill] sm:$0xff] %v5144_v47  ;;  %v5146_v58 = vpop.f32.mrf.mxu0 }
 0x53c   : > { %v5148_v43 = vpop.f32.mrf.mxu1 }
 0x53d   : > { %v5150_v38 = vpop.f32.mrf.mxu0 }
 0x53e   : > { %5956 = vst [vmem:[#allocation63_spill] sm:$0xff] %v5150_v38  ;;  %v5152_v39 = vpop.f32.mrf.mxu1 }
 0x53f   : > { %5957 = vst [vmem:[#allocation64_spill] sm:$0xff] %v5152_v39  ;;  %v3620_v29 = vpop.f32.mrf.mxu0 }
 0x540   : > { %v5154_v13 = vpop.f32.mrf.mxu1 }
 0x541   : > { %v5156_v42 = vpop.f32.mrf.mxu0 }
 0x542   : > { %v5158_v60 = vpop.f32.mrf.mxu1 }
 0x543   : > { %v3621_v49 = vpop.f32.mrf.mxu0 }
 0x544   : > { %v3653_v55 = vpop.f32.mrf.mxu1 }
 0x545   : > { %v1469_v54 = vpop.f32.mrf.mxu0 }
 0x546   : > { %v1566_v9 = vpop.f32.mrf.mxu1 }
 0x547   : > { %v3624_v12 = vpop.f32.mrf.mxu0 }
 0x548   : > { %v3656_v17 = vpop.f32.mrf.mxu1 }
 0x549   : > { %v1482_v28 = vpop.f32.mrf.mxu0 }
 0x54a   : > { %v1579_v33 = vpop.f32.mrf.mxu1 }
 0x54b   : > { %v3625_v6 = vpop.f32.mrf.mxu0 }
 0x54c   : > { %v3657_v20 = vpop.f32.mrf.mxu1 }
 0x54d   : > { %v1485_v23 = vpop.f32.mrf.mxu0 }
 0x54e   : > { %v1582_v61 = vpop.f32.mrf.mxu1 }
 0x54f   : > { %v3628_v7 = vpop.f32.mrf.mxu0 }
 0x550   : > { %v3660_v11 = vpop.f32.mrf.mxu1  ;;  %v1624_v52 = vadd.f32 %v3628_v7, %v4735_v56  ;;  %v1621_v7 = vadd.f32 %v3625_v6, %v4759_v2 }
 0x551   : > { %v1498_v16 = vpop.f32.mrf.mxu0  ;;  %v1640_v47 = vadd.f32 %v3660_v11, %v5958_v50  ;;  %v1637_v11 = vadd.f32 %v3657_v20, %v4764_v59  ;;  %v1633_v20 = vadd.f32 %v3653_v55, %v4799_v15 }
 0x552   : > { %v1595_v62 = vpop.f32.mrf.mxu1  ;;  %v1622_v36 = vadd.f32 %v1498_v16, %v4747_v34  ;;  %v1635_v16 = vadd.f32 %v1582_v61, %v4783_v35  ;;  %v1632_v61 = vadd.f32 %v5154_v13, %v4807_v25  ;;  %v1612_v13 = vadd.f32 %v5138_v44, %v4842_v32  ;;  %v5967_v44 = vld [vmem:[#allocation61_spill] sm:$0xff] }
 0x553   : > { %v3629_v37 = vpop.f32.mrf.mxu0  ;;  %v1638_v46 = vadd.f32 %v1595_v62, %v4753_v0 }
 0x554   : > { %v1625_v41 = vadd.f32 %v3629_v37, %v5861_v22  ;;  %v3661_v40 = vpop.f32.mrf.mxu1 }
 0x555   : > { %v1641_v48 = vadd.f32 %v3661_v40, %v5862_v53  ;;  %v1501_v30 = vpop.f32.mrf.mxu0  ;;  %v1620_v40 = vadd.f32 %v3624_v12, %v4769_v10 }
 0x556   : > { %v1649_v39 = vpack.c.bf16 %v1625_v41, %v1624_v52  ;;  %v1623_v8 = vadd.f32 %v1501_v30, %v4750_v63  ;;  %v1598_v38 = vpop.f32.mrf.mxu1  ;;  %v1636_v41 = vadd.f32 %v3656_v17, %v4774_v57  ;;  %v1631_v17 = vadd.f32 %v1566_v9, %v4817_v24  ;;  %v5962_v9 = vld [vmem:[#allocation63_spill] sm:$0xff] }
 0x557   : > { %v1657_v18 = vpack.c.bf16 %v1641_v48, %v1640_v47  ;;  %v1639_v3 = vadd.f32 %v1598_v38, %v4756_v1  ;;  %v1647_v52 = vpack.c.bf16 %v1621_v7, %v1620_v40  ;;  %v1619_v48 = vadd.f32 %v1485_v23, %v4779_v5  ;;  %v5963_v7 = vld [vmem:[#allocation72_spill] sm:$0xff]  ;;  %v5966_v40 = vld [vmem:[#allocation67_spill] sm:$0xff] }
 0x558   : > { %v1648_v37 = vpack.c.bf16 %v1623_v8, %v1622_v36  ;;  %3662 = vmatprep.subr.bf16.mxu0 %v1649_v39  ;;  %v1655_v62 = vpack.c.bf16 %v1637_v11, %v1636_v41  ;;  %v1618_v8 = vadd.f32 %v1482_v28, %v4787_v14  ;;  %v1616_v23 = vadd.f32 %v3620_v29, %v4803_v51 }
 0x559   : > { %v1656_v50 = vpack.c.bf16 %v1639_v3, %v1638_v46  ;;  %3694 = vmatprep.subr.bf16.mxu1 %v1657_v18  ;;  %3663 = vmatpush3.bf16.msra.mxu0 %v1649_v39  ;;  %v1634_v3 = vadd.f32 %v1579_v33, %v4791_v19  ;;  %v1617_v46 = vadd.f32 %v3621_v49, %v4795_v21  ;;  %v5960_v49 = vld [vmem:[#allocation66_spill] sm:$0xff] }
 0x55a   : > { %3695 = vmatpush3.bf16.msra.mxu1 %v1657_v18  ;;  %3664 = vmatprep.subr.bf16.mxu0 %v1648_v37  ;;  %v1646_v36 = vpack.c.bf16 %v1619_v48, %v1618_v8  ;;  %v1615_v28 = vadd.f32 %v1469_v54, %v4812_v27  ;;  %v1653_v33 = vpack.c.bf16 %v1633_v20, %v1632_v61  ;;  %v5961_v54 = vld [vmem:[#allocation71_spill] sm:$0xff]  ;;  %v5976_v61 = vld [vmem:[#allocation42_spill] sm:$0xff] }
 0x55b   : > { %3696 = vmatprep.subr.bf16.mxu1 %v1656_v50  ;;  %v1654_v6 = vpack.c.bf16 %v1635_v16, %v1634_v3  ;;  %v1614_v18 = vadd.f32 %v5156_v42, %v4822_v26  ;;  %v1630_v30 = vadd.f32 %v5158_v60, %v4827_v31  ;;  %v1613_v47 = vadd.f32 %v5146_v58, %v4832_v45  ;;  %v5959_v42 = vld [vmem:[#allocation70_spill] sm:$0xff]  ;;  %v5969_v8 = vld [vmem:[#allocation27_spill] sm:$0xff]  ;;  %v5970_v3 = vld [vmem:[#allocation28_spill] sm:$0xff] }
 0x55c   : > { %v1629_v39 = vadd.f32 %v5148_v43, %v4837_v4  ;;  %v1628_v55 = vadd.f32 %v5960_v49, %v5959_v42  ;;  %v1611_v12 = vadd.f32 %v5962_v9, %v5961_v54  ;;  %v5965_v43 = vld [vmem:[#allocation17_spill] sm:$0xff]  ;;  %v5973_v20 = vld [vmem:[#allocation39_spill] sm:$0xff] }
 0x55d   : > { %3665 = vmatpush3.bf16.msra.mxu0 %v1648_v37  ;;  %v1644_v38 = vpack.c.bf16 %v1615_v28, %v1614_v18  ;;  %v1652_v29 = vpack.c.bf16 %v1631_v17, %v1630_v30  ;;  %v1643_v60 = vpack.c.bf16 %v1613_v47, %v1612_v13  ;;  %v5964_v37 = vld [vmem:[#allocation64_spill] sm:$0xff]  ;;  %v1610_v41 = vadd.f32 %v5966_v40, %v5965_v43  ;;  %v5980_v17 = vld [vmem:[#allocation54_spill] sm:$0xff]  ;;  %v5981_v18 = vld [vmem:[#allocation59_spill] sm:$0xff] }
 0x55e   : > { %3697 = vmatpush3.bf16.msra.mxu1 %v1656_v50  ;;  %3666 = vmatprep.subr.bf16.mxu0 %v1647_v52  ;;  %v1645_v50 = vpack.c.bf16 %v1617_v46, %v1616_v23  ;;  %v1651_v58 = vpack.c.bf16 %v1629_v39, %v1628_v55  ;;  %v1627_v11 = vadd.f32 %v5964_v37, %v5963_v7  ;;  %v5971_v46 = vld [vmem:[#allocation29_spill] sm:$0xff]  ;;  %v5978_v28 = vld [vmem:[#allocation52_spill] sm:$0xff]  ;;  %v5983_v47 = vld [vmem:[#allocation15_spill] sm:$0xff] }
 0x55f   : > { %3698 = vmatprep.subr.bf16.mxu1 %v1655_v62  ;;  %v5975_v23 = vld [vmem:[#allocation41_spill] sm:$0xff]  ;;  %v5982_v30 = vld [vmem:[#allocation60_spill] sm:$0xff] }
 0x561   : > { %3667 = vmatpush3.bf16.msra.mxu0 %v1647_v52  ;;  %v5968_v52 = vld [vmem:[#allocation69_spill] sm:$0xff] }
 0x562   : > { %3699 = vmatpush3.bf16.msra.mxu1 %v1655_v62  ;;  %3668 = vmatprep.subr.bf16.mxu0 %v1646_v36  ;;  %v1626_v48 = vadd.f32 %v5968_v52, %v5967_v44  ;;  %v1642_v62 = vpack.c.bf16 %v1611_v12, %v1610_v41 }
 0x563   : > { %3700 = vmatprep.subr.bf16.mxu1 %v1654_v6 }
 0x564   : > { %v1650_v16 = vpack.c.bf16 %v1627_v11, %v1626_v48 }
 0x565   : > { %3669 = vmatpush3.bf16.msra.mxu0 %v1646_v36  ;;  %v5972_v36 = vld [vmem:[#allocation30_spill] sm:$0xff] }
 0x566   : > { %3701 = vmatpush3.bf16.msra.mxu1 %v1654_v6  ;;  %3670 = vmatprep.subr.bf16.mxu0 %v1645_v50  ;;  %v5974_v6 = vld [vmem:[#allocation40_spill] sm:$0xff] }
 0x567   : > { %3702 = vmatprep.subr.bf16.mxu1 %v1653_v33 }
 0x569   : > { %3671 = vmatpush3.bf16.msra.mxu0 %v1645_v50  ;;  %v5977_v50 = vld [vmem:[#allocation51_spill] sm:$0xff] }
 0x56a   : > { %3703 = vmatpush3.bf16.msra.mxu1 %v1653_v33  ;;  %3672 = vmatprep.subr.bf16.mxu0 %v1644_v38  ;;  %v5979_v33 = vld [vmem:[#allocation53_spill] sm:$0xff] }
 0x56b   : > { %3704 = vmatprep.subr.bf16.mxu1 %v1652_v29 }
 0x56d   : > { %3673 = vmatpush3.bf16.msra.mxu0 %v1644_v38  ;;  %v5984_v38 = vld [vmem:[#allocation16_spill] sm:$0xff] }
 0x56e   : > { %3705 = vmatpush3.bf16.msra.mxu1 %v1652_v29  ;;  %3674 = vmatprep.subr.bf16.mxu0 %v1643_v60 }
 0x56f   : > { %3706 = vmatprep.subr.bf16.mxu1 %v1651_v58 }
 0x571   : > { %3675 = vmatpush3.bf16.msra.mxu0 %v1643_v60 }
 0x572   : > { %3707 = vmatpush3.bf16.msra.mxu1 %v1651_v58  ;;  %3676 = vmatprep.subr.bf16.mxu0 %v1642_v62 }
 0x573   : > { %3708 = vmatprep.subr.bf16.mxu1 %v1650_v16 }
 0x575   : > { %3677 = vmatpush3.bf16.msra.mxu0 %v1642_v62 }
 0x576   : > { %3709 = vmatpush3.bf16.msra.mxu1 %v1650_v16 }
 0x578   : > { %3679 = vmatmul.mubr.bf16.vlgmr.msra.gmra.mxu0 %v5969_v8  ;;  %v5990_v8 = vld [vmem:[#allocation68_spill] sm:$0xff] }
 0x579   : > { %3711 = vmatmul.mubr.bf16.vlgmr.msra.gmra.mxu1 %v5970_v3  ;;  %3682 = vmatprep.mubr.bf16.mxu0 %v5971_v46 }
 0x57a   : > { %3714 = vmatprep.mubr.bf16.mxu1 %v5972_v36 }
 0x580   : > { %3683 = vmatmul.mubr.bf16.gmra.mxu0 %v5973_v20 }
 0x581   : > { %3715 = vmatmul.mubr.bf16.gmra.mxu1 %v5974_v6  ;;  %3686 = vmatprep.mubr.bf16.mxu0 %v5975_v23 }
 0x582   : > { %3718 = vmatprep.mubr.bf16.mxu1 %v5976_v61 }
 0x588   : > { %3687 = vmatmul.mubr.bf16.gmra.mxu0 %v5977_v50 }
 0x589   : > { %3719 = vmatmul.mubr.bf16.gmra.mxu1 %v5978_v28  ;;  %3690 = vmatprep.mubr.bf16.mxu0 %v5979_v33 }
 0x58a   : > { %3722 = vmatprep.mubr.bf16.mxu1 %v5980_v17 }
 0x590   : > { %3691 = vmatmul.mubr.bf16.gmra.mxu0 %v5981_v18 }
 0x591   : > { %3723 = vmatmul.mubr.bf16.gmra.mxu1 %v5982_v30  ;;  %3742 = vmatprep.mubr.bf16.mxu0 %v5983_v47 }
 0x592   : > { %3774 = vmatprep.mubr.bf16.mxu1 %v5984_v38 }
 0x638   : > { %v5219_v39 = vpop.f32.mrf.mxu0 }
 0x639   : > { %v5221_v29 = vpop.f32.mrf.mxu1 }
 0x63a   : > { %5985 = vst [vmem:[#allocation18_spill] sm:$0xff] %v5221_v29  ;;  %v5223_v13 = vpop.f32.mrf.mxu0 }
 0x63b   : > { %5986 = vst [vmem:[#allocation62_spill] sm:$0xff] %v5223_v13  ;;  %v5225_v49 = vpop.f32.mrf.mxu1 }
 0x63c   : > { %5987 = vst [vmem:[#allocation65_spill] sm:$0xff] %v5225_v49  ;;  %v5227_v55 = vpop.f32.mrf.mxu0 }
 0x63d   : > { %v5229_v60 = vpop.f32.mrf.mxu1 }
 0x63e   : > { %v5231_v9 = vpop.f32.mrf.mxu0 }
 0x63f   : > { %5988 = vst [vmem:[#allocation66_spill] sm:$0xff] %v5231_v9  ;;  %v5233_v12 = vpop.f32.mrf.mxu1 }
 0x640   : > { %5989 = vst [vmem:[#allocation63_spill] sm:$0xff] %v5233_v12  ;;  %v3684_v58 = vpop.f32.mrf.mxu0 }
 0x641   : > { %v5235_v37 = vpop.f32.mrf.mxu1 }
 0x642   : > { %v5237_v11 = vpop.f32.mrf.mxu0 }
 0x643   : > { %v5239_v40 = vpop.f32.mrf.mxu1 }
 0x644   : > { %v3685_v41 = vpop.f32.mrf.mxu0 }
 0x645   : > { %v3717_v52 = vpop.f32.mrf.mxu1 }
 0x646   : > { %v1711_v48 = vpop.f32.mrf.mxu0 }
 0x647   : > { %v1808_v62 = vpop.f32.mrf.mxu1 }
 0x648   : > { %v3688_v16 = vpop.f32.mrf.mxu0 }
 0x649   : > { %v3720_v38 = vpop.f32.mrf.mxu1 }
 0x64a   : > { %v1724_v47 = vpop.f32.mrf.mxu0 }
 0x64b   : > { %v1821_v30 = vpop.f32.mrf.mxu1 }
 0x64c   : > { %v3689_v18 = vpop.f32.mrf.mxu0 }
 0x64d   : > { %v3721_v17 = vpop.f32.mrf.mxu1 }
 0x64e   : > { %v1727_v33 = vpop.f32.mrf.mxu0 }
 0x64f   : > { %v1824_v28 = vpop.f32.mrf.mxu1 }
 0x650   : > { %v3692_v50 = vpop.f32.mrf.mxu0 }
 0x651   : > { %v3724_v61 = vpop.f32.mrf.mxu1  ;;  %v1866_v36 = vadd.f32 %v3692_v50, %v4735_v56  ;;  %v1863_v50 = vadd.f32 %v3689_v18, %v4759_v2 }
 0x652   : > { %v1740_v23 = vpop.f32.mrf.mxu0  ;;  %v1882_v49 = vadd.f32 %v3724_v61, %v5990_v8  ;;  %v1879_v61 = vadd.f32 %v3721_v17, %v4764_v59  ;;  %v1875_v17 = vadd.f32 %v3717_v52, %v4799_v15 }
 0x653   : > { %v1837_v6 = vpop.f32.mrf.mxu1  ;;  %v1864_v43 = vadd.f32 %v1740_v23, %v4747_v34  ;;  %v1877_v23 = vadd.f32 %v1824_v28, %v4783_v35  ;;  %v1874_v28 = vadd.f32 %v5235_v37, %v4807_v25  ;;  %v1854_v37 = vadd.f32 %v5219_v39, %v4842_v32  ;;  %v5999_v39 = vld [vmem:[#allocation61_spill] sm:$0xff] }
 0x654   : > { %v3693_v20 = vpop.f32.mrf.mxu0  ;;  %v1880_v54 = vadd.f32 %v1837_v6, %v4753_v0 }
 0x655   : > { %v1867_v46 = vadd.f32 %v3693_v20, %v5861_v22  ;;  %v3725_v3 = vpop.f32.mrf.mxu1 }
 0x656   : > { %v1883_v44 = vadd.f32 %v3725_v3, %v5862_v53  ;;  %v1743_v13 = vpop.f32.mrf.mxu0  ;;  %v1862_v3 = vadd.f32 %v3688_v16, %v4769_v10 }
 0x657   : > { %v1891_v12 = vpack.c.bf16 %v1867_v46, %v1866_v36  ;;  %v1865_v7 = vadd.f32 %v1743_v13, %v4750_v63  ;;  %v1840_v9 = vpop.f32.mrf.mxu1  ;;  %v1878_v46 = vadd.f32 %v3720_v38, %v4774_v57  ;;  %v1873_v38 = vadd.f32 %v1808_v62, %v4817_v24  ;;  %v5994_v62 = vld [vmem:[#allocation66_spill] sm:$0xff] }
 0x658   : > { %v1899_v29 = vpack.c.bf16 %v1883_v44, %v1882_v49  ;;  %v1881_v42 = vadd.f32 %v1840_v9, %v4756_v1  ;;  %v1889_v36 = vpack.c.bf16 %v1863_v50, %v1862_v3  ;;  %v1861_v44 = vadd.f32 %v1727_v33, %v4779_v5  ;;  %v5995_v50 = vld [vmem:[#allocation72_spill] sm:$0xff]  ;;  %v5998_v3 = vld [vmem:[#allocation62_spill] sm:$0xff] }
 0x659   : > { %v1890_v20 = vpack.c.bf16 %v1865_v7, %v1864_v43  ;;  %3726 = vmatprep.subr.bf16.mxu0 %v1891_v12  ;;  %v1897_v6 = vpack.c.bf16 %v1879_v61, %v1878_v46  ;;  %v1860_v7 = vadd.f32 %v1724_v47, %v4787_v14  ;;  %v1858_v33 = vadd.f32 %v3684_v58, %v4803_v51 }
 0x65a   : > { %v1898_v8 = vpack.c.bf16 %v1881_v42, %v1880_v54  ;;  %3758 = vmatprep.subr.bf16.mxu1 %v1899_v29  ;;  %3727 = vmatpush3.bf16.msra.mxu0 %v1891_v12  ;;  %v1876_v42 = vadd.f32 %v1821_v30, %v4791_v19  ;;  %v1859_v54 = vadd.f32 %v3685_v41, %v4795_v21  ;;  %v5992_v41 = vld [vmem:[#allocation18_spill] sm:$0xff] }
 0x65b   : > { %3759 = vmatpush3.bf16.msra.mxu1 %v1899_v29  ;;  %3728 = vmatprep.subr.bf16.mxu0 %v1890_v20  ;;  %v1888_v43 = vpack.c.bf16 %v1861_v44, %v1860_v7  ;;  %v1857_v47 = vadd.f32 %v1711_v48, %v4812_v27  ;;  %v1895_v30 = vpack.c.bf16 %v1875_v17, %v1874_v28  ;;  %v5993_v48 = vld [vmem:[#allocation71_spill] sm:$0xff]  ;;  %v6008_v28 = vld [vmem:[#allocation42_spill] sm:$0xff] }
 0x65c   : > { %3760 = vmatprep.subr.bf16.mxu1 %v1898_v8  ;;  %v1896_v18 = vpack.c.bf16 %v1877_v23, %v1876_v42  ;;  %v1856_v29 = vadd.f32 %v5237_v11, %v4822_v26  ;;  %v1872_v13 = vadd.f32 %v5239_v40, %v4827_v31  ;;  %v1855_v49 = vadd.f32 %v5227_v55, %v4832_v45  ;;  %v5991_v11 = vld [vmem:[#allocation70_spill] sm:$0xff]  ;;  %v6001_v7 = vld [vmem:[#allocation27_spill] sm:$0xff]  ;;  %v6002_v42 = vld [vmem:[#allocation28_spill] sm:$0xff] }
 0x65d   : > { %v1871_v12 = vadd.f32 %v5229_v60, %v4837_v4  ;;  %v1870_v52 = vadd.f32 %v5992_v41, %v5991_v11  ;;  %v1853_v16 = vadd.f32 %v5994_v62, %v5993_v48  ;;  %v5997_v60 = vld [vmem:[#allocation17_spill] sm:$0xff]  ;;  %v6005_v17 = vld [vmem:[#allocation39_spill] sm:$0xff] }
 0x65e   : > { %3729 = vmatpush3.bf16.msra.mxu0 %v1890_v20  ;;  %v1886_v9 = vpack.c.bf16 %v1857_v47, %v1856_v29  ;;  %v1894_v58 = vpack.c.bf16 %v1873_v38, %v1872_v13  ;;  %v1885_v40 = vpack.c.bf16 %v1855_v49, %v1854_v37  ;;  %v5996_v20 = vld [vmem:[#allocation63_spill] sm:$0xff]  ;;  %v1852_v46 = vadd.f32 %v5998_v3, %v5997_v60  ;;  %v6010_v47 = vld [vmem:[#allocation52_spill] sm:$0xff]  ;;  %v6012_v38 = vld [vmem:[#allocation54_spill] sm:$0xff] }
 0x65f   : > { %3761 = vmatpush3.bf16.msra.mxu1 %v1898_v8  ;;  %3730 = vmatprep.subr.bf16.mxu0 %v1889_v36  ;;  %v1887_v8 = vpack.c.bf16 %v1859_v54, %v1858_v33  ;;  %v1893_v55 = vpack.c.bf16 %v1871_v12, %v1870_v52  ;;  %v1869_v61 = vadd.f32 %v5996_v20, %v5995_v50  ;;  %v6003_v54 = vld [vmem:[#allocation29_spill] sm:$0xff]  ;;  %v6013_v29 = vld [vmem:[#allocation59_spill] sm:$0xff]  ;;  %v6014_v13 = vld [vmem:[#allocation60_spill] sm:$0xff] }
 0x660   : > { %3762 = vmatprep.subr.bf16.mxu1 %v1897_v6  ;;  %v6007_v33 = vld [vmem:[#allocation41_spill] sm:$0xff]  ;;  %v6015_v49 = vld [vmem:[#allocation15_spill] sm:$0xff] }
 0x662   : > { %3731 = vmatpush3.bf16.msra.mxu0 %v1889_v36  ;;  %v6000_v36 = vld [vmem:[#allocation65_spill] sm:$0xff] }
 0x663   : > { %3763 = vmatpush3.bf16.msra.mxu1 %v1897_v6  ;;  %3732 = vmatprep.subr.bf16.mxu0 %v1888_v43  ;;  %v1868_v44 = vadd.f32 %v6000_v36, %v5999_v39  ;;  %v1884_v6 = vpack.c.bf16 %v1853_v16, %v1852_v46 }
 0x664   : > { %3764 = vmatprep.subr.bf16.mxu1 %v1896_v18 }
 0x665   : > { %v1892_v23 = vpack.c.bf16 %v1869_v61, %v1868_v44 }
 0x666   : > { %3733 = vmatpush3.bf16.msra.mxu0 %v1888_v43  ;;  %v6004_v43 = vld [vmem:[#allocation30_spill] sm:$0xff] }
 0x667   : > { %3765 = vmatpush3.bf16.msra.mxu1 %v1896_v18  ;;  %3734 = vmatprep.subr.bf16.mxu0 %v1887_v8  ;;  %v6006_v18 = vld [vmem:[#allocation40_spill] sm:$0xff] }
 0x668   : > { %3766 = vmatprep.subr.bf16.mxu1 %v1895_v30 }
 0x66a   : > { %3735 = vmatpush3.bf16.msra.mxu0 %v1887_v8  ;;  %v6009_v8 = vld [vmem:[#allocation51_spill] sm:$0xff] }
 0x66b   : > { %3767 = vmatpush3.bf16.msra.mxu1 %v1895_v30  ;;  %3736 = vmatprep.subr.bf16.mxu0 %v1886_v9  ;;  %v6011_v30 = vld [vmem:[#allocation53_spill] sm:$0xff] }
 0x66c   : > { %3768 = vmatprep.subr.bf16.mxu1 %v1894_v58 }
 0x66e   : > { %3737 = vmatpush3.bf16.msra.mxu0 %v1886_v9  ;;  %v6016_v9 = vld [vmem:[#allocation16_spill] sm:$0xff] }
 0x66f   : > { %3769 = vmatpush3.bf16.msra.mxu1 %v1894_v58  ;;  %3738 = vmatprep.subr.bf16.mxu0 %v1885_v40 }
 0x670   : > { %3770 = vmatprep.subr.bf16.mxu1 %v1893_v55 }
 0x672   : > { %3739 = vmatpush3.bf16.msra.mxu0 %v1885_v40 }
 0x673   : > { %3771 = vmatpush3.bf16.msra.mxu1 %v1893_v55  ;;  %3740 = vmatprep.subr.bf16.mxu0 %v1884_v6 }
 0x674   : > { %3772 = vmatprep.subr.bf16.mxu1 %v1892_v23 }
 0x676   : > { %3741 = vmatpush3.bf16.msra.mxu0 %v1884_v6 }
 0x677   : > { %3773 = vmatpush3.bf16.msra.mxu1 %v1892_v23 }
 0x679   : > { %3743 = vmatmul.mubr.bf16.vlgmr.msra.gmra.mxu0 %v6001_v7  ;;  %v6022_v7 = vld [vmem:[#allocation68_spill] sm:$0xff] }
 0x67a   : > { %3775 = vmatmul.mubr.bf16.vlgmr.msra.gmra.mxu1 %v6002_v42  ;;  %3746 = vmatprep.mubr.bf16.mxu0 %v6003_v54 }
 0x67b   : > { %3778 = vmatprep.mubr.bf16.mxu1 %v6004_v43 }
 0x681   : > { %3747 = vmatmul.mubr.bf16.gmra.mxu0 %v6005_v17 }
 0x682   : > { %3779 = vmatmul.mubr.bf16.gmra.mxu1 %v6006_v18  ;;  %3750 = vmatprep.mubr.bf16.mxu0 %v6007_v33 }
 0x683   : > { %3782 = vmatprep.mubr.bf16.mxu1 %v6008_v28 }
 0x689   : > { %3751 = vmatmul.mubr.bf16.gmra.mxu0 %v6009_v8 }
 0x68a   : > { %3783 = vmatmul.mubr.bf16.gmra.mxu1 %v6010_v47  ;;  %3754 = vmatprep.mubr.bf16.mxu0 %v6011_v30 }
 0x68b   : > { %3786 = vmatprep.mubr.bf16.mxu1 %v6012_v38 }
 0x691   : > { %3755 = vmatmul.mubr.bf16.gmra.mxu0 %v6013_v29 }
 0x692   : > { %3787 = vmatmul.mubr.bf16.gmra.mxu1 %v6014_v13  ;;  %3806 = vmatprep.mubr.bf16.mxu0 %v6015_v49 }
 0x693   : > { %3838 = vmatprep.mubr.bf16.mxu1 %v6016_v9 }
 0x739   : > { %v5300_v12 = vpop.f32.mrf.mxu0 }
 0x73a   : > { %v5302_v58 = vpop.f32.mrf.mxu1 }
 0x73b   : > { %6017 = vst [vmem:[#allocation64_spill] sm:$0xff] %v5302_v58  ;;  %v5304_v37 = vpop.f32.mrf.mxu0 }
 0x73c   : > { %6018 = vst [vmem:[#allocation67_spill] sm:$0xff] %v5304_v37  ;;  %v5306_v41 = vpop.f32.mrf.mxu1 }
 0x73d   : > { %6019 = vst [vmem:[#allocation69_spill] sm:$0xff] %v5306_v41  ;;  %v5308_v52 = vpop.f32.mrf.mxu0 }
 0x73e   : > { %v5310_v40 = vpop.f32.mrf.mxu1 }
 0x73f   : > { %v5312_v62 = vpop.f32.mrf.mxu0 }
 0x740   : > { %6020 = vst [vmem:[#allocation18_spill] sm:$0xff] %v5312_v62  ;;  %v5314_v16 = vpop.f32.mrf.mxu1 }
 0x741   : > { %6021 = vst [vmem:[#allocation66_spill] sm:$0xff] %v5314_v16  ;;  %v3748_v55 = vpop.f32.mrf.mxu0 }
 0x742   : > { %v5316_v20 = vpop.f32.mrf.mxu1 }
 0x743   : > { %v5318_v61 = vpop.f32.mrf.mxu0 }
 0x744   : > { %v5320_v3 = vpop.f32.mrf.mxu1 }
 0x745   : > { %v3749_v46 = vpop.f32.mrf.mxu0 }
 0x746   : > { %v3781_v36 = vpop.f32.mrf.mxu1 }
 0x747   : > { %v1953_v44 = vpop.f32.mrf.mxu0 }
 0x748   : > { %v2050_v6 = vpop.f32.mrf.mxu1 }
 0x749   : > { %v3752_v23 = vpop.f32.mrf.mxu0 }
 0x74a   : > { %v3784_v9 = vpop.f32.mrf.mxu1 }
 0x74b   : > { %v1966_v49 = vpop.f32.mrf.mxu0 }
 0x74c   : > { %v2063_v13 = vpop.f32.mrf.mxu1 }
 0x74d   : > { %v3753_v29 = vpop.f32.mrf.mxu0 }
 0x74e   : > { %v3785_v38 = vpop.f32.mrf.mxu1 }
 0x74f   : > { %v1969_v30 = vpop.f32.mrf.mxu0 }
 0x750   : > { %v2066_v47 = vpop.f32.mrf.mxu1 }
 0x751   : > { %v3756_v8 = vpop.f32.mrf.mxu0 }
 0x752   : > { %v3788_v28 = vpop.f32.mrf.mxu1  ;;  %v2108_v43 = vadd.f32 %v3756_v8, %v4735_v56  ;;  %v2105_v8 = vadd.f32 %v3753_v29, %v4759_v2 }
 0x753   : > { %v1982_v33 = vpop.f32.mrf.mxu0  ;;  %v2124_v41 = vadd.f32 %v3788_v28, %v6022_v7  ;;  %v2121_v28 = vadd.f32 %v3785_v38, %v4764_v59  ;;  %v2117_v38 = vadd.f32 %v3781_v36, %v4799_v15 }
 0x754   : > { %v2079_v18 = vpop.f32.mrf.mxu1  ;;  %v2106_v60 = vadd.f32 %v1982_v33, %v4747_v34  ;;  %v2119_v33 = vadd.f32 %v2066_v47, %v4783_v35  ;;  %v2116_v47 = vadd.f32 %v5316_v20, %v4807_v25  ;;  %v2096_v20 = vadd.f32 %v5300_v12, %v4842_v32  ;;  %v6031_v12 = vld [vmem:[#allocation61_spill] sm:$0xff] }
 0x755   : > { %v3757_v17 = vpop.f32.mrf.mxu0  ;;  %v2122_v48 = vadd.f32 %v2079_v18, %v4753_v0 }
 0x756   : > { %v2109_v54 = vadd.f32 %v3757_v17, %v5861_v22  ;;  %v3789_v42 = vpop.f32.mrf.mxu1 }
 0x757   : > { %v2125_v39 = vadd.f32 %v3789_v42, %v5862_v53  ;;  %v1985_v37 = vpop.f32.mrf.mxu0  ;;  %v2104_v42 = vadd.f32 %v3752_v23, %v4769_v10 }
 0x758   : > { %v2133_v16 = vpack.c.bf16 %v2109_v54, %v2108_v43  ;;  %v2107_v50 = vadd.f32 %v1985_v37, %v4750_v63  ;;  %v2082_v62 = vpop.f32.mrf.mxu1  ;;  %v2120_v54 = vadd.f32 %v3784_v9, %v4774_v57  ;;  %v2115_v9 = vadd.f32 %v2050_v6, %v4817_v24  ;;  %v6026_v6 = vld [vmem:[#allocation18_spill] sm:$0xff] }
 0x759   : > { %v2141_v58 = vpack.c.bf16 %v2125_v39, %v2124_v41  ;;  %v2123_v11 = vadd.f32 %v2082_v62, %v4756_v1  ;;  %v2131_v43 = vpack.c.bf16 %v2105_v8, %v2104_v42  ;;  %v2103_v39 = vadd.f32 %v1969_v30, %v4779_v5  ;;  %v6027_v8 = vld [vmem:[#allocation72_spill] sm:$0xff]  ;;  %v6030_v42 = vld [vmem:[#allocation67_spill] sm:$0xff] }
 0x75a   : > { %v2132_v17 = vpack.c.bf16 %v2107_v50, %v2106_v60  ;;  %3790 = vmatprep.subr.bf16.mxu0 %v2133_v16  ;;  %v2139_v18 = vpack.c.bf16 %v2121_v28, %v2120_v54  ;;  %v2102_v50 = vadd.f32 %v1966_v49, %v4787_v14  ;;  %v2100_v30 = vadd.f32 %v3748_v55, %v4803_v51 }
 0x75b   : > { %v2140_v7 = vpack.c.bf16 %v2123_v11, %v2122_v48  ;;  %3822 = vmatprep.subr.bf16.mxu1 %v2141_v58  ;;  %3791 = vmatpush3.bf16.msra.mxu0 %v2133_v16  ;;  %v2118_v11 = vadd.f32 %v2063_v13, %v4791_v19  ;;  %v2101_v48 = vadd.f32 %v3749_v46, %v4795_v21  ;;  %v6024_v46 = vld [vmem:[#allocation64_spill] sm:$0xff] }
 0x75c   : > { %3823 = vmatpush3.bf16.msra.mxu1 %v2141_v58  ;;  %3792 = vmatprep.subr.bf16.mxu0 %v2132_v17  ;;  %v2130_v60 = vpack.c.bf16 %v2103_v39, %v2102_v50  ;;  %v2099_v49 = vadd.f32 %v1953_v44, %v4812_v27  ;;  %v2137_v13 = vpack.c.bf16 %v2117_v38, %v2116_v47  ;;  %v6025_v44 = vld [vmem:[#allocation71_spill] sm:$0xff]  ;;  %v6040_v47 = vld [vmem:[#allocation42_spill] sm:$0xff] }
 0x75d   : > { %3824 = vmatprep.subr.bf16.mxu1 %v2140_v7  ;;  %v2138_v29 = vpack.c.bf16 %v2119_v33, %v2118_v11  ;;  %v2098_v58 = vadd.f32 %v5318_v61, %v4822_v26  ;;  %v2114_v37 = vadd.f32 %v5320_v3, %v4827_v31  ;;  %v2097_v41 = vadd.f32 %v5308_v52, %v4832_v45  ;;  %v6023_v61 = vld [vmem:[#allocation70_spill] sm:$0xff]  ;;  %v6033_v50 = vld [vmem:[#allocation27_spill] sm:$0xff]  ;;  %v6034_v11 = vld [vmem:[#allocation28_spill] sm:$0xff] }
 0x75e   : > { %v2113_v16 = vadd.f32 %v5310_v40, %v4837_v4  ;;  %v2112_v36 = vadd.f32 %v6024_v46, %v6023_v61  ;;  %v2095_v23 = vadd.f32 %v6026_v6, %v6025_v44  ;;  %v6029_v40 = vld [vmem:[#allocation17_spill] sm:$0xff]  ;;  %v6037_v38 = vld [vmem:[#allocation39_spill] sm:$0xff] }
 0x75f   : > { %3793 = vmatpush3.bf16.msra.mxu0 %v2132_v17  ;;  %v2128_v62 = vpack.c.bf16 %v2099_v49, %v2098_v58  ;;  %v2136_v55 = vpack.c.bf16 %v2115_v9, %v2114_v37  ;;  %v2127_v3 = vpack.c.bf16 %v2097_v41, %v2096_v20  ;;  %v6028_v17 = vld [vmem:[#allocation66_spill] sm:$0xff]  ;;  %v2094_v54 = vadd.f32 %v6030_v42, %v6029_v40  ;;  %v6042_v49 = vld [vmem:[#allocation52_spill] sm:$0xff]  ;;  %v6045_v58 = vld [vmem:[#allocation59_spill] sm:$0xff] }
 0x760   : > { %3825 = vmatpush3.bf16.msra.mxu1 %v2140_v7  ;;  %3794 = vmatprep.subr.bf16.mxu0 %v2131_v43  ;;  %v2129_v7 = vpack.c.bf16 %v2101_v48, %v2100_v30  ;;  %v2135_v52 = vpack.c.bf16 %v2113_v16, %v2112_v36  ;;  %v2111_v28 = vadd.f32 %v6028_v17, %v6027_v8  ;;  %v6035_v48 = vld [vmem:[#allocation29_spill] sm:$0xff]  ;;  %v6044_v9 = vld [vmem:[#allocation54_spill] sm:$0xff]  ;;  %v6046_v37 = vld [vmem:[#allocation60_spill] sm:$0xff] }
 0x761   : > { %3826 = vmatprep.subr.bf16.mxu1 %v2139_v18  ;;  %v6039_v30 = vld [vmem:[#allocation41_spill] sm:$0xff]  ;;  %v6047_v41 = vld [vmem:[#allocation15_spill] sm:$0xff] }
 0x763   : > { %3795 = vmatpush3.bf16.msra.mxu0 %v2131_v43  ;;  %v6032_v43 = vld [vmem:[#allocation69_spill] sm:$0xff] }
 0x764   : > { %3827 = vmatpush3.bf16.msra.mxu1 %v2139_v18  ;;  %3796 = vmatprep.subr.bf16.mxu0 %v2130_v60  ;;  %v2110_v39 = vadd.f32 %v6032_v43, %v6031_v12  ;;  %v2126_v18 = vpack.c.bf16 %v2095_v23, %v2094_v54 }
 0x765   : > { %3828 = vmatprep.subr.bf16.mxu1 %v2138_v29 }
 0x766   : > { %v2134_v33 = vpack.c.bf16 %v2111_v28, %v2110_v39 }
 0x767   : > { %3797 = vmatpush3.bf16.msra.mxu0 %v2130_v60  ;;  %v6036_v60 = vld [vmem:[#allocation30_spill] sm:$0xff] }
 0x768   : > { %3829 = vmatpush3.bf16.msra.mxu1 %v2138_v29  ;;  %3798 = vmatprep.subr.bf16.mxu0 %v2129_v7  ;;  %v6038_v29 = vld [vmem:[#allocation40_spill] sm:$0xff] }
 0x769   : > { %3830 = vmatprep.subr.bf16.mxu1 %v2137_v13 }
 0x76b   : > { %3799 = vmatpush3.bf16.msra.mxu0 %v2129_v7  ;;  %v6041_v7 = vld [vmem:[#allocation51_spill] sm:$0xff] }
 0x76c   : > { %3831 = vmatpush3.bf16.msra.mxu1 %v2137_v13  ;;  %3800 = vmatprep.subr.bf16.mxu0 %v2128_v62  ;;  %v6043_v13 = vld [vmem:[#allocation53_spill] sm:$0xff] }
 0x76d   : > { %3832 = vmatprep.subr.bf16.mxu1 %v2136_v55 }
 0x76f   : > { %3801 = vmatpush3.bf16.msra.mxu0 %v2128_v62  ;;  %v6048_v62 = vld [vmem:[#allocation16_spill] sm:$0xff] }
 0x770   : > { %3833 = vmatpush3.bf16.msra.mxu1 %v2136_v55  ;;  %3802 = vmatprep.subr.bf16.mxu0 %v2127_v3 }
 0x771   : > { %3834 = vmatprep.subr.bf16.mxu1 %v2135_v52 }
 0x773   : > { %3803 = vmatpush3.bf16.msra.mxu0 %v2127_v3 }
 0x774   : > { %3835 = vmatpush3.bf16.msra.mxu1 %v2135_v52  ;;  %3804 = vmatprep.subr.bf16.mxu0 %v2126_v18 }
 0x775   : > { %3836 = vmatprep.subr.bf16.mxu1 %v2134_v33 }
 0x777   : > { %3805 = vmatpush3.bf16.msra.mxu0 %v2126_v18 }
 0x778   : > { %3837 = vmatpush3.bf16.msra.mxu1 %v2134_v33 }
 0x77a   : > { %3807 = vmatmul.mubr.bf16.vlgmr.msra.gmra.mxu0 %v6033_v50  ;;  %v6054_v50 = vld [vmem:[#allocation68_spill] sm:$0xff] }
 0x77b   : > { %3839 = vmatmul.mubr.bf16.vlgmr.msra.gmra.mxu1 %v6034_v11  ;;  %3810 = vmatprep.mubr.bf16.mxu0 %v6035_v48 }
 0x77c   : > { %3842 = vmatprep.mubr.bf16.mxu1 %v6036_v60 }
 0x782   : > { %3811 = vmatmul.mubr.bf16.gmra.mxu0 %v6037_v38 }
 0x783   : > { %3843 = vmatmul.mubr.bf16.gmra.mxu1 %v6038_v29  ;;  %3814 = vmatprep.mubr.bf16.mxu0 %v6039_v30 }
 0x784   : > { %3846 = vmatprep.mubr.bf16.mxu1 %v6040_v47 }
 0x78a   : > { %3815 = vmatmul.mubr.bf16.gmra.mxu0 %v6041_v7 }
 0x78b   : > { %3847 = vmatmul.mubr.bf16.gmra.mxu1 %v6042_v49  ;;  %3818 = vmatprep.mubr.bf16.mxu0 %v6043_v13 }
 0x78c   : > { %3850 = vmatprep.mubr.bf16.mxu1 %v6044_v9 }
 0x792   : > { %3819 = vmatmul.mubr.bf16.gmra.mxu0 %v6045_v58 }
 0x793   : > { %3851 = vmatmul.mubr.bf16.gmra.mxu1 %v6046_v37  ;;  %3870 = vmatprep.mubr.bf16.mxu0 %v6047_v41 }
 0x794   : > { %3902 = vmatprep.mubr.bf16.mxu1 %v6048_v62 }
 0x83a   : > { %v5381_v16 = vpop.f32.mrf.mxu0 }
 0x83b   : > { %v5383_v55 = vpop.f32.mrf.mxu1 }
 0x83c   : > { %6049 = vst [vmem:[#allocation63_spill] sm:$0xff] %v5383_v55  ;;  %v5385_v20 = vpop.f32.mrf.mxu0 }
 0x83d   : > { %6050 = vst [vmem:[#allocation62_spill] sm:$0xff] %v5385_v20  ;;  %v5387_v46 = vpop.f32.mrf.mxu1 }
 0x83e   : > { %6051 = vst [vmem:[#allocation65_spill] sm:$0xff] %v5387_v46  ;;  %v5389_v36 = vpop.f32.mrf.mxu0 }
 0x83f   : > { %v5391_v3 = vpop.f32.mrf.mxu1 }
 0x840   : > { %v5393_v6 = vpop.f32.mrf.mxu0 }
 0x841   : > { %6052 = vst [vmem:[#allocation64_spill] sm:$0xff] %v5393_v6  ;;  %v5395_v23 = vpop.f32.mrf.mxu1 }
 0x842   : > { %6053 = vst [vmem:[#allocation18_spill] sm:$0xff] %v5395_v23  ;;  %v3812_v52 = vpop.f32.mrf.mxu0 }
 0x843   : > { %v5397_v17 = vpop.f32.mrf.mxu1 }
 0x844   : > { %v5399_v28 = vpop.f32.mrf.mxu0 }
 0x845   : > { %v5401_v42 = vpop.f32.mrf.mxu1 }
 0x846   : > { %v3813_v54 = vpop.f32.mrf.mxu0 }
 0x847   : > { %v3845_v43 = vpop.f32.mrf.mxu1 }
 0x848   : > { %v2195_v39 = vpop.f32.mrf.mxu0 }
 0x849   : > { %v2292_v18 = vpop.f32.mrf.mxu1 }
 0x84a   : > { %v3816_v33 = vpop.f32.mrf.mxu0 }
 0x84b   : > { %v3848_v41 = vpop.f32.mrf.mxu1 }
 0x84c   : > { %v2208_v62 = vpop.f32.mrf.mxu0 }
 0x84d   : > { %v2305_v37 = vpop.f32.mrf.mxu1 }
 0x84e   : > { %v3817_v58 = vpop.f32.mrf.mxu0 }
 0x84f   : > { %v3849_v9 = vpop.f32.mrf.mxu1 }
 0x850   : > { %v2211_v13 = vpop.f32.mrf.mxu0 }
 0x851   : > { %v2308_v49 = vpop.f32.mrf.mxu1 }
 0x852   : > { %v3820_v7 = vpop.f32.mrf.mxu0 }
 0x853   : > { %v3852_v47 = vpop.f32.mrf.mxu1  ;;  %v2350_v60 = vadd.f32 %v3820_v7, %v4735_v56  ;;  %v2347_v7 = vadd.f32 %v3817_v58, %v4759_v2 }
 0x854   : > { %v2224_v30 = vpop.f32.mrf.mxu0  ;;  %v2366_v46 = vadd.f32 %v3852_v47, %v6054_v50  ;;  %v2363_v47 = vadd.f32 %v3849_v9, %v4764_v59  ;;  %v2359_v9 = vadd.f32 %v3845_v43, %v4799_v15  ;;  %v2338_v43 = vadd.f32 %v5381_v16, %v4842_v32  ;;  %v6063_v16 = vld [vmem:[#allocation61_spill] sm:$0xff] }
 0x855   : > { %v2321_v29 = vpop.f32.mrf.mxu1  ;;  %v2348_v40 = vadd.f32 %v2224_v30, %v4747_v34  ;;  %v2361_v30 = vadd.f32 %v2308_v49, %v4783_v35  ;;  %v2358_v49 = vadd.f32 %v5397_v17, %v4807_v25  ;;  %v2355_v17 = vadd.f32 %v5391_v3, %v4837_v4  ;;  %v6061_v3 = vld [vmem:[#allocation17_spill] sm:$0xff] }
 0x856   : > { %v3821_v38 = vpop.f32.mrf.mxu0  ;;  %v2364_v44 = vadd.f32 %v2321_v29, %v4753_v0 }
 0x857   : > { %v2351_v48 = vadd.f32 %v3821_v38, %v5861_v22  ;;  %v3853_v11 = vpop.f32.mrf.mxu1 }
 0x858   : > { %v2367_v12 = vadd.f32 %v3853_v11, %v5862_v53  ;;  %v2227_v20 = vpop.f32.mrf.mxu0  ;;  %v2346_v11 = vadd.f32 %v3816_v33, %v4769_v10  ;;  %v6057_v33 = vld [vmem:[#allocation71_spill] sm:$0xff] }
 0x859   : > { %v2375_v23 = vpack.c.bf16 %v2351_v48, %v2350_v60  ;;  %v2349_v8 = vadd.f32 %v2227_v20, %v4750_v63  ;;  %v2324_v6 = vpop.f32.mrf.mxu1  ;;  %v2362_v48 = vadd.f32 %v3848_v41, %v4774_v57  ;;  %v2357_v20 = vadd.f32 %v2292_v18, %v4817_v24  ;;  %v6058_v41 = vld [vmem:[#allocation64_spill] sm:$0xff] }
 0x85a   : > { %v2383_v55 = vpack.c.bf16 %v2367_v12, %v2366_v46  ;;  %v2365_v61 = vadd.f32 %v2324_v6, %v4756_v1  ;;  %v2373_v60 = vpack.c.bf16 %v2347_v7, %v2346_v11  ;;  %v2345_v12 = vadd.f32 %v2211_v13, %v4779_v5  ;;  %v6059_v7 = vld [vmem:[#allocation72_spill] sm:$0xff]  ;;  %v6062_v11 = vld [vmem:[#allocation62_spill] sm:$0xff] }
 0x85b   : > { %v2374_v38 = vpack.c.bf16 %v2349_v8, %v2348_v40  ;;  %3854 = vmatprep.subr.bf16.mxu0 %v2375_v23  ;;  %v2381_v29 = vpack.c.bf16 %v2363_v47, %v2362_v48  ;;  %v2344_v8 = vadd.f32 %v2208_v62, %v4787_v14  ;;  %v2342_v13 = vadd.f32 %v3812_v52, %v4803_v51 }
 0x85c   : > { %v2382_v50 = vpack.c.bf16 %v2365_v61, %v2364_v44  ;;  %3886 = vmatprep.subr.bf16.mxu1 %v2383_v55  ;;  %3855 = vmatpush3.bf16.msra.mxu0 %v2375_v23  ;;  %v2360_v61 = vadd.f32 %v2305_v37, %v4791_v19  ;;  %v2343_v44 = vadd.f32 %v3813_v54, %v4795_v21 }
 0x85d   : > { %3887 = vmatpush3.bf16.msra.mxu1 %v2383_v55  ;;  %3856 = vmatprep.subr.bf16.mxu0 %v2374_v38  ;;  %v2372_v40 = vpack.c.bf16 %v2345_v12, %v2344_v8  ;;  %v2341_v55 = vadd.f32 %v2195_v39, %v4812_v27  ;;  %v2379_v37 = vpack.c.bf16 %v2359_v9, %v2358_v49  ;;  %v6056_v39 = vld [vmem:[#allocation63_spill] sm:$0xff]  ;;  %v6072_v49 = vld [vmem:[#allocation42_spill] sm:$0xff] }
 0x85e   : > { %3888 = vmatprep.subr.bf16.mxu1 %v2382_v50  ;;  %v2380_v58 = vpack.c.bf16 %v2361_v30, %v2360_v61  ;;  %v2340_v46 = vadd.f32 %v5399_v28, %v4822_v26  ;;  %v2356_v6 = vadd.f32 %v5401_v42, %v4827_v31  ;;  %v2339_v23 = vadd.f32 %v5389_v36, %v4832_v45  ;;  %v6055_v28 = vld [vmem:[#allocation70_spill] sm:$0xff]  ;;  %v6065_v8 = vld [vmem:[#allocation27_spill] sm:$0xff]  ;;  %v6066_v61 = vld [vmem:[#allocation28_spill] sm:$0xff] }
 0x85f   : > { %v2354_v18 = vadd.f32 %v6056_v39, %v6055_v28  ;;  %v2337_v62 = vadd.f32 %v6058_v41, %v6057_v33  ;;  %v2336_v48 = vadd.f32 %v6062_v11, %v6061_v3  ;;  %v6069_v9 = vld [vmem:[#allocation39_spill] sm:$0xff] }
 0x860   : > { %3857 = vmatpush3.bf16.msra.mxu0 %v2374_v38  ;;  %v2370_v52 = vpack.c.bf16 %v2341_v55, %v2340_v46  ;;  %v2378_v54 = vpack.c.bf16 %v2357_v20, %v2356_v6  ;;  %v2369_v42 = vpack.c.bf16 %v2339_v23, %v2338_v43  ;;  %v6060_v38 = vld [vmem:[#allocation18_spill] sm:$0xff]  ;;  %v6074_v55 = vld [vmem:[#allocation52_spill] sm:$0xff]  ;;  %v6077_v46 = vld [vmem:[#allocation59_spill] sm:$0xff] }
 0x861   : > { %3889 = vmatpush3.bf16.msra.mxu1 %v2382_v50  ;;  %3858 = vmatprep.subr.bf16.mxu0 %v2373_v60  ;;  %v2371_v50 = vpack.c.bf16 %v2343_v44, %v2342_v13  ;;  %v2377_v36 = vpack.c.bf16 %v2355_v17, %v2354_v18  ;;  %v2353_v47 = vadd.f32 %v6060_v38, %v6059_v7  ;;  %v6067_v44 = vld [vmem:[#allocation29_spill] sm:$0xff]  ;;  %v6076_v20 = vld [vmem:[#allocation54_spill] sm:$0xff]  ;;  %v6078_v6 = vld [vmem:[#allocation60_spill] sm:$0xff] }
 0x862   : > { %3890 = vmatprep.subr.bf16.mxu1 %v2381_v29  ;;  %v6071_v13 = vld [vmem:[#allocation41_spill] sm:$0xff]  ;;  %v6079_v23 = vld [vmem:[#allocation11_spill] sm:$0xff]  ;;  %v6080_v17 = vld [vmem:[#allocation12_spill] sm:$0xff] }
 0x863   : > { %v6081_v43 = vld [vmem:[#allocation13_spill] sm:$0xff]  ;;  %v6082_v18 = vld [vmem:[#allocation14_spill] sm:$0xff] }
 0x864   : > { %3859 = vmatpush3.bf16.msra.mxu0 %v2373_v60  ;;  %v6064_v60 = vld [vmem:[#allocation65_spill] sm:$0xff]  ;;  %v336_v39 = vmul.f32 0.1, %v6081_v43 }
 0x865   : > { %3891 = vmatpush3.bf16.msra.mxu1 %v2381_v29  ;;  %3860 = vmatprep.subr.bf16.mxu0 %v2372_v40  ;;  %v2352_v12 = vadd.f32 %v6064_v60, %v6063_v16  ;;  %v2368_v29 = vpack.c.bf16 %v2337_v62, %v2336_v48 }
 0x866   : > { %3892 = vmatprep.subr.bf16.mxu1 %v2380_v58 }
 0x867   : > { %v2376_v30 = vpack.c.bf16 %v2353_v47, %v2352_v12 }
 0x868   : > { %3861 = vmatpush3.bf16.msra.mxu0 %v2372_v40  ;;  %v6068_v40 = vld [vmem:[#allocation30_spill] sm:$0xff] }
 0x869   : > { %3893 = vmatpush3.bf16.msra.mxu1 %v2380_v58  ;;  %3862 = vmatprep.subr.bf16.mxu0 %v2371_v50  ;;  %v6070_v58 = vld [vmem:[#allocation40_spill] sm:$0xff] }
 0x86a   : > { %3894 = vmatprep.subr.bf16.mxu1 %v2379_v37 }
 0x86c   : > { %3863 = vmatpush3.bf16.msra.mxu0 %v2371_v50  ;;  %v6073_v50 = vld [vmem:[#allocation51_spill] sm:$0xff] }
 0x86d   : > { %3895 = vmatpush3.bf16.msra.mxu1 %v2379_v37  ;;  %3864 = vmatprep.subr.bf16.mxu0 %v2370_v52  ;;  %v6075_v37 = vld [vmem:[#allocation53_spill] sm:$0xff] }
 0x86e   : > { %3896 = vmatprep.subr.bf16.mxu1 %v2378_v54 }
 0x870   : > { %3865 = vmatpush3.bf16.msra.mxu0 %v2370_v52  ;;  %v320_v52 = vmul.f32 0.1, %v6079_v23 }
 0x871   : > { %3897 = vmatpush3.bf16.msra.mxu1 %v2378_v54  ;;  %3866 = vmatprep.subr.bf16.mxu0 %v2369_v42  ;;  %v321_v54 = vmul.f32 0.1, %v6080_v17 }
 0x872   : > { %3898 = vmatprep.subr.bf16.mxu1 %v2377_v36 }
 0x873   : > { %v352_v41 = vpack.c.bf16 %v321_v54, %v320_v52 }
 0x874   : > { %3867 = vmatpush3.bf16.msra.mxu0 %v2369_v42  ;;  %v337_v42 = vmul.f32 0.1, %v6082_v18 }
 0x875   : > { %3899 = vmatpush3.bf16.msra.mxu1 %v2377_v36  ;;  %3868 = vmatprep.subr.bf16.mxu0 %v2368_v29 }
 0x876   : > { %3900 = vmatprep.subr.bf16.mxu1 %v2376_v30  ;;  %v360_v62 = vpack.c.bf16 %v337_v42, %v336_v39 }
 0x878   : > { %3869 = vmatpush3.bf16.msra.mxu0 %v2368_v29 }
 0x879   : > { %3901 = vmatpush3.bf16.msra.mxu1 %v2376_v30 }
 0x87b   : > { %3871 = vmatmul.mubr.bf16.vlgmr.msra.gmra.mxu0 %v6065_v8 }
 0x87c   : > { %3903 = vmatmul.mubr.bf16.vlgmr.msra.gmra.mxu1 %v6066_v61  ;;  %3874 = vmatprep.mubr.bf16.mxu0 %v6067_v44 }
 0x87d   : > { %3906 = vmatprep.mubr.bf16.mxu1 %v6068_v40 }
 0x883   : > { %3875 = vmatmul.mubr.bf16.gmra.mxu0 %v6069_v9 }
 0x884   : > { %3907 = vmatmul.mubr.bf16.gmra.mxu1 %v6070_v58  ;;  %3878 = vmatprep.mubr.bf16.mxu0 %v6071_v13 }
 0x885   : > { %3910 = vmatprep.mubr.bf16.mxu1 %v6072_v49 }
 0x88b   : > { %3879 = vmatmul.mubr.bf16.gmra.mxu0 %v6073_v50 }
 0x88c   : > { %3911 = vmatmul.mubr.bf16.gmra.mxu1 %v6074_v55  ;;  %3882 = vmatprep.mubr.bf16.mxu0 %v6075_v37 }
 0x88d   : > { %3914 = vmatprep.mubr.bf16.mxu1 %v6076_v20 }
 0x893   : > { %3883 = vmatmul.mubr.bf16.gmra.mxu0 %v6077_v46 }
 0x894   : > { %3915 = vmatmul.mubr.bf16.gmra.mxu1 %v6078_v6  ;;  %3934 = vmatprep.mubr.bf16.mxu0 %v352_v41 }
 0x895   : > { %3966 = vmatprep.mubr.bf16.mxu1 %v360_v62  ;;  %v6088_v62 = vld [vmem:[#allocation68_spill] sm:$0xff] }
 0x93b   : > { %v5464_v36 = vpop.f32.mrf.mxu0 }
 0x93c   : > { %v5466_v38 = vpop.f32.mrf.mxu1 }
 0x93d   : > { %6083 = vst [vmem:[#allocation66_spill] sm:$0xff] %v5466_v38  ;;  %v5468_v47 = vpop.f32.mrf.mxu0 }
 0x93e   : > { %6084 = vst [vmem:[#allocation67_spill] sm:$0xff] %v5468_v47  ;;  %v5470_v11 = vpop.f32.mrf.mxu1 }
 0x93f   : > { %6085 = vst [vmem:[#allocation69_spill] sm:$0xff] %v5470_v11  ;;  %v5472_v48 = vpop.f32.mrf.mxu0 }
 0x940   : > { %v5474_v60 = vpop.f32.mrf.mxu1 }
 0x941   : > { %v5476_v12 = vpop.f32.mrf.mxu0 }
 0x942   : > { %6086 = vst [vmem:[#allocation15_spill] sm:$0xff] %v5476_v12  ;;  %v5478_v29 = vpop.f32.mrf.mxu1 }
 0x943   : > { %6087 = vst [vmem:[#allocation16_spill] sm:$0xff] %v5478_v29  ;;  %v3876_v30 = vpop.f32.mrf.mxu0 }
 0x944   : > { %v5480_v8 = vpop.f32.mrf.mxu1 }
 0x945   : > { %v5482_v61 = vpop.f32.mrf.mxu0 }
 0x946   : > { %v5484_v44 = vpop.f32.mrf.mxu1 }
 0x947   : > { %v3877_v40 = vpop.f32.mrf.mxu0 }
 0x948   : > { %v3909_v9 = vpop.f32.mrf.mxu1 }
 0x949   : > { %v2437_v58 = vpop.f32.mrf.mxu0 }
 0x94a   : > { %v2534_v13 = vpop.f32.mrf.mxu1 }
 0x94b   : > { %v3880_v49 = vpop.f32.mrf.mxu0 }
 0x94c   : > { %v3912_v50 = vpop.f32.mrf.mxu1 }
 0x94d   : > { %v2450_v55 = vpop.f32.mrf.mxu0 }
 0x94e   : > { %v2547_v37 = vpop.f32.mrf.mxu1 }
 0x94f   : > { %v3881_v20 = vpop.f32.mrf.mxu0 }
 0x950   : > { %v3913_v46 = vpop.f32.mrf.mxu1 }
 0x951   : > { %v2453_v6 = vpop.f32.mrf.mxu0 }
 0x952   : > { %v2550_v23 = vpop.f32.mrf.mxu1 }
 0x953   : > { %v3884_v52 = vpop.f32.mrf.mxu0 }
 0x954   : > { %v3916_v17 = vpop.f32.mrf.mxu1  ;;  %v2592_v18 = vadd.f32 %v3884_v52, %v4735_v56  ;;  %v2589_v56 = vadd.f32 %v3881_v20, %v4759_v2  ;;  %v2605_v52 = vadd.f32 %v3913_v46, %v4764_v59  ;;  %v2603_v2 = vadd.f32 %v2550_v23, %v4783_v35  ;;  %v6102_v46 = vld [vmem:[#allocation22_spill] sm:$0xff]  ;;  %v6103_v23 = vld [vmem:[#allocation23_spill] sm:$0xff] }
 0x955   : > { %v2466_v54 = vpop.f32.mrf.mxu0  ;;  %v2608_v11 = vadd.f32 %v3916_v17, %v6088_v62  ;;  %v2602_v59 = vadd.f32 %v2547_v37, %v4791_v19  ;;  %v2600_v35 = vadd.f32 %v5480_v8, %v4807_v25  ;;  %v6094_v8 = vld [vmem:[#allocation16_spill] sm:$0xff] }
 0x956   : > { %v2563_v43 = vpop.f32.mrf.mxu1  ;;  %v2590_v3 = vadd.f32 %v2466_v54, %v4747_v34  ;;  %v2588_v34 = vadd.f32 %v3880_v49, %v4769_v10  ;;  %v2585_v10 = vadd.f32 %v3877_v40, %v4795_v21  ;;  %v2582_v21 = vadd.f32 %v5482_v61, %v4822_v26  ;;  %v6089_v26 = vld [vmem:[#allocation70_spill] sm:$0xff]  ;;  %v6100_v49 = vld [vmem:[#allocation20_spill] sm:$0xff] }
 0x957   : > { %v3885_v39 = vpop.f32.mrf.mxu0  ;;  %v2606_v33 = vadd.f32 %v2563_v43, %v4753_v0  ;;  %v324_v54 = vmul.f32 0.1, %v6103_v23  ;;  %v6104_v43 = vld [vmem:[#allocation24_spill] sm:$0xff]  ;;  %v4038_v23 = vld [vmem:[%s4380_s3 + $0x90] sm:$0xff] }
 0x958   : > { %v2593_v42 = vadd.f32 %v3885_v39, %v5861_v22  ;;  %v3917_v41 = vpop.f32.mrf.mxu1  ;;  %v2615_v0 = vpack.c.bf16 %v2589_v56, %v2588_v34  ;;  %v325_v39 = vmul.f32 0.1, %v6104_v43  ;;  %v6107_v34 = vld [vmem:[#allocation31_spill] sm:$0xff] }
 0x959   : > { %v2609_v16 = vadd.f32 %v3917_v41, %v5862_v53  ;;  %v2469_v47 = vpop.f32.mrf.mxu0  ;;  %v2587_v53 = vadd.f32 %v2453_v6, %v4779_v5  ;;  %v2584_v5 = vadd.f32 %v3876_v30, %v4803_v51  ;;  %v2581_v51 = vadd.f32 %v5472_v48, %v4832_v45  ;;  %v6093_v48 = vld [vmem:[#allocation72_spill] sm:$0xff]  ;;  %v6106_v41 = vld [vmem:[#allocation26_spill] sm:$0xff]  ;;  %v4039_v43 = vld [vmem:[%s4380_s3] sm:$0xff] }
 0x95a   : > { %v2617_v29 = vpack.c.bf16 %v2593_v42, %v2592_v18  ;;  %v2591_v7 = vadd.f32 %v2469_v47, %v4750_v63  ;;  %v2566_v12 = vpop.f32.mrf.mxu1  ;;  %v2604_v63 = vadd.f32 %v3912_v50, %v4774_v57  ;;  %v2601_v57 = vadd.f32 %v3909_v9, %v4799_v15  ;;  %v6090_v47 = vld [vmem:[#allocation66_spill] sm:$0xff]  ;;  %v6105_v18 = vld [vmem:[#allocation25_spill] sm:$0xff] }
 0x95b   : > { %v2625_v38 = vpack.c.bf16 %v2609_v16, %v2608_v11  ;;  %v2607_v28 = vadd.f32 %v2566_v12, %v4756_v1  ;;  %v2599_v16 = vadd.f32 %v2534_v13, %v4817_v24  ;;  %v2598_v15 = vadd.f32 %v5484_v44, %v4827_v31  ;;  %v6091_v12 = vld [vmem:[#allocation71_spill] sm:$0xff] }
 0x95c   : > { %v2616_v22 = vpack.c.bf16 %v2591_v7, %v2590_v3  ;;  %3918 = vmatprep.subr.bf16.mxu0 %v2617_v29  ;;  %v2623_v1 = vpack.c.bf16 %v2605_v52, %v2604_v63  ;;  %v2586_v7 = vadd.f32 %v2450_v55, %v4787_v14  ;;  %v2613_v14 = vpack.c.bf16 %v2585_v10, %v2584_v5  ;;  %v6101_v55 = vld [vmem:[#allocation21_spill] sm:$0xff]  ;;  %v6111_v10 = vld [vmem:[#allocation35_spill] sm:$0xff] }
 0x95d   : > { %v2624_v17 = vpack.c.bf16 %v2607_v28, %v2606_v33  ;;  %3950 = vmatprep.subr.bf16.mxu1 %v2625_v38  ;;  %3919 = vmatpush3.bf16.msra.mxu0 %v2617_v29  ;;  %v2622_v33 = vpack.c.bf16 %v2603_v2, %v2602_v59  ;;  %v2583_v3 = vadd.f32 %v2437_v58, %v4812_v27  ;;  %v6092_v29 = vld [vmem:[#allocation15_spill] sm:$0xff]  ;;  %v323_v50 = vmul.f32 0.1, %v6100_v49  ;;  %v6113_v5 = vld [vmem:[#allocation37_spill] sm:$0xff] }
 0x95e   : > { %3951 = vmatpush3.bf16.msra.mxu1 %v2625_v38  ;;  %3920 = vmatprep.subr.bf16.mxu0 %v2616_v22  ;;  %v2614_v28 = vpack.c.bf16 %v2587_v53, %v2586_v7  ;;  %v2621_v19 = vpack.c.bf16 %v2601_v57, %v2600_v35  ;;  %v2597_v27 = vadd.f32 %v5474_v60, %v4837_v4  ;;  %v6095_v4 = vld [vmem:[#allocation17_spill] sm:$0xff]  ;;  %v6096_v60 = vld [vmem:[#allocation67_spill] sm:$0xff]  ;;  %v338_v37 = vmul.f32 0.1, %v6101_v55  ;;  %v6110_v7 = vld [vmem:[#allocation34_spill] sm:$0xff] }
 0x95f   : > { %3952 = vmatprep.subr.bf16.mxu1 %v2624_v17  ;;  %v2612_v25 = vpack.c.bf16 %v2583_v3, %v2582_v21  ;;  %v2620_v38 = vpack.c.bf16 %v2599_v16, %v2598_v15  ;;  %v2580_v24 = vadd.f32 %v5464_v36, %v4842_v32  ;;  %v2596_v11 = vadd.f32 %v6090_v47, %v6089_v26  ;;  %v6097_v32 = vld [vmem:[#allocation61_spill] sm:$0xff]  ;;  %v6099_v58 = vld [vmem:[#allocation19_spill] sm:$0xff]  ;;  %v6112_v57 = vld [vmem:[#allocation36_spill] sm:$0xff] }
 0x960   : > { %v2579_v30 = vadd.f32 %v6092_v29, %v6091_v12  ;;  %v2595_v61 = vadd.f32 %v6094_v8, %v6093_v48  ;;  %v2578_v44 = vadd.f32 %v6096_v60, %v6095_v4  ;;  %v6098_v36 = vld [vmem:[#allocation69_spill] sm:$0xff]  ;;  %v322_v13 = vmul.f32 0.1, %v6099_v58  ;;  %v6118_v47 = vld [vmem:[#allocation46_spill] sm:$0xff]  ;;  %v6120_v29 = vld [vmem:[#allocation48_spill] sm:$0xff] }
 0x961   : > { %3921 = vmatpush3.bf16.msra.mxu0 %v2616_v22  ;;  %v2611_v31 = vpack.c.bf16 %v2581_v51, %v2580_v24  ;;  %v2619_v45 = vpack.c.bf16 %v2597_v27, %v2596_v11  ;;  %v2594_v40 = vadd.f32 %v6098_v36, %v6097_v32  ;;  %v339_v6 = vmul.f32 0.1, %v6102_v46  ;;  %v6115_v51 = vld [vmem:[#allocation43_spill] sm:$0xff]  ;;  %v6116_v27 = vld [vmem:[#allocation44_spill] sm:$0xff]  ;;  %v6117_v24 = vld [vmem:[#allocation45_spill] sm:$0xff] }
 0x962   : > { %3953 = vmatpush3.bf16.msra.mxu1 %v2624_v17  ;;  %3922 = vmatprep.subr.bf16.mxu0 %v2615_v0  ;;  %v2610_v9 = vpack.c.bf16 %v2579_v30, %v2578_v44  ;;  %v340_v42 = vmul.f32 0.1, %v6105_v18  ;;  %v341_v62 = vmul.f32 0.1, %v6106_v41  ;;  %v353_v56 = vpack.c.bf16 %v323_v50, %v322_v13  ;;  %v6122_v8 = vld [vmem:[#allocation50_spill] sm:$0xff]  ;;  %v6123_v36 = vld [vmem:[#allocation55_spill] sm:$0xff] }
 0x963   : > { %3954 = vmatprep.subr.bf16.mxu1 %v2623_v1  ;;  %v2618_v20 = vpack.c.bf16 %v2595_v61, %v2594_v40  ;;  %v361_v22 = vpack.c.bf16 %v339_v6, %v338_v37  ;;  %v354_v52 = vpack.c.bf16 %v325_v39, %v324_v54  ;;  %v326_v63 = vmul.f32 0.1, %v6107_v34  ;;  %v6125_v13 = vld [vmem:[#allocation57_spill] sm:$0xff]  ;;  %v6126_v50 = vld [vmem:[#allocation58_spill] sm:$0xff] }
 0x964   : > { %v362_v17 = vpack.c.bf16 %v341_v62, %v340_v42  ;;  %v343_v59 = vmul.f32 0.1, %v6110_v7  ;;  %v344_v35 = vmul.f32 0.1, %v6113_v5  ;;  %v346_v26 = vmul.f32 0.1, %v6117_v24 }
 0x965   : > { %3923 = vmatpush3.bf16.msra.mxu0 %v2615_v0  ;;  %v6108_v0 = vld [vmem:[#allocation32_spill] sm:$0xff]  ;;  %v347_v11 = vmul.f32 0.1, %v6118_v47  ;;  %v333_v30 = vmul.f32 0.1, %v6120_v29  ;;  %v4037_v46 = vld [vmem:[%s4380_s3 + $0x10] sm:$0xff] }
 0x966   : > { %3955 = vmatpush3.bf16.msra.mxu1 %v2623_v1  ;;  %3924 = vmatprep.subr.bf16.mxu0 %v2614_v28  ;;  %v327_v53 = vmul.f32 0.1, %v6108_v0  ;;  %v6109_v1 = vld [vmem:[#allocation33_spill] sm:$0xff]  ;;  %v349_v61 = vmul.f32 0.1, %v6122_v8  ;;  %v4040_v42 = vld [vmem:[%s4380_s3 + $0x80] sm:$0xff] }
 0x967   : > { %3956 = vmatprep.subr.bf16.mxu1 %v2622_v33  ;;  %v342_v2 = vmul.f32 0.1, %v6109_v1  ;;  %v365_v60 = vpack.c.bf16 %v347_v11, %v346_v26  ;;  %v334_v40 = vmul.f32 0.1, %v6123_v36  ;;  %v350_v49 = vmul.f32 0.1, %v6125_v13 }
 0x968   : > { %v351_v55 = vmul.f32 0.1, %v6126_v50  ;;  %v402_v6 = vmul.f32 0.01, %v4037_v46  ;;  %v418_v54 = vmul.f32 0.01, %v4038_v23 }
 0x969   : > { %3925 = vmatpush3.bf16.msra.mxu0 %v2614_v28  ;;  %v328_v28 = vmul.f32 0.1, %v6111_v10  ;;  %v363_v16 = vpack.c.bf16 %v343_v59, %v342_v2  ;;  %v400_v39 = vmul.f32 0.01, %v4039_v43  ;;  %v416_v41 = vmul.f32 0.01, %v4040_v42 }
 0x96a   : > { %3957 = vmatpush3.bf16.msra.mxu1 %v2622_v33  ;;  %3926 = vmatprep.subr.bf16.mxu0 %v2613_v14  ;;  %v329_v33 = vmul.f32 0.1, %v6112_v57  ;;  %v4043_v2 = vld [vmem:[%s4380_s3 + $0x8] sm:$0xff]  ;;  %v4048_v26 = vld [vmem:[%s4380_s3 + $0xa0] sm:$0xff] }
 0x96b   : > { %3958 = vmatprep.subr.bf16.mxu1 %v2621_v19  ;;  %v401_v7 = vmul.f32 0.01, %v4043_v2  ;;  %v420_v47 = vmul.f32 0.01, %v4048_v26  ;;  %v4056_v42 = vld [vmem:[%s4380_s3 + $0xc0] sm:$0xff]  ;;  %v4059_v2 = vld [vmem:[%s4380_s3 + $0x48] sm:$0xff] }
 0x96c   : > { %v356_v21 = vpack.c.bf16 %v329_v33, %v328_v28  ;;  %v4044_v28 = vld [vmem:[%s4380_s3 + $0x88] sm:$0xff]  ;;  %v4064_v26 = vld [vmem:[%s4380_s3 + $0xe0] sm:$0xff] }
 0x96d   : > { %3927 = vmatpush3.bf16.msra.mxu0 %v2613_v14  ;;  %v6114_v14 = vld [vmem:[#allocation38_spill] sm:$0xff]  ;;  %v417_v57 = vmul.f32 0.01, %v4044_v28  ;;  %v4060_v28 = vld [vmem:[%s4380_s3 + $0xc8] sm:$0xff] }
 0x96e   : > { %3959 = vmatpush3.bf16.msra.mxu1 %v2621_v19  ;;  %3928 = vmatprep.subr.bf16.mxu0 %v2612_v25  ;;  %v345_v3 = vmul.f32 0.1, %v6114_v14  ;;  %v355_v19 = vpack.c.bf16 %v327_v53, %v326_v63  ;;  %v4042_v63 = vld [vmem:[%s4380_s3 + $0x98] sm:$0xff] }
 0x96f   : > { %3960 = vmatprep.subr.bf16.mxu1 %v2620_v38  ;;  %v419_v0 = vmul.f32 0.01, %v4042_v63  ;;  %v4058_v63 = vld [vmem:[%s4380_s3 + $0xd8] sm:$0xff] }
 0x970   : > { %v364_v15 = vpack.c.bf16 %v345_v3, %v344_v35  ;;  %v4045_v35 = vld [vmem:[%s4380_s3 + $0x30] sm:$0xff] }
 0x971   : > { %3929 = vmatpush3.bf16.msra.mxu0 %v2612_v25  ;;  %v330_v25 = vmul.f32 0.1, %v6115_v51  ;;  %v406_v14 = vmul.f32 0.01, %v4045_v35  ;;  %v4061_v35 = vld [vmem:[%s4380_s3 + $0x70] sm:$0xff] }
 0x972   : > { %3961 = vmatpush3.bf16.msra.mxu1 %v2620_v38  ;;  %3930 = vmatprep.subr.bf16.mxu0 %v2611_v31  ;;  %v331_v38 = vmul.f32 0.1, %v6116_v27 }
 0x973   : > { %3962 = vmatprep.subr.bf16.mxu1 %v2619_v45 }
 0x974   : > { %v357_v4 = vpack.c.bf16 %v331_v38, %v330_v25  ;;  %v4047_v25 = vld [vmem:[%s4380_s3 + $0x20] sm:$0xff] }
 0x975   : > { %3931 = vmatpush3.bf16.msra.mxu0 %v2611_v31  ;;  %v6119_v31 = vld [vmem:[#allocation47_spill] sm:$0xff]  ;;  %v404_v27 = vmul.f32 0.01, %v4047_v25 }
 0x976   : > { %3963 = vmatpush3.bf16.msra.mxu1 %v2619_v45  ;;  %3932 = vmatprep.subr.bf16.mxu0 %v2610_v9  ;;  %v332_v12 = vmul.f32 0.1, %v6119_v31  ;;  %v6121_v45 = vld [vmem:[#allocation49_spill] sm:$0xff]  ;;  %v4063_v25 = vld [vmem:[%s4380_s3 + $0x60] sm:$0xff] }
 0x977   : > { %3964 = vmatprep.subr.bf16.mxu1 %v2618_v20  ;;  %v348_v48 = vmul.f32 0.1, %v6121_v45 }
 0x978   : > { %v358_v44 = vpack.c.bf16 %v333_v30, %v332_v12  ;;  %v4049_v12 = vld [vmem:[%s4380_s3 + $0x38] sm:$0xff] }
 0x979   : > { %3933 = vmatpush3.bf16.msra.mxu0 %v2610_v9  ;;  %v366_v32 = vpack.c.bf16 %v349_v61, %v348_v48  ;;  %v6124_v9 = vld [vmem:[#allocation56_spill] sm:$0xff]  ;;  %v407_v29 = vmul.f32 0.01, %v4049_v12  ;;  %v4050_v48 = vld [vmem:[%s4380_s3 + $0xb8] sm:$0xff] }
 0x97a   : > { %3965 = vmatpush3.bf16.msra.mxu1 %v2618_v20  ;;  %v335_v58 = vmul.f32 0.1, %v6124_v9  ;;  %v367_v20 = vpack.c.bf16 %v351_v55, %v350_v49  ;;  %v423_v8 = vmul.f32 0.01, %v4050_v48  ;;  %v4053_v49 = vld [vmem:[%s4380_s3 + $0x50] sm:$0xff]  ;;  %v4065_v12 = vld [vmem:[%s4380_s3 + $0x78] sm:$0xff] }
 0x97b   : > { %v410_v50 = vmul.f32 0.01, %v4053_v49  ;;  %v4066_v48 = vld [vmem:[%s4380_s3 + $0xf8] sm:$0xff] }
 0x97c   : > { %3935 = vmatmul.mubr.bf16.vlgmr.msra.gmra.mxu0 %v353_v56  ;;  %v359_v37 = vpack.c.bf16 %v335_v58, %v334_v40  ;;  %v4052_v40 = vld [vmem:[%s4380_s3 + $0xa8] sm:$0xff] }
 0x97d   : > { %3967 = vmatmul.mubr.bf16.vlgmr.msra.gmra.mxu1 %v361_v22  ;;  %3938 = vmatprep.mubr.bf16.mxu0 %v354_v52  ;;  %v4041_v22 = vld [vmem:[%s4380_s3 + $0x18] sm:$0xff]  ;;  %v421_v9 = vmul.f32 0.01, %v4052_v40  ;;  %v4068_v40 = vld [vmem:[%s4380_s3 + $0xe8] sm:$0xff] }
 0x97e   : > { %3970 = vmatprep.mubr.bf16.mxu1 %v362_v17  ;;  %v403_v52 = vmul.f32 0.01, %v4041_v22  ;;  %v4057_v22 = vld [vmem:[%s4380_s3 + $0x58] sm:$0xff] }
 0x984   : > { %3939 = vmatmul.mubr.bf16.gmra.mxu0 %v355_v19 }
 0x985   : > { %3971 = vmatmul.mubr.bf16.gmra.mxu1 %v363_v16  ;;  %3942 = vmatprep.mubr.bf16.mxu0 %v356_v21  ;;  %v4046_v16 = vld [vmem:[%s4380_s3 + $0xb0] sm:$0xff] }
 0x986   : > { %3974 = vmatprep.mubr.bf16.mxu1 %v364_v15  ;;  %v422_v21 = vmul.f32 0.01, %v4046_v16  ;;  %v4062_v16 = vld [vmem:[%s4380_s3 + $0xf0] sm:$0xff] }
 0x98c   : > { %3943 = vmatmul.mubr.bf16.gmra.mxu0 %v357_v4 }
 0x98d   : > { %3975 = vmatmul.mubr.bf16.gmra.mxu1 %v365_v60  ;;  %3946 = vmatprep.mubr.bf16.mxu0 %v358_v44  ;;  %v4051_v60 = vld [vmem:[%s4380_s3 + $0x28] sm:$0xff] }
 0x98e   : > { %3978 = vmatprep.mubr.bf16.mxu1 %v366_v32  ;;  %v405_v44 = vmul.f32 0.01, %v4051_v60  ;;  %v4067_v60 = vld [vmem:[%s4380_s3 + $0x68] sm:$0xff] }
 0x994   : > { %3947 = vmatmul.mubr.bf16.gmra.mxu0 %v359_v37 }
 0x995   : > { %3979 = vmatmul.mubr.bf16.gmra.mxu1 %v367_v20  ;;  %v4054_v20 = vld [vmem:[%s4380_s3 + $0xd0] sm:$0xff] }
 0x996   : > { %v426_v46 = vmul.f32 0.01, %v4054_v20 }
 0xa3c   : > { %v3936_v18 = vpop.f32.mrf.mxu0 }
 0xa3d   : > { %v2822_v62 = vadd.f32 %v3936_v18, %v402_v6  ;;  %v3968_v56 = vpop.f32.mrf.mxu1 }
 0xa3e   : > { %v2838_v17 = vadd.f32 %v3968_v56, %v418_v54  ;;  %v2660_v34 = vpop.f32.mrf.mxu0  ;;  %v4055_v54 = vld [vmem:[%s4380_s3 + $0x40] sm:$0xff] }
 0xa3f   : > { %2854 = vst [vmem:[%s5564_s20 + $0x10] sm:$0xff] %v2822_v62  ;;  %v2820_v53 = vadd.f32 %v2660_v34, %v400_v39  ;;  %v2757_v1 = vpop.f32.mrf.mxu1  ;;  %v408_v43 = vmul.f32 0.01, %v4055_v54 }
 0xa40   : > { %2870 = vst [vmem:[%s5564_s20 + $0x90] sm:$0xff] %v2838_v17  ;;  %v2836_v59 = vadd.f32 %v2757_v1, %v416_v41  ;;  %v3937_v10 = vpop.f32.mrf.mxu0  ;;  %v424_v41 = vmul.f32 0.01, %v4056_v42 }
 0xa41   : > { %2852 = vst [vmem:[%s5564_s20] sm:$0xff] %v2820_v53  ;;  %v2823_v33 = vadd.f32 %v3937_v10, %v403_v52  ;;  %v3969_v5 = vpop.f32.mrf.mxu1  ;;  %v411_v52 = vmul.f32 0.01, %v4057_v22 }
 0xa42   : > { %2868 = vst [vmem:[%s5564_s20 + $0x80] sm:$0xff] %v2836_v59  ;;  %v2839_v3 = vadd.f32 %v3969_v5, %v419_v0  ;;  %v2663_v19 = vpop.f32.mrf.mxu0  ;;  %v427_v0 = vmul.f32 0.01, %v4058_v63 }
 0xa43   : > { %2855 = vst [vmem:[%s5564_s20 + $0x18] sm:$0xff] %v2823_v33  ;;  %v2821_v15 = vadd.f32 %v2663_v19, %v401_v7  ;;  %v2760_v51 = vpop.f32.mrf.mxu1  ;;  %v409_v7 = vmul.f32 0.01, %v4059_v2 }
 0xa44   : > { %2871 = vst [vmem:[%s5564_s20 + $0x98] sm:$0xff] %v2839_v3  ;;  %v2837_v38 = vadd.f32 %v2760_v51, %v417_v57  ;;  %v3940_v24 = vpop.f32.mrf.mxu0  ;;  %v425_v57 = vmul.f32 0.01, %v4060_v28 }
 0xa45   : > { %2853 = vst [vmem:[%s5564_s20 + $0x8] sm:$0xff] %v2821_v15  ;;  %v2826_v11 = vadd.f32 %v3940_v24, %v406_v14  ;;  %v3972_v31 = vpop.f32.mrf.mxu1  ;;  %v414_v14 = vmul.f32 0.01, %v4061_v35 }
 0xa46   : > { %2869 = vst [vmem:[%s5564_s20 + $0x88] sm:$0xff] %v2837_v38  ;;  %v2842_v30 = vadd.f32 %v3972_v31, %v422_v21  ;;  %v2676_v45 = vpop.f32.mrf.mxu0  ;;  %v430_v21 = vmul.f32 0.01, %v4062_v16 }
 0xa47   : > { %2858 = vst [vmem:[%s5564_s20 + $0x30] sm:$0xff] %v2826_v11  ;;  %v2824_v61 = vadd.f32 %v2676_v45, %v404_v27  ;;  %v2773_v4 = vpop.f32.mrf.mxu1  ;;  %v412_v27 = vmul.f32 0.01, %v4063_v25 }
 0xa48   : > { %2874 = vst [vmem:[%s5564_s20 + $0xb0] sm:$0xff] %v2842_v30  ;;  %v2840_v32 = vadd.f32 %v2773_v4, %v420_v47  ;;  %v3941_v36 = vpop.f32.mrf.mxu0  ;;  %v428_v47 = vmul.f32 0.01, %v4064_v26 }
 0xa49   : > { %2856 = vst [vmem:[%s5564_s20 + $0x20] sm:$0xff] %v2824_v61  ;;  %v2827_v58 = vadd.f32 %v3941_v36, %v407_v29  ;;  %v3973_v13 = vpop.f32.mrf.mxu1  ;;  %v415_v29 = vmul.f32 0.01, %v4065_v12 }
 0xa4a   : > { %2872 = vst [vmem:[%s5564_s20 + $0xa0] sm:$0xff] %v2840_v32  ;;  %v2843_v55 = vadd.f32 %v3973_v13, %v423_v8  ;;  %v2679_v37 = vpop.f32.mrf.mxu0  ;;  %v431_v8 = vmul.f32 0.01, %v4066_v48 }
 0xa4b   : > { %2859 = vst [vmem:[%s5564_s20 + $0x38] sm:$0xff] %v2827_v58  ;;  %v2825_v6 = vadd.f32 %v2679_v37, %v405_v44  ;;  %v2776_v23 = vpop.f32.mrf.mxu1  ;;  %v413_v44 = vmul.f32 0.01, %v4067_v60 }
 0xa4c   : > { %2875 = vst [vmem:[%s5564_s20 + $0xb8] sm:$0xff] %v2843_v55  ;;  %v2841_v39 = vadd.f32 %v2776_v23, %v421_v9  ;;  %v3944_v18 = vpop.f32.mrf.mxu0  ;;  %v429_v9 = vmul.f32 0.01, %v4068_v40 }
 0xa4d   : > { %2857 = vst [vmem:[%s5564_s20 + $0x28] sm:$0xff] %v2825_v6  ;;  %v2830_v62 = vadd.f32 %v3944_v18, %v410_v50  ;;  %v3976_v56 = vpop.f32.mrf.mxu1 }
 0xa4e   : > { %2873 = vst [vmem:[%s5564_s20 + $0xa8] sm:$0xff] %v2841_v39  ;;  %v2846_v17 = vadd.f32 %v3976_v56, %v426_v46  ;;  %v2692_v34 = vpop.f32.mrf.mxu0 }
 0xa4f   : > { %2862 = vst [vmem:[%s5564_s20 + $0x50] sm:$0xff] %v2830_v62  ;;  %v2828_v53 = vadd.f32 %v2692_v34, %v408_v43  ;;  %v2789_v1 = vpop.f32.mrf.mxu1 }
 0xa50   : > { %2878 = vst [vmem:[%s5564_s20 + $0xd0] sm:$0xff] %v2846_v17  ;;  %v2844_v59 = vadd.f32 %v2789_v1, %v424_v41  ;;  %v3945_v10 = vpop.f32.mrf.mxu0 }
 0xa51   : > { %2860 = vst [vmem:[%s5564_s20 + $0x40] sm:$0xff] %v2828_v53  ;;  %v2831_v33 = vadd.f32 %v3945_v10, %v411_v52  ;;  %v3977_v5 = vpop.f32.mrf.mxu1 }
 0xa52   : > { %2876 = vst [vmem:[%s5564_s20 + $0xc0] sm:$0xff] %v2844_v59  ;;  %v2847_v3 = vadd.f32 %v3977_v5, %v427_v0  ;;  %v2695_v19 = vpop.f32.mrf.mxu0 }
 0xa53   : > { %2863 = vst [vmem:[%s5564_s20 + $0x58] sm:$0xff] %v2831_v33  ;;  %v2829_v15 = vadd.f32 %v2695_v19, %v409_v7  ;;  %v2792_v51 = vpop.f32.mrf.mxu1 }
 0xa54   : > { %2879 = vst [vmem:[%s5564_s20 + $0xd8] sm:$0xff] %v2847_v3  ;;  %v2845_v38 = vadd.f32 %v2792_v51, %v425_v57  ;;  %v3948_v24 = vpop.f32.mrf.mxu0 }
 0xa55   : > { %2861 = vst [vmem:[%s5564_s20 + $0x48] sm:$0xff] %v2829_v15  ;;  %v2834_v11 = vadd.f32 %v3948_v24, %v414_v14  ;;  %v3980_v31 = vpop.f32.mrf.mxu1 }
 0xa56   : > { %2877 = vst [vmem:[%s5564_s20 + $0xc8] sm:$0xff] %v2845_v38  ;;  %v2850_v30 = vadd.f32 %v3980_v31, %v430_v21  ;;  %v2708_v45 = vpop.f32.mrf.mxu0 }
 0xa57   : > { %2866 = vst [vmem:[%s5564_s20 + $0x70] sm:$0xff] %v2834_v11  ;;  %v2832_v61 = vadd.f32 %v2708_v45, %v412_v27  ;;  %v2805_v4 = vpop.f32.mrf.mxu1 }
 0xa58   : > { %2882 = vst [vmem:[%s5564_s20 + $0xf0] sm:$0xff] %v2850_v30  ;;  %v2848_v32 = vadd.f32 %v2805_v4, %v428_v47  ;;  %v3949_v36 = vpop.f32.mrf.mxu0 }
 0xa59   : > { %2864 = vst [vmem:[%s5564_s20 + $0x60] sm:$0xff] %v2832_v61  ;;  %v2835_v58 = vadd.f32 %v3949_v36, %v415_v29  ;;  %v3981_v13 = vpop.f32.mrf.mxu1 }
 0xa5a   : > { %2880 = vst [vmem:[%s5564_s20 + $0xe0] sm:$0xff] %v2848_v32  ;;  %v2851_v49 = vadd.f32 %v3981_v13, %v431_v8  ;;  %v2711_v50 = vpop.f32.mrf.mxu0 }
 0xa5b   : > { %2867 = vst [vmem:[%s5564_s20 + $0x78] sm:$0xff] %v2835_v58  ;;  %v2833_v55 = vadd.f32 %v2711_v50, %v413_v44  ;;  %v2808_v37 = vpop.f32.mrf.mxu1 }
 0xa5c   : > { %2883 = vst [vmem:[%s5564_s20 + $0xf8] sm:$0xff] %v2851_v49  ;;  %v2849_v20 = vadd.f32 %v2808_v37, %v429_v9 }
 0xa5d   : > { %2865 = vst [vmem:[%s5564_s20 + $0x68] sm:$0xff] %v2833_v55 }
 0xa5e   : > { %2881 = vst [vmem:[%s5564_s20 + $0xe8] sm:$0xff] %v2849_v20 }
 0xa5f   : > { %4138 = shalt.err (!%p4135_p4)
}
 0xa60   : > { %s4139_s25 = scalar_lea.hbm %s5626_s19, 4096  ;;  %s4143_s30 = scalar_lea.hbm %s5676_s2, 8192 }
 0xa61   : > { %p4140_p9 = scmp.ne.s32.totalorder %s5626_s19, %s4139_s25  ;;  %p4144_p5 = scmp.lt.s32.totalorder %s5626_s19, %s5676_s2 }
 0xa62   : > { %p4145_p8 = scmp.lt.s32.totalorder %s4143_s30, %s4139_s25 }
 0xa63   : > { %p4141_p11 = pnand %p4140_p9, %p6127_p1 }
 0xa64   : > { %p4146_p6 = por %p4145_p8, %p4144_p5 }
 0xa65   : > { %p4142_p3 = pneg %p4141_p11 }
 0xa67   : > { %p4147_p13 = pnand %p4146_p6, %p4142_p3 }
 0xa69   : > { %4150 = shalt.err (!%p4147_p13)
}
 0xa6a   : > { %s4200_s29 = smov 128   ;;  %s4201_s5 = smov 8  }
 0xa6b   : > { %3986 = dma.vmem_to_hbm [thread:$0]  (%p6127_p1), %s5628_s14, 4096, %s5626_s19, %s2885_s13, %s4200_s29, %s4200_s29, %s4201_s5  }
 0xa6c PF: > { %s2914_s20 = sand.u32 1, %s4181_s9   ;;  %p6128_p12 = scmp.ne.s32.totalorder %s5764_s22, 0 }
 0xa6d   : > { %p6129_p7 = scmp.ge.s32.totalorder %s4193_s12, 2  ;;  %s2915_s6 = scalar_lea.sflag [#allocation4], %s2914_s20 }
 0xa6f   : > { %p3996_p10 = pnand %p6129_p7, %p6128_p12 }
 0xa71   : > { %p3997_p0 = pneg %p3996_p10 }
 0xa73   : > { %4176 = dma.done.wait (%p3997_p0), %s2915_s6, 4096  }
 0xa74   : > { %4178 = vsyncadd (%p3997_p0), %s2915_s6, 4294963200  ;;  %p18_p2 = scmp.ge.s32.totalorder %s4242_s15, 4   ;;  %s6130_s9 = smov %s4185_s10 }
 0xa75   : > { %s6131_s10 = smov %s4189_s11  ;;  %s6132_s11 = smov %s4254_s18 }
 0xa76   : > { %s6133_s12 = smov %s4242_s15  ;;  %20 = sbr.rel (!%p18_p2) target bundleno = 7 (0x7), region = 86 }
 0xa7b   :  { %2920 = vsyncpa [#allocation3], 1 }
 0xa7c   :  { %2922 = vsyncpa [#allocation3 + $0x1], 1 }
 0xa7d   :  { %2923 = vsyncpa [#allocation6], 1 }
 0xa7e   :  { %2925 = vsyncpa [#allocation6 + $0x1], 1 }
 0xa7f   :  { %2926 = vsyncpa [#allocation4], 1 }
 0xa80   :  { %2928 = vsyncpa [#allocation4 + $0x1], 1 }

</bundles_post_ra>
